<compile_context>
chip_gen: v7x
topology: tpu7x:2x2x1
jax: 0.10.0
libtpu: 0.0.40
codegen_flags: <defaults>
</compile_context>

<pallas_src>
import jax
import jax.numpy as jnp
from jax.experimental import pallas as pl
from jax.experimental.pallas import tpu as pltpu


D_OUT_PAD = 128    # lane-dense padded width for the node head output


def _fused_gnn_kernel(a_ref, x_ref, w1_ref, b1_ref, w2_ref, b2_ref,
                      wh_ref, bh_ref, out_ref, p_ref):
    """Whole forward pass, everything VMEM-resident.

    a_ref : (N, N)   bf16 normalized adjacency
    x_ref : (N, D)   bf16 node features
    w1/w2 : (D, D)   bf16 GCN projection weights
    b1/b2 : (1, D)   f32  GCN biases (added post-aggregation, as in PyG GCNConv)
    wh    : (D, 128) bf16 node-head weight, zero-padded to 128 lanes
    bh    : (1, 128) f32  node-head bias, zero-padded
    out   : (N, 128) f32  padded head output
    p_ref : (N, D)   bf16 scratch, reused for P1 then P2 (never touches HBM)
    """
    # ---- layer 1: P1 = X @ W1 ; H1 = relu(A @ P1 + b1) ----------------------
    p_ref[...] = jnp.dot(
        x_ref[...], w1_ref[...], preferred_element_type=jnp.float32
    ).astype(p_ref.dtype)
    h1 = jnp.dot(a_ref[...], p_ref[...], preferred_element_type=jnp.float32)
    h1 = jnp.maximum(h1 + b1_ref[...], 0.0)          # bias + ReLU in f32 (VPU)
    # dropout(p=0.1, training=False) == identity in eval mode.

    # ---- layer 2: P2 = H1 @ W2 ; H2 = relu(A @ P2 + b2) ----------------------
    p_ref[...] = jnp.dot(
        h1.astype(w2_ref.dtype), w2_ref[...], preferred_element_type=jnp.float32
    ).astype(p_ref.dtype)
    h2 = jnp.dot(a_ref[...], p_ref[...], preferred_element_type=jnp.float32)
    h2 = jnp.maximum(h2 + b2_ref[...], 0.0)

    # ---- node head (lane-dense padded): Y = H2 @ Wh + bh ---------------------
    out = jnp.dot(
        h2.astype(wh_ref.dtype), wh_ref[...], preferred_element_type=jnp.float32
    ) + bh_ref[...]
    out_ref[...] = out.astype(out_ref.dtype)


def _vmem_limit_bytes() -> int:
    """Per-generation scoped-VMEM limit (v5e/v6e: 128 MiB phys, v7x: 64 MiB)."""
    try:
        cap = pltpu.get_tpu_info().vmem_capacity_bytes
        return int(min(cap - (16 << 20), 100 << 20))
    except Exception:
        return 48 << 20            # conservative fallback, safe on every gen


_VMEM_LIMIT = _vmem_limit_bytes()


@jax.jit
def example_gnn_forward(a_norm, x, w1, b1, w2, b2, w_head, b_head):
    n, d = x.shape
    d_out = w_head.shape[1]
    assert n % 8 == 0 and d % 128 == 0, "shapes must be vreg/MXU aligned"

    bf16 = jnp.bfloat16
    a_bf = a_norm.astype(bf16)
    x_bf = x.astype(bf16)
    w1_bf = w1.astype(bf16)
    w2_bf = w2.astype(bf16)

    # Lane-dense head: zero-pad d_out -> 128 columns, slice back after the call.
    wh_pad = jnp.zeros((d, D_OUT_PAD), bf16).at[:, :d_out].set(w_head.astype(bf16))
    bh_pad = jnp.zeros((1, D_OUT_PAD), jnp.float32).at[:, :d_out].set(b_head)

    vmem = pl.BlockSpec(memory_space=pltpu.MemorySpace.VMEM)   # whole array, VMEM-resident

    out_pad = pl.pallas_call(
        _fused_gnn_kernel,
        out_shape=jax.ShapeDtypeStruct((n, D_OUT_PAD), jnp.float32),
        in_specs=[vmem] * 8,
        out_specs=vmem,
        scratch_shapes=[pltpu.VMEM((n, d), bf16)],     # reused for P1 then P2
        compiler_params=pltpu.CompilerParams(vmem_limit_bytes=_VMEM_LIMIT),
    )(a_bf, x_bf, w1_bf, b1, w2_bf, b2, wh_pad, bh_pad)

    return out_pad[:, :d_out]


def build_gcn_norm_adjacency(edge_index, num_nodes):
    """Dense D^{-1/2} (A + I) D^{-1/2}, matching PyG GCNConv default gcn_norm.

    Note: .at[...].set dedupes repeated edges; PyG's scatter-add would count them
    (no repeated edges in the deterministic ring graph used below).
    """
    src, dst = edge_index[0], edge_index[1]
    a = jnp.zeros((num_nodes, num_nodes), jnp.float32)
    a = a.at[dst, src].set(1.0)                              # target aggregates from source
    a_hat = a + jnp.eye(num_nodes, dtype=jnp.float32)        # add self loops
    deg = a_hat.sum(axis=1)
    d_inv_sqrt = jnp.where(deg > 0, jax.lax.rsqrt(deg), 0.0)
    return d_inv_sqrt[:, None] * a_hat * d_inv_sqrt[None, :]


def reference_forward(a_norm, x, w1, b1, w2, b2, w_head, b_head):
    """Plain-JAX reference following the same bf16-operand / f32-accum dtype path."""
    bf = jnp.bfloat16
    a = a_norm.astype(bf)
    p1 = jnp.dot(x.astype(bf), w1.astype(bf),
                 preferred_element_type=jnp.float32).astype(bf)
    h1 = jnp.maximum(jnp.dot(a, p1, preferred_element_type=jnp.float32) + b1, 0.0)
    p2 = jnp.dot(h1.astype(bf), w2.astype(bf),
                 preferred_element_type=jnp.float32).astype(bf)
    h2 = jnp.maximum(jnp.dot(a, p2, preferred_element_type=jnp.float32) + b2, 0.0)
    return jnp.dot(h2.astype(bf), w_head.astype(bf),
                   preferred_element_type=jnp.float32) + b_head


if __name__ == "__main__":
    # Shapes chosen to fill (8,128) vregs / the MXU: N=512 nodes, dim_in=128, dim_out=8.
    num_nodes = 512
    dim_in = 128
    dim_out = 8

    key = jax.random.PRNGKey(0)
    k_x, k_w1, k_b1, k_w2, k_b2, k_wh, k_bh = jax.random.split(key, 7)

    x = jax.random.normal(k_x, (num_nodes, dim_in), dtype=jnp.float32)

    # Deterministic undirected ring graph.
    idx = jnp.arange(num_nodes)
    src = jnp.concatenate([idx, (idx + 1) % num_nodes])
    dst = jnp.concatenate([(idx + 1) % num_nodes, idx])
    edge_index = jnp.stack([src, dst], axis=0)               # [2, 2N]
    a_norm = build_gcn_norm_adjacency(edge_index, num_nodes)

    # Parameters: GCNConv(dim_in, dim_in) x2 + node head Linear(dim_in, dim_out).
    scale_in = 1.0 / jnp.sqrt(jnp.float32(dim_in))
    w1 = jax.random.normal(k_w1, (dim_in, dim_in), jnp.float32) * scale_in
    b1 = jax.random.normal(k_b1, (1, dim_in), jnp.float32) * 0.01
    w2 = jax.random.normal(k_w2, (dim_in, dim_in), jnp.float32) * scale_in
    b2 = jax.random.normal(k_b2, (1, dim_in), jnp.float32) * 0.01
    w_head = jax.random.normal(k_wh, (dim_in, dim_out), jnp.float32) * scale_in
    b_head = jax.random.normal(k_bh, (1, dim_out), jnp.float32) * 0.01

    out = example_gnn_forward(a_norm, x, w1, b1, w2, b2, w_head, b_head)
    out = jax.block_until_ready(out)

    ref = reference_forward(a_norm, x, w1, b1, w2, b2, w_head, b_head)
    assert out.shape == (num_nodes, dim_out)
    assert jnp.allclose(out, ref, atol=1e-2, rtol=1e-2), "mismatch vs JAX reference"

    print("KERNEL_OK")
</pallas_src>

<mosaic_0001>
module attributes {stable_mosaic.version = 11 : i64} {
  func.func @_fused_gnn_kernel(%arg0: memref<512x512xbf16, #tpu.memory_space<vmem>>, %arg1: memref<512x128xbf16, #tpu.memory_space<vmem>>, %arg2: memref<128x128xbf16, #tpu.memory_space<vmem>>, %arg3: memref<1x128xf32, #tpu.memory_space<vmem>>, %arg4: memref<128x128xbf16, #tpu.memory_space<vmem>>, %arg5: memref<1x128xf32, #tpu.memory_space<vmem>>, %arg6: memref<128x128xbf16, #tpu.memory_space<vmem>>, %arg7: memref<1x128xf32, #tpu.memory_space<vmem>>, %arg8: memref<512x128xf32, #tpu.memory_space<vmem>>, %arg9: memref<512x128xbf16, #tpu.memory_space<vmem>>) attributes {dimension_semantics = [], scalar_prefetch = 0 : i64, scratch_operands = 1 : i64, tpu.core_type = #tpu.core_type<tc>} {
    %c0 = arith.constant 0 : index
    %c0_0 = arith.constant 0 : index
    %0 = vector.load %arg1[%c0, %c0_0] : memref<512x128xbf16, #tpu.memory_space<vmem>>, vector<512x128xbf16>
    %c0_1 = arith.constant 0 : index
    %c0_2 = arith.constant 0 : index
    %1 = vector.load %arg2[%c0_1, %c0_2] : memref<128x128xbf16, #tpu.memory_space<vmem>>, vector<128x128xbf16>
    %cst = arith.constant dense<0.000000e+00> : vector<512x128xf32>
    %2 = tpu.matmul %0, %1, %cst {dimension_numbers = #tpu.dot_dimension_numbers<[1], [0], [0], [1], [0, 0, 1, 1], [], []>} : vector<512x128xbf16>, vector<128x128xbf16>, vector<512x128xf32> -> vector<512x128xf32>
    %3 = arith.truncf %2 : vector<512x128xf32> to vector<512x128xbf16>
    %c0_3 = arith.constant 0 : index
    %c0_4 = arith.constant 0 : index
    %4 = vector.load %arg9[%c0_3, %c0_4] : memref<512x128xbf16, #tpu.memory_space<vmem>>, vector<512x128xbf16>
    tpu.vector_store %arg9[%c0_3, %c0_4], %3 {strides = array<i32>} : memref<512x128xbf16, #tpu.memory_space<vmem>>, vector<512x128xbf16>,
    %c0_5 = arith.constant 0 : index
    %c0_6 = arith.constant 0 : index
    %5 = vector.load %arg0[%c0_5, %c0_6] : memref<512x512xbf16, #tpu.memory_space<vmem>>, vector<512x512xbf16>
    %c0_7 = arith.constant 0 : index
    %c0_8 = arith.constant 0 : index
    %6 = vector.load %arg9[%c0_7, %c0_8] : memref<512x128xbf16, #tpu.memory_space<vmem>>, vector<512x128xbf16>
    %cst_9 = arith.constant dense<0.000000e+00> : vector<512x128xf32>
    %7 = tpu.matmul %5, %6, %cst_9 {dimension_numbers = #tpu.dot_dimension_numbers<[1], [0], [0], [1], [0, 0, 1, 1], [], []>} : vector<512x512xbf16>, vector<512x128xbf16>, vector<512x128xf32> -> vector<512x128xf32>
    %c0_10 = arith.constant 0 : index
    %c0_11 = arith.constant 0 : index
    %8 = vector.load %arg3[%c0_10, %c0_11] : memref<1x128xf32, #tpu.memory_space<vmem>>, vector<1x128xf32>
    %9 = vector.broadcast %8 : vector<1x128xf32> to vector<512x128xf32>
    %10 = arith.addf %7, %9 : vector<512x128xf32>
    %cst_12 = arith.constant 0.000000e+00 : f32
    %11 = vector.broadcast %cst_12 : f32 to vector<512x128xf32>
    %12 = arith.maximumf %10, %11 : vector<512x128xf32>
    %13 = arith.truncf %12 : vector<512x128xf32> to vector<512x128xbf16>
    %c0_13 = arith.constant 0 : index
    %c0_14 = arith.constant 0 : index
    %14 = vector.load %arg4[%c0_13, %c0_14] : memref<128x128xbf16, #tpu.memory_space<vmem>>, vector<128x128xbf16>
    %cst_15 = arith.constant dense<0.000000e+00> : vector<512x128xf32>
    %15 = tpu.matmul %13, %14, %cst_15 {dimension_numbers = #tpu.dot_dimension_numbers<[1], [0], [0], [1], [0, 0, 1, 1], [], []>} : vector<512x128xbf16>, vector<128x128xbf16>, vector<512x128xf32> -> vector<512x128xf32>
    %16 = arith.truncf %15 : vector<512x128xf32> to vector<512x128xbf16>
    %c0_16 = arith.constant 0 : index
    %c0_17 = arith.constant 0 : index
    %17 = vector.load %arg9[%c0_16, %c0_17] : memref<512x128xbf16, #tpu.memory_space<vmem>>, vector<512x128xbf16>
    tpu.vector_store %arg9[%c0_16, %c0_17], %16 {strides = array<i32>} : memref<512x128xbf16, #tpu.memory_space<vmem>>, vector<512x128xbf16>,
    %c0_18 = arith.constant 0 : index
    %c0_19 = arith.constant 0 : index
    %18 = vector.load %arg0[%c0_18, %c0_19] : memref<512x512xbf16, #tpu.memory_space<vmem>>, vector<512x512xbf16>
    %c0_20 = arith.constant 0 : index
    %c0_21 = arith.constant 0 : index
    %19 = vector.load %arg9[%c0_20, %c0_21] : memref<512x128xbf16, #tpu.memory_space<vmem>>, vector<512x128xbf16>
    %cst_22 = arith.constant dense<0.000000e+00> : vector<512x128xf32>
    %20 = tpu.matmul %18, %19, %cst_22 {dimension_numbers = #tpu.dot_dimension_numbers<[1], [0], [0], [1], [0, 0, 1, 1], [], []>} : vector<512x512xbf16>, vector<512x128xbf16>, vector<512x128xf32> -> vector<512x128xf32>
    %c0_23 = arith.constant 0 : index
    %c0_24 = arith.constant 0 : index
    %21 = vector.load %arg5[%c0_23, %c0_24] : memref<1x128xf32, #tpu.memory_space<vmem>>, vector<1x128xf32>
    %22 = vector.broadcast %21 : vector<1x128xf32> to vector<512x128xf32>
    %23 = arith.addf %20, %22 : vector<512x128xf32>
    %cst_25 = arith.constant 0.000000e+00 : f32
    %24 = vector.broadcast %cst_25 : f32 to vector<512x128xf32>
    %25 = arith.maximumf %23, %24 : vector<512x128xf32>
    %26 = arith.truncf %25 : vector<512x128xf32> to vector<512x128xbf16>
    %c0_26 = arith.constant 0 : index
    %c0_27 = arith.constant 0 : index
    %27 = vector.load %arg6[%c0_26, %c0_27] : memref<128x128xbf16, #tpu.memory_space<vmem>>, vector<128x128xbf16>
    %cst_28 = arith.constant dense<0.000000e+00> : vector<512x128xf32>
    %28 = tpu.matmul %26, %27, %cst_28 {dimension_numbers = #tpu.dot_dimension_numbers<[1], [0], [0], [1], [0, 0, 1, 1], [], []>} : vector<512x128xbf16>, vector<128x128xbf16>, vector<512x128xf32> -> vector<512x128xf32>
    %c0_29 = arith.constant 0 : index
    %c0_30 = arith.constant 0 : index
    %29 = vector.load %arg7[%c0_29, %c0_30] : memref<1x128xf32, #tpu.memory_space<vmem>>, vector<1x128xf32>
    %30 = vector.broadcast %29 : vector<1x128xf32> to vector<512x128xf32>
    %31 = arith.addf %28, %30 : vector<512x128xf32>
    %c0_31 = arith.constant 0 : index
    %c0_32 = arith.constant 0 : index
    %32 = vector.load %arg8[%c0_31, %c0_32] : memref<512x128xf32, #tpu.memory_space<vmem>>, vector<512x128xf32>
    tpu.vector_store %arg8[%c0_31, %c0_32], %31 {strides = array<i32>} : memref<512x128xf32, #tpu.memory_space<vmem>>, vector<512x128xf32>,
    return
  }
}

</mosaic_0001>

<bundles_post_ra>
// kernel: example_gnn_forward.1
= control target key start
LH: loop header
LB: loop body
LE: loop exit
PB: predicated region body
PF: predicated region fallthrough
CT: control target
= control target key end

     0   :  { %v6026_v34 = vmov 0   ;;  %s7543_s2 = inlined_call_operand.vmem [shape: bf16[128,128], index: 2, kind: input, shape index: {}]   ;;  %s7544_s1 = inlined_call_operand.vmem [shape: bf16[512,128], index: 1, kind: input, shape index: {}]   ;;  %s7545_s0 = inlined_call_operand.vmem [shape: bf16[512,512], index: 0, kind: input, shape index: {}]   ;;  %s7546_s4 = inlined_call_operand.vmem [shape: bf16[128,128], index: 4, kind: input, shape index: {}]   ;;  %s7547_s3 = inlined_call_operand.vmem [shape: f32[1,128], index: 3, kind: input, shape index: {}]   ;;  %s7548_s6 = inlined_call_operand.vmem [shape: bf16[128,128], index: 6, kind: input, shape index: {}]   ;;  %s7549_s5 = inlined_call_operand.vmem [shape: f32[1,128], index: 5, kind: input, shape index: {}]   ;;  %s7550_s7 = inlined_call_operand.vmem [shape: f32[1,128], index: 7, kind: input, shape index: {}]   ;;  %s7551_s8 = inlined_call_operand.vmem [shape: f32[512,128], index: 8, kind: output, shape index: {}]  }
   0x1   :  { %v5586_v0 = vld [vmem:[%s7543_s2] sm:$0xff]   ;;  %v5587_v1 = vld [vmem:[%s7543_s2 + $0x8] sm:$0xff]   ;;  %v5588_v2 = vld [vmem:[%s7543_s2 + $0x10] sm:$0xff]  }
   0x2   :  { %4945 = vmatprep.subr.bf16.mxu0 %v5586_v0  ;;  %5185 = vmatprep.subr.bf16.mxu1 %v5586_v0  ;;  %v5589_v3 = vld [vmem:[%s7543_s2 + $0x18] sm:$0xff]   ;;  %v5594_v4 = vld [vmem:[%s7544_s1] sm:$0xff]   ;;  %v5591_v6 = vld [vmem:[%s7543_s2 + $0x28] sm:$0xff]  }
   0x3   :  { %4946 = vmatpush3.bf16.msra.mxu0 %v5586_v0  ;;  %5193 = vmatpush3.bf16.msra.mxu1 %v5586_v0  ;;  %v5590_v5 = vld [vmem:[%s7543_s2 + $0x20] sm:$0xff]   ;;  %v5592_v7 = vld [vmem:[%s7543_s2 + $0x30] sm:$0xff]   ;;  %v5593_v8 = vld [vmem:[%s7543_s2 + $0x38] sm:$0xff]  }
   0x4   :  { %4947 = vmatprep.subr.bf16.mxu0 %v5587_v1  ;;  %5186 = vmatprep.subr.bf16.mxu1 %v5587_v1  ;;  %v5610_v9 = vld [vmem:[%s7544_s1 + $0x80] sm:$0xff]   ;;  %v5595_v10 = vld [vmem:[%s7544_s1 + $0x8] sm:$0xff]   ;;  %v5596_v11 = vld [vmem:[%s7544_s1 + $0x10] sm:$0xff]  }
   0x5   :  { %4961 = vmatprep.mubr.bf16.mxu0 %v5594_v4  ;;  %4993 = vmatprep.mubr.bf16.mxu1 %v5610_v9  ;;  %v5611_v12 = vld [vmem:[%s7544_s1 + $0x88] sm:$0xff]   ;;  %v5612_v13 = vld [vmem:[%s7544_s1 + $0x90] sm:$0xff]   ;;  %v5597_v14 = vld [vmem:[%s7544_s1 + $0x18] sm:$0xff]  }
   0x6   :  { %v5613_v15 = vld [vmem:[%s7544_s1 + $0x98] sm:$0xff]   ;;  %v5598_v16 = vld [vmem:[%s7544_s1 + $0x20] sm:$0xff]   ;;  %v5599_v18 = vld [vmem:[%s7544_s1 + $0x28] sm:$0xff]  }
   0x7   :  { %4948 = vmatpush3.bf16.msra.mxu0 %v5587_v1  ;;  %5194 = vmatpush3.bf16.msra.mxu1 %v5587_v1  ;;  %v5614_v17 = vld [vmem:[%s7544_s1 + $0xa0] sm:$0xff]   ;;  %v5615_v19 = vld [vmem:[%s7544_s1 + $0xa8] sm:$0xff]   ;;  %v5600_v20 = vld [vmem:[%s7544_s1 + $0x30] sm:$0xff]  }
   0x8   :  { %4949 = vmatprep.subr.bf16.mxu0 %v5588_v2  ;;  %5187 = vmatprep.subr.bf16.mxu1 %v5588_v2  ;;  %v5616_v21 = vld [vmem:[%s7544_s1 + $0xb0] sm:$0xff]   ;;  %v5601_v22 = vld [vmem:[%s7544_s1 + $0x38] sm:$0xff]   ;;  %v5602_v24 = vld [vmem:[%s7544_s1 + $0x40] sm:$0xff]  }
   0x9   :  { %v5617_v23 = vld [vmem:[%s7544_s1 + $0xb8] sm:$0xff]   ;;  %v5618_v25 = vld [vmem:[%s7544_s1 + $0xc0] sm:$0xff]   ;;  %v5603_v26 = vld [vmem:[%s7544_s1 + $0x48] sm:$0xff]  }
   0xa   :  { %v5619_v27 = vld [vmem:[%s7544_s1 + $0xc8] sm:$0xff]   ;;  %v5604_v28 = vld [vmem:[%s7544_s1 + $0x50] sm:$0xff]   ;;  %v5605_v29 = vld [vmem:[%s7544_s1 + $0x58] sm:$0xff]  }
   0xb   :  { %4950 = vmatpush3.bf16.msra.mxu0 %v5588_v2  ;;  %5195 = vmatpush3.bf16.msra.mxu1 %v5588_v2  ;;  %v5606_v30 = vld [vmem:[%s7544_s1 + $0x60] sm:$0xff]   ;;  %v5607_v31 = vld [vmem:[%s7544_s1 + $0x68] sm:$0xff]   ;;  %v5608_v32 = vld [vmem:[%s7544_s1 + $0x70] sm:$0xff]  }
   0xc   :  { %4951 = vmatprep.subr.bf16.mxu0 %v5589_v3  ;;  %5188 = vmatprep.subr.bf16.mxu1 %v5589_v3  ;;  %v5609_v33 = vld [vmem:[%s7544_s1 + $0x78] sm:$0xff]   ;;  %v5620_v35 = vld [vmem:[%s7544_s1 + $0xd0] sm:$0xff]   ;;  %v5622_v37 = vld [vmem:[%s7544_s1 + $0xe0] sm:$0xff]  }
   0xd   :  { %v5621_v36 = vld [vmem:[%s7544_s1 + $0xd8] sm:$0xff]   ;;  %v5623_v38 = vld [vmem:[%s7544_s1 + $0xe8] sm:$0xff]   ;;  %v5624_v39 = vld [vmem:[%s7544_s1 + $0xf0] sm:$0xff]  }
   0xe   :  { %v5625_v40 = vld [vmem:[%s7544_s1 + $0xf8] sm:$0xff]   ;;  %v5628_v41 = vld [vmem:[%s7545_s0 + $0x4] ss:$16 sps:$4 sm:$0xff]  }
   0xf   :  { %4952 = vmatpush3.bf16.msra.mxu0 %v5589_v3  ;;  %5196 = vmatpush3.bf16.msra.mxu1 %v5589_v3 }
  0x10   :  { %4953 = vmatprep.subr.bf16.mxu0 %v5590_v5  ;;  %5189 = vmatprep.subr.bf16.mxu1 %v5590_v5 }
  0x13   :  { %4954 = vmatpush3.bf16.msra.mxu0 %v5590_v5  ;;  %5197 = vmatpush3.bf16.msra.mxu1 %v5590_v5 }
  0x14   :  { %4955 = vmatprep.subr.bf16.mxu0 %v5591_v6  ;;  %5190 = vmatprep.subr.bf16.mxu1 %v5591_v6 }
  0x17   :  { %4956 = vmatpush3.bf16.msra.mxu0 %v5591_v6  ;;  %5198 = vmatpush3.bf16.msra.mxu1 %v5591_v6 }
  0x18   :  { %4957 = vmatprep.subr.bf16.mxu0 %v5592_v7  ;;  %5191 = vmatprep.subr.bf16.mxu1 %v5592_v7 }
  0x1b   :  { %4958 = vmatpush3.bf16.msra.mxu0 %v5592_v7  ;;  %5199 = vmatpush3.bf16.msra.mxu1 %v5592_v7 }
  0x1c   :  { %4959 = vmatprep.subr.bf16.mxu0 %v5593_v8  ;;  %5192 = vmatprep.subr.bf16.mxu1 %v5593_v8 }
  0x1f   :  { %4960 = vmatpush3.bf16.msra.mxu0 %v5593_v8  ;;  %5200 = vmatpush3.bf16.msra.mxu1 %v5593_v8 }
  0x20   :  { %1510 = vmatprep.subr.bf16.mxu1 %v6026_v34 }
  0x22   :  { %4962 = vmatmul.mubr.bf16.vlgmr.msra.gmra.mrb[0].mxu0 %v5595_v10  ;;  %4994 = vmatmul.mubr.bf16.vlgmr.msra.gmra.mrb[0].mxu1 %v5611_v12 }
  0x23   :  { %4965 = vmatprep.mubr.bf16.mxu0 %v5596_v11  ;;  %4997 = vmatprep.mubr.bf16.mxu1 %v5612_v13 }
  0x2a   :  { %4966 = vmatmul.mubr.bf16.gmra.mrb[4].mxu0 %v5597_v14  ;;  %4998 = vmatmul.mubr.bf16.gmra.mrb[4].mxu1 %v5613_v15 }
  0x2b   :  { %4969 = vmatprep.mubr.bf16.mxu0 %v5598_v16  ;;  %5001 = vmatprep.mubr.bf16.mxu1 %v5614_v17 }
  0x32   :  { %4970 = vmatmul.mubr.bf16.gmra.mrb[8].mxu0 %v5599_v18  ;;  %5002 = vmatmul.mubr.bf16.gmra.mrb[8].mxu1 %v5615_v19 }
  0x33   :  { %4973 = vmatprep.mubr.bf16.mxu0 %v5600_v20  ;;  %5005 = vmatprep.mubr.bf16.mxu1 %v5616_v21 }
  0x3a   :  { %4974 = vmatmul.mubr.bf16.gmra.mrb[12].mxu0 %v5601_v22  ;;  %5006 = vmatmul.mubr.bf16.gmra.mrb[12].mxu1 %v5617_v23 }
  0x3b   :  { %4977 = vmatprep.mubr.bf16.mxu0 %v5602_v24  ;;  %5009 = vmatprep.mubr.bf16.mxu1 %v5618_v25 }
  0x42   :  { %4978 = vmatmul.mubr.bf16.gmra.mrb[16].mxu0 %v5603_v26  ;;  %5010 = vmatmul.mubr.bf16.gmra.mrb[16].mxu1 %v5619_v27 }
  0x43   :  { %4981 = vmatprep.mubr.bf16.mxu0 %v5604_v28  ;;  %5013 = vmatprep.mubr.bf16.mxu1 %v5620_v35 }
  0x4a   :  { %4982 = vmatmul.mubr.bf16.gmra.mrb[20].mxu0 %v5605_v29  ;;  %5014 = vmatmul.mubr.bf16.gmra.mrb[20].mxu1 %v5621_v36 }
  0x4b   :  { %4985 = vmatprep.mubr.bf16.mxu0 %v5606_v30  ;;  %5017 = vmatprep.mubr.bf16.mxu1 %v5622_v37 }
  0x52   :  { %4986 = vmatmul.mubr.bf16.gmra.mrb[24].mxu0 %v5607_v31  ;;  %5018 = vmatmul.mubr.bf16.gmra.mrb[24].mxu1 %v5623_v38 }
  0x53   :  { %4989 = vmatprep.mubr.bf16.mxu0 %v5608_v32  ;;  %5021 = vmatprep.mubr.bf16.mxu1 %v5624_v39 }
  0x5a   :  { %4990 = vmatmul.mubr.bf16.gmra.mrb[28].mxu0 %v5609_v33  ;;  %5022 = vmatmul.mubr.bf16.gmra.mrb[28].mxu1 %v5625_v40 }
  0x5b   :  { %1542 = vmatprep.mubr.bf16.mxu1 %v5628_v41 }
  0xf5   :  { %v4963_v42 = vpop.f32.mrb[0].mxu0  ;;  %v6196_v43 = vpop.f32.mrb[0].mxu1 }
  0xf6   :  { %v384_v44 = vpop.f32.mrb[1].mxu0  ;;  %v6198_v45 = vpop.f32.mrb[1].mxu1 }
  0xf7   :  { %v4964_v46 = vpop.f32.mrb[2].mxu0  ;;  %v6200_v47 = vpop.f32.mrb[2].mxu1 }
  0xf8   :  { %v640_v48 = vpack.c.bf16 %v4964_v46, %v4963_v42  ;;  %v387_v49 = vpop.f32.mrb[3].mxu0  ;;  %v656_v50 = vpack.c.bf16 %v6200_v47, %v6196_v43  ;;  %v6204_v51 = vpop.f32.mrb[3].mxu1  ;;  %v5635_v43 = vld [vmem:[%s7545_s0 + $0x64] ss:$16 sps:$4 sm:$0xff]   ;;  %v5637_v47 = vld [vmem:[%s7545_s0 + $0x60] ss:$16 sps:$4 sm:$0xff]  }
  0xf9   :  { %v639_v52 = vpack.c.bf16 %v387_v49, %v384_v44  ;;  %v655_v53 = vpack.c.bf16 %v6204_v51, %v6198_v45  ;;  %v5634_v45 = vld [vmem:[%s7545_s0 + $0x40] ss:$16 sps:$4 sm:$0xff]  }
  0xfa   :  { %v5640_v51 = vld [vmem:[%s7545_s0 + $0x80] ss:$16 sps:$4 sm:$0xff]  }
  0xfb   :  { %1511 = vmatpush1.bf16.msra.mxu1 %v639_v52 }
  0xfc   :  { %1512 = vmatprep.subr.bf16.mxu1 %v6026_v34 }
  0xfd   :  { %v4967_v54 = vpop.f32.mrb[4].mxu0  ;;  %v6209_v55 = vpop.f32.mrb[4].mxu1 }
  0xfe   :  { %v400_v56 = vpop.f32.mrb[5].mxu0  ;;  %v6211_v57 = vpop.f32.mrb[5].mxu1 }
  0xff   :  { %v4968_v58 = vpop.f32.mrb[6].mxu0  ;;  %1513 = vmatpush1.bf16.msra.mxu1 %v640_v48  ;;  %v6213_v59 = vpop.f32.mrb[6].mxu1 }
 0x100   :  { %v642_v60 = vpack.c.bf16 %v4968_v58, %v4967_v54  ;;  %v403_v61 = vpop.f32.mrb[7].mxu0  ;;  %1514 = vmatprep.subr.bf16.mxu1 %v6026_v34  ;;  %v658_v62 = vpack.c.bf16 %v6213_v59, %v6209_v55  ;;  %v6218_v63 = vpop.f32.mrb[7].mxu1 }
 0x101   :  { %v641_v0 = vpack.c.bf16 %v403_v61, %v400_v56  ;;  %v657_v1 = vpack.c.bf16 %v6218_v63, %v6211_v57 }
 0x103   :  { %1515 = vmatpush1.bf16.msra.mxu1 %v641_v0 }
 0x104   :  { %1516 = vmatprep.subr.bf16.mxu1 %v6026_v34 }
 0x105   :  { %v4971_v2 = vpop.f32.mrb[8].mxu0  ;;  %v6223_v3 = vpop.f32.mrb[8].mxu1 }
 0x106   :  { %v416_v4 = vpop.f32.mrb[9].mxu0  ;;  %v6225_v5 = vpop.f32.mrb[9].mxu1 }
 0x107   :  { %v4972_v6 = vpop.f32.mrb[10].mxu0  ;;  %1517 = vmatpush1.bf16.msra.mxu1 %v642_v60  ;;  %v6227_v7 = vpop.f32.mrb[10].mxu1 }
 0x108   :  { %v644_v8 = vpack.c.bf16 %v4972_v6, %v4971_v2  ;;  %v419_v9 = vpop.f32.mrb[11].mxu0  ;;  %1518 = vmatprep.subr.bf16.mxu1 %v6026_v34  ;;  %v660_v10 = vpack.c.bf16 %v6227_v7, %v6223_v3  ;;  %v6232_v11 = vpop.f32.mrb[11].mxu1  ;;  %v5626_v6 = vld [vmem:[%s7545_s0] ss:$16 sps:$4 sm:$0xff]  }
 0x109   :  { %v643_v12 = vpack.c.bf16 %v419_v9, %v416_v4  ;;  %v659_v13 = vpack.c.bf16 %v6232_v11, %v6225_v5  ;;  %v5629_v9 = vld [vmem:[%s7545_s0 + $0x24] ss:$16 sps:$4 sm:$0xff]   ;;  %v5643_v3 = vld [vmem:[%s7545_s0 + $0xa0] ss:$16 sps:$4 sm:$0xff]  }
 0x10a   :  { %v5644_v5 = vld [vmem:[%s7545_s0 + $0xc4] ss:$16 sps:$4 sm:$0xff]   ;;  %v5646_v7 = vld [vmem:[%s7545_s0 + $0xc0] ss:$16 sps:$4 sm:$0xff]  }
 0x10b   :  { %1519 = vmatpush1.bf16.msra.mxu1 %v643_v12  ;;  %v5631_v12 = vld [vmem:[%s7545_s0 + $0x20] ss:$16 sps:$4 sm:$0xff]  }
 0x10c   :  { %1520 = vmatprep.subr.bf16.mxu1 %v6026_v34  ;;  %v5649_v11 = vld [vmem:[%s7545_s0 + $0xe0] ss:$16 sps:$4 sm:$0xff]  }
 0x10d   :  { %v4975_v14 = vpop.f32.mrb[12].mxu0  ;;  %v6238_v20 = vpop.f32.mrb[12].mxu1 }
 0x10e   :  { %v432_v15 = vpop.f32.mrb[13].mxu0  ;;  %v6240_v21 = vpop.f32.mrb[13].mxu1 }
 0x10f   :  { %v4976_v16 = vpop.f32.mrb[14].mxu0  ;;  %1521 = vmatpush1.bf16.msra.mxu1 %v644_v8  ;;  %v6243_v22 = vpop.f32.mrb[14].mxu1 }
 0x110   :  { %v646_v17 = vpack.c.bf16 %v4976_v16, %v4975_v14  ;;  %v435_v18 = vpop.f32.mrb[15].mxu0  ;;  %1522 = vmatprep.subr.bf16.mxu1 %v6026_v34  ;;  %v662_v24 = vpack.c.bf16 %v6243_v22, %v6238_v20  ;;  %v6247_v25 = vpop.f32.mrb[15].mxu1  ;;  %v5632_v14 = vld [vmem:[%s7545_s0 + $0x44] ss:$16 sps:$4 sm:$0xff]  }
 0x111   :  { %v645_v19 = vpack.c.bf16 %v435_v18, %v432_v15  ;;  %v661_v27 = vpack.c.bf16 %v6247_v25, %v6240_v21  ;;  %v5652_v15 = vld [vmem:[%s7545_s0 + $0x100] ss:$16 sps:$4 sm:$0xff]   ;;  %v5656_v25 = vld [vmem:[%s7545_s0 + $0x144] ss:$16 sps:$4 sm:$0xff]  }
 0x113   :  { %1523 = vmatpush1.bf16.msra.mxu1 %v645_v19 }
 0x114   :  { %1524 = vmatprep.subr.bf16.mxu1 %v6026_v34 }
 0x115   :  { %v4979_v23 = vpop.f32.mrb[16].mxu0  ;;  %v5011_v60 = vpop.f32.mrb[16].mxu1 }
 0x116   :  { %v448_v26 = vpop.f32.mrb[17].mxu0  ;;  %v576_v61 = vpop.f32.mrb[17].mxu1 }
 0x117   :  { %v4980_v28 = vpop.f32.mrb[18].mxu0  ;;  %1525 = vmatpush1.bf16.msra.mxu1 %v646_v17  ;;  %v5012_v0 = vpop.f32.mrb[18].mxu1  ;;  %v5653_v17 = vld [vmem:[%s7545_s0 + $0x124] ss:$16 sps:$4 sm:$0xff]  }
 0x118   :  { %v648_v29 = vpack.c.bf16 %v4980_v28, %v4979_v23  ;;  %v451_v30 = vpop.f32.mrb[19].mxu0  ;;  %1526 = vmatprep.subr.bf16.mxu1 %v6026_v34  ;;  %v664_v2 = vpack.c.bf16 %v5012_v0, %v5011_v60  ;;  %v579_v4 = vpop.f32.mrb[19].mxu1  ;;  %v5655_v23 = vld [vmem:[%s7545_s0 + $0x120] ss:$16 sps:$4 sm:$0xff]   ;;  %v5686_v60 = vld [vmem:[%s7545_s0 + $0x284] ss:$16 sps:$4 sm:$0xff]  }
 0x119   :  { %v647_v31 = vpack.c.bf16 %v451_v30, %v448_v26  ;;  %v663_v8 = vpack.c.bf16 %v579_v4, %v576_v61  ;;  %v5688_v61 = vld [vmem:[%s7545_s0 + $0x280] ss:$16 sps:$4 sm:$0xff]   ;;  %v5689_v0 = vld [vmem:[%s7545_s0 + $0x2a4] ss:$16 sps:$4 sm:$0xff]  }
 0x11a   :  { %v5692_v4 = vld [vmem:[%s7545_s0 + $0x2c4] ss:$16 sps:$4 sm:$0xff]  }
 0x11b   :  { %1527 = vmatpush1.bf16.msra.mxu1 %v647_v31  ;;  %v5658_v31 = vld [vmem:[%s7545_s0 + $0x140] ss:$16 sps:$4 sm:$0xff]  }
 0x11c   :  { %1528 = vmatprep.subr.bf16.mxu1 %v6026_v34 }
 0x11d   :  { %v4983_v32 = vpop.f32.mrb[20].mxu0  ;;  %v5015_v55 = vpop.f32.mrb[20].mxu1 }
 0x11e   :  { %v464_v33 = vpop.f32.mrb[21].mxu0  ;;  %v592_v57 = vpop.f32.mrb[21].mxu1 }
 0x11f   :  { %v4984_v35 = vpop.f32.mrb[22].mxu0  ;;  %1529 = vmatpush1.bf16.msra.mxu1 %v648_v29  ;;  %v5016_v59 = vpop.f32.mrb[22].mxu1 }
 0x120   :  { %v650_v36 = vpack.c.bf16 %v4984_v35, %v4983_v32  ;;  %v467_v37 = vpop.f32.mrb[23].mxu0  ;;  %1530 = vmatprep.subr.bf16.mxu1 %v6026_v34  ;;  %v595_v63 = vpop.f32.mrb[23].mxu1  ;;  %v5659_v32 = vld [vmem:[%s7545_s0 + $0x164] ss:$16 sps:$4 sm:$0xff]  }
 0x121   :  { %v649_v38 = vpack.c.bf16 %v467_v37, %v464_v33  ;;  %v5661_v33 = vld [vmem:[%s7545_s0 + $0x160] ss:$16 sps:$4 sm:$0xff]   ;;  %v5662_v35 = vld [vmem:[%s7545_s0 + $0x184] ss:$16 sps:$4 sm:$0xff]  }
 0x122   :  { %v5665_v37 = vld [vmem:[%s7545_s0 + $0x1a4] ss:$16 sps:$4 sm:$0xff]  }
 0x123   :  { %1531 = vmatpush1.bf16.msra.mxu1 %v649_v38  ;;  %v5667_v38 = vld [vmem:[%s7545_s0 + $0x1a0] ss:$16 sps:$4 sm:$0xff]  }
 0x124   :  { %1532 = vmatprep.subr.bf16.mxu1 %v6026_v34 }
 0x125   :  { %v4987_v39 = vpop.f32.mrb[24].mxu0  ;;  %v5019_v16 = vpop.f32.mrb[24].mxu1 }
 0x126   :  { %v480_v40 = vpop.f32.mrb[25].mxu0  ;;  %v608_v18 = vpop.f32.mrb[25].mxu1 }
 0x127   :  { %v4988_v41 = vpop.f32.mrb[26].mxu0  ;;  %1533 = vmatpush1.bf16.msra.mxu1 %v650_v36  ;;  %v5020_v19 = vpop.f32.mrb[26].mxu1  ;;  %v5664_v36 = vld [vmem:[%s7545_s0 + $0x180] ss:$16 sps:$4 sm:$0xff]  }
 0x128   :  { %v652_v42 = vpack.c.bf16 %v4988_v41, %v4987_v39  ;;  %v483_v44 = vpop.f32.mrb[27].mxu0  ;;  %1534 = vmatprep.subr.bf16.mxu1 %v6026_v34  ;;  %v668_v20 = vpack.c.bf16 %v5020_v19, %v5019_v16  ;;  %v611_v21 = vpop.f32.mrb[27].mxu1  ;;  %v5668_v39 = vld [vmem:[%s7545_s0 + $0x1c4] ss:$16 sps:$4 sm:$0xff]   ;;  %v5730_v16 = vld [vmem:[%s7545_s0 + $0x48] ss:$16 sps:$4 sm:$0xff]  }
 0x129   :  { %v651_v46 = vpack.c.bf16 %v483_v44, %v480_v40  ;;  %v667_v22 = vpack.c.bf16 %v611_v21, %v608_v18  ;;  %v5670_v40 = vld [vmem:[%s7545_s0 + $0x1c0] ss:$16 sps:$4 sm:$0xff]   ;;  %v5671_v41 = vld [vmem:[%s7545_s0 + $0x1e4] ss:$16 sps:$4 sm:$0xff]   ;;  %v5733_v18 = vld [vmem:[%s7545_s0 + $0x68] ss:$16 sps:$4 sm:$0xff]  }
 0x12a   :  { %v5674_v44 = vld [vmem:[%s7545_s0 + $0x204] ss:$16 sps:$4 sm:$0xff]   ;;  %v5734_v19 = vld [vmem:[%s7545_s0 + $0x8c] ss:$16 sps:$4 sm:$0xff]  }
 0x12b   :  { %1535 = vmatpush1.bf16.msra.mxu1 %v651_v46  ;;  %v5676_v46 = vld [vmem:[%s7545_s0 + $0x200] ss:$16 sps:$4 sm:$0xff]   ;;  %v5737_v21 = vld [vmem:[%s7545_s0 + $0xac] ss:$16 sps:$4 sm:$0xff]  }
 0x12c   :  { %1536 = vmatprep.subr.bf16.mxu1 %v6026_v34 }
 0x12d   :  { %v4991_v48 = vpop.f32.mrb[28].mxu0 }
 0x12e   :  { %v496_v49 = vpop.f32.mrb[29].mxu0 }
 0x12f   :  { %v4992_v52 = vpop.f32.mrb[30].mxu0  ;;  %1537 = vmatpush1.bf16.msra.mxu1 %v652_v42  ;;  %v5673_v42 = vld [vmem:[%s7545_s0 + $0x1e0] ss:$16 sps:$4 sm:$0xff]  }
 0x130   :  { %v654_v54 = vpack.c.bf16 %v4992_v52, %v4991_v48  ;;  %v499_v56 = vpop.f32.mrb[31].mxu0  ;;  %1538 = vmatprep.subr.bf16.mxu1 %v6026_v34  ;;  %v5677_v48 = vld [vmem:[%s7545_s0 + $0x224] ss:$16 sps:$4 sm:$0xff]  }
 0x131   :  { %v653_v58 = vpack.c.bf16 %v499_v56, %v496_v49  ;;  %v5679_v49 = vld [vmem:[%s7545_s0 + $0x220] ss:$16 sps:$4 sm:$0xff]   ;;  %v5680_v52 = vld [vmem:[%s7545_s0 + $0x244] ss:$16 sps:$4 sm:$0xff]  }
 0x132   :  { %v5683_v56 = vld [vmem:[%s7545_s0 + $0x264] ss:$16 sps:$4 sm:$0xff]  }
 0x133   :  { %1539 = vmatpush1.bf16.msra.mxu1 %v653_v58  ;;  %v5685_v58 = vld [vmem:[%s7545_s0 + $0x260] ss:$16 sps:$4 sm:$0xff]  }
 0x134   :  { %1540 = vmatprep.subr.bf16.mxu1 %v6026_v34 }
 0x137   :  { %1541 = vmatpush1.bf16.msra.mxu1 %v654_v54  ;;  %v5682_v54 = vld [vmem:[%s7545_s0 + $0x240] ss:$16 sps:$4 sm:$0xff]  }
 0x138   :  { %1799 = vmatprep.subr.bf16.mxu1 %v6026_v34 }
 0x13a   :  { %1543 = vmatmul.mubr.bf16.vlgmr.msra.gmra.mrb[32].mxu1 %v5626_v6  ;;  %v5694_v6 = vld [vmem:[%s7545_s0 + $0x2c0] ss:$16 sps:$4 sm:$0xff]  }
 0x13b   :  { %1800 = vmatpush1.bf16.msra.mxu1 %v655_v53  ;;  %1550 = vmatprep.mubr.bf16.mxu1 %v5629_v9  ;;  %v5641_v53 = vld [vmem:[%s7545_s0 + $0xa4] ss:$16 sps:$4 sm:$0xff]   ;;  %v5697_v9 = vld [vmem:[%s7545_s0 + $0x2e0] ss:$16 sps:$4 sm:$0xff]  }
 0x13c   :  { %1801 = vmatprep.subr.bf16.mxu1 %v6026_v34 }
 0x13f   :  { %1802 = vmatpush1.bf16.msra.mxu1 %v656_v50  ;;  %v5638_v50 = vld [vmem:[%s7545_s0 + $0x84] ss:$16 sps:$4 sm:$0xff]  }
 0x140   :  { %1803 = vmatprep.subr.bf16.mxu1 %v6026_v34 }
 0x142   :  { %1551 = vmatmul.mubr.bf16.gmra.mrb[36].mxu1 %v5631_v12  ;;  %v5698_v12 = vld [vmem:[%s7545_s0 + $0x304] ss:$16 sps:$4 sm:$0xff]  }
 0x143   :  { %1558 = vmatprep.mubr.bf16.mxu1 %v5632_v14  ;;  %1804 = vmatpush1.bf16.msra.mxu1 %v657_v1  ;;  %v665_v1 = vpack.c.bf16 %v595_v63, %v592_v57  ;;  %v5700_v14 = vld [vmem:[%s7545_s0 + $0x300] ss:$16 sps:$4 sm:$0xff]   ;;  %v5716_v63 = vld [vmem:[%s7545_s0 + $0x3c4] ss:$16 sps:$4 sm:$0xff]  }
 0x144   :  { %1805 = vmatprep.subr.bf16.mxu1 %v6026_v34  ;;  %v5712_v57 = vld [vmem:[%s7545_s0 + $0x380] ss:$16 sps:$4 sm:$0xff]  }
 0x147   :  { %1806 = vmatpush1.bf16.msra.mxu1 %v658_v62  ;;  %v666_v62 = vpack.c.bf16 %v5016_v59, %v5015_v55  ;;  %v5710_v55 = vld [vmem:[%s7545_s0 + $0x384] ss:$16 sps:$4 sm:$0xff]  }
 0x148   :  { %1807 = vmatprep.subr.bf16.mxu1 %v6026_v34  ;;  %v5713_v59 = vld [vmem:[%s7545_s0 + $0x3a4] ss:$16 sps:$4 sm:$0xff]  }
 0x14a   :  { %1559 = vmatmul.mubr.bf16.gmra.mrb[40].mxu1 %v5634_v45  ;;  %v5701_v45 = vld [vmem:[%s7545_s0 + $0x324] ss:$16 sps:$4 sm:$0xff]  }
 0x14b   :  { %1566 = vmatprep.mubr.bf16.mxu1 %v5635_v43  ;;  %1808 = vmatpush1.bf16.msra.mxu1 %v659_v13  ;;  %v5650_v13 = vld [vmem:[%s7545_s0 + $0x104] ss:$16 sps:$4 sm:$0xff]   ;;  %v5703_v43 = vld [vmem:[%s7545_s0 + $0x320] ss:$16 sps:$4 sm:$0xff]  }
 0x14c   :  { %1809 = vmatprep.subr.bf16.mxu1 %v6026_v34 }
 0x14f   :  { %1810 = vmatpush1.bf16.msra.mxu1 %v660_v10  ;;  %v5647_v10 = vld [vmem:[%s7545_s0 + $0xe4] ss:$16 sps:$4 sm:$0xff]  }
 0x150   :  { %1811 = vmatprep.subr.bf16.mxu1 %v6026_v34 }
 0x152   :  { %1567 = vmatmul.mubr.bf16.gmra.mrb[44].mxu1 %v5637_v47  ;;  %v5704_v47 = vld [vmem:[%s7545_s0 + $0x344] ss:$16 sps:$4 sm:$0xff]  }
 0x153   :  { %1574 = vmatprep.mubr.bf16.mxu1 %v5638_v50  ;;  %1812 = vmatpush1.bf16.msra.mxu1 %v661_v27  ;;  %v5706_v50 = vld [vmem:[%s7545_s0 + $0x340] ss:$16 sps:$4 sm:$0xff]  }
 0x154   :  { %1813 = vmatprep.subr.bf16.mxu1 %v6026_v34 }
 0x157   :  { %1814 = vmatpush1.bf16.msra.mxu1 %v662_v24  ;;  %v5023_v24 = vpop.f32.mrb[28].mxu1 }
 0x158   :  { %1815 = vmatprep.subr.bf16.mxu1 %v6026_v34  ;;  %v624_v26 = vpop.f32.mrb[29].mxu1 }
 0x159   :  { %v5024_v27 = vpop.f32.mrb[30].mxu1 }
 0x15a   :  { %1575 = vmatmul.mubr.bf16.gmra.mrb[48].mxu1 %v5640_v51  ;;  %v670_v28 = vpack.c.bf16 %v5024_v27, %v5023_v24  ;;  %v627_v29 = vpop.f32.mrb[31].mxu1  ;;  %v5707_v51 = vld [vmem:[%s7545_s0 + $0x364] ss:$16 sps:$4 sm:$0xff]   ;;  %v5742_v24 = vld [vmem:[%s7545_s0 + $0xc8] ss:$16 sps:$4 sm:$0xff]  }
 0x15b   :  { %1582 = vmatprep.mubr.bf16.mxu1 %v5641_v53  ;;  %1816 = vmatpush1.bf16.msra.mxu1 %v663_v8  ;;  %v669_v30 = vpack.c.bf16 %v627_v29, %v624_v26  ;;  %v5695_v8 = vld [vmem:[%s7545_s0 + $0x2e4] ss:$16 sps:$4 sm:$0xff]   ;;  %v5709_v53 = vld [vmem:[%s7545_s0 + $0x360] ss:$16 sps:$4 sm:$0xff]   ;;  %v5745_v26 = vld [vmem:[%s7545_s0 + $0xe8] ss:$16 sps:$4 sm:$0xff]  }
 0x15c   :  { %1817 = vmatprep.subr.bf16.mxu1 %v6026_v34  ;;  %v5746_v27 = vld [vmem:[%s7545_s0 + $0x10c] ss:$16 sps:$4 sm:$0xff]  }
 0x15d   :  { %v5749_v29 = vld [vmem:[%s7545_s0 + $0x12c] ss:$16 sps:$4 sm:$0xff]  }
 0x15f   :  { %1818 = vmatpush1.bf16.msra.mxu1 %v664_v2  ;;  %v5691_v2 = vld [vmem:[%s7545_s0 + $0x2a0] ss:$16 sps:$4 sm:$0xff]  }
 0x160   :  { %1819 = vmatprep.subr.bf16.mxu1 %v6026_v34 }
 0x162   :  { %1583 = vmatmul.mubr.bf16.gmra.mrb[52].mxu1 %v5643_v3  ;;  %v5719_v3 = vld [vmem:[%s7545_s0 + $0x3e4] ss:$16 sps:$4 sm:$0xff]  }
 0x163   :  { %1590 = vmatprep.mubr.bf16.mxu1 %v5644_v5  ;;  %1820 = vmatpush1.bf16.msra.mxu1 %v665_v1  ;;  %v5718_v1 = vld [vmem:[%s7545_s0 + $0x3c0] ss:$16 sps:$4 sm:$0xff]  }
 0x164   :  { %1821 = vmatprep.subr.bf16.mxu1 %v6026_v34  ;;  %v5721_v5 = vld [vmem:[%s7545_s0 + $0x3e0] ss:$16 sps:$4 sm:$0xff]  }
 0x167   :  { %1822 = vmatpush1.bf16.msra.mxu1 %v666_v62  ;;  %v5715_v62 = vld [vmem:[%s7545_s0 + $0x3a0] ss:$16 sps:$4 sm:$0xff]  }
 0x168   :  { %1823 = vmatprep.subr.bf16.mxu1 %v6026_v34 }
 0x16a   :  { %1591 = vmatmul.mubr.bf16.gmra.mrb[56].mxu1 %v5646_v7  ;;  %v5724_v7 = vld [vmem:[%s7545_s0 + $0xc] ss:$16 sps:$4 sm:$0xff]  }
 0x16b   :  { %1598 = vmatprep.mubr.bf16.mxu1 %v5647_v10  ;;  %1824 = vmatpush1.bf16.msra.mxu1 %v667_v22  ;;  %v5722_v10 = vld [vmem:[%s7545_s0 + $0x8] ss:$16 sps:$4 sm:$0xff]  }
 0x16c   :  { %1825 = vmatprep.subr.bf16.mxu1 %v6026_v34  ;;  %v5739_v22 = vld [vmem:[%s7545_s0 + $0xa8] ss:$16 sps:$4 sm:$0xff]  }
 0x16f   :  { %1826 = vmatpush1.bf16.msra.mxu1 %v668_v20  ;;  %v5736_v20 = vld [vmem:[%s7545_s0 + $0x88] ss:$16 sps:$4 sm:$0xff]  }
 0x170   :  { %1827 = vmatprep.subr.bf16.mxu1 %v6026_v34 }
 0x172   :  { %1599 = vmatmul.mubr.bf16.gmra.mrb[60].mxu1 %v5649_v11  ;;  %v5725_v11 = vld [vmem:[%s7545_s0 + $0x2c] ss:$16 sps:$4 sm:$0xff]  }
 0x173   :  { %1606 = vmatprep.mubr.bf16.mxu1 %v5650_v13  ;;  %1828 = vmatpush1.bf16.msra.mxu1 %v669_v30  ;;  %v5727_v13 = vld [vmem:[%s7545_s0 + $0x28] ss:$16 sps:$4 sm:$0xff]   ;;  %v5797_v30 = vld [vmem:[%s7546_s4] sm:$0xff]  }
 0x174   :  { %1829 = vmatprep.subr.bf16.mxu1 %v6026_v34  ;;  %5025 = vmatprep.subr.bf16.mxu0 %v5797_v30 }
 0x175   :  { %5026 = vmatpush3.bf16.msra.mxu0 %v5797_v30 }
 0x177   :  { %1830 = vmatpush1.bf16.msra.mxu1 %v670_v28  ;;  %v5748_v28 = vld [vmem:[%s7545_s0 + $0x108] ss:$16 sps:$4 sm:$0xff]  }
 0x17a   :  { %1607 = vmatmul.mubr.bf16.gmra.mrb[64].mxu1 %v5652_v15  ;;  %v5728_v15 = vld [vmem:[%s7545_s0 + $0x4c] ss:$16 sps:$4 sm:$0xff]  }
 0x17b   :  { %1614 = vmatprep.mubr.bf16.mxu1 %v5653_v17  ;;  %v5731_v17 = vld [vmem:[%s7545_s0 + $0x6c] ss:$16 sps:$4 sm:$0xff]  }
 0x182   :  { %1615 = vmatmul.mubr.bf16.gmra.mrb[68].mxu1 %v5655_v23  ;;  %v5740_v23 = vld [vmem:[%s7545_s0 + $0xcc] ss:$16 sps:$4 sm:$0xff]  }
 0x183   :  { %1622 = vmatprep.mubr.bf16.mxu1 %v5656_v25  ;;  %v5743_v25 = vld [vmem:[%s7545_s0 + $0xec] ss:$16 sps:$4 sm:$0xff]  }
 0x18a   :  { %1623 = vmatmul.mubr.bf16.gmra.mrb[72].mxu1 %v5658_v31  ;;  %v5751_v31 = vld [vmem:[%s7545_s0 + $0x128] ss:$16 sps:$4 sm:$0xff]  }
 0x18b   :  { %1630 = vmatprep.mubr.bf16.mxu1 %v5659_v32  ;;  %v5752_v32 = vld [vmem:[%s7545_s0 + $0x14c] ss:$16 sps:$4 sm:$0xff]  }
 0x192   :  { %1631 = vmatmul.mubr.bf16.gmra.mrb[76].mxu1 %v5661_v33  ;;  %v5801_v33 = vld [vmem:[%s7546_s4 + $0x8] sm:$0xff]  }
 0x193   :  { %1638 = vmatprep.mubr.bf16.mxu1 %v5662_v35  ;;  %5027 = vmatprep.subr.bf16.mxu0 %v5801_v33  ;;  %v5802_v35 = vld [vmem:[%s7546_s4 + $0x10] sm:$0xff]  }
 0x194   :  { %5028 = vmatpush3.bf16.msra.mxu0 %v5801_v33 }
 0x195   :  { %5029 = vmatprep.subr.bf16.mxu0 %v5802_v35 }
 0x198   :  { %5030 = vmatpush3.bf16.msra.mxu0 %v5802_v35 }
 0x19a   :  { %1639 = vmatmul.mubr.bf16.gmra.mrb[80].mxu1 %v5664_v36  ;;  %v5754_v36 = vld [vmem:[%s7545_s0 + $0x148] ss:$16 sps:$4 sm:$0xff]  }
 0x19b   :  { %1646 = vmatprep.mubr.bf16.mxu1 %v5665_v37  ;;  %v5755_v37 = vld [vmem:[%s7545_s0 + $0x16c] ss:$16 sps:$4 sm:$0xff]  }
 0x1a2   :  { %1647 = vmatmul.mubr.bf16.gmra.mrb[84].mxu1 %v5667_v38  ;;  %v5806_v38 = vld [vmem:[%s7546_s4 + $0x18] sm:$0xff]  }
 0x1a3   :  { %1654 = vmatprep.mubr.bf16.mxu1 %v5668_v39  ;;  %5031 = vmatprep.subr.bf16.mxu0 %v5806_v38  ;;  %v5807_v39 = vld [vmem:[%s7546_s4 + $0x20] sm:$0xff]  }
 0x1a4   :  { %5032 = vmatpush3.bf16.msra.mxu0 %v5806_v38  ;;  %v5819_v38 = vld [vmem:[%s7545_s0 + $0x3a8] ss:$16 sps:$4 sm:$0xff]  }
 0x1a5   :  { %5033 = vmatprep.subr.bf16.mxu0 %v5807_v39 }
 0x1a8   :  { %5034 = vmatpush3.bf16.msra.mxu0 %v5807_v39 }
 0x1aa   :  { %1655 = vmatmul.mubr.bf16.gmra.mrb[88].mxu1 %v5670_v40  ;;  %v5757_v40 = vld [vmem:[%s7545_s0 + $0x168] ss:$16 sps:$4 sm:$0xff]  }
 0x1ab   :  { %1662 = vmatprep.mubr.bf16.mxu1 %v5671_v41  ;;  %v5758_v41 = vld [vmem:[%s7545_s0 + $0x18c] ss:$16 sps:$4 sm:$0xff]  }
 0x1b2   :  { %1663 = vmatmul.mubr.bf16.gmra.mrb[92].mxu1 %v5673_v42  ;;  %v5811_v42 = vld [vmem:[%s7546_s4 + $0x28] sm:$0xff]  }
 0x1b3   :  { %1670 = vmatprep.mubr.bf16.mxu1 %v5674_v44  ;;  %5035 = vmatprep.subr.bf16.mxu0 %v5811_v42  ;;  %v5812_v44 = vld [vmem:[%s7546_s4 + $0x30] sm:$0xff]  }
 0x1b4   :  { %5036 = vmatpush3.bf16.msra.mxu0 %v5811_v42 }
 0x1b5   :  { %5037 = vmatprep.subr.bf16.mxu0 %v5812_v44 }
 0x1b8   :  { %5038 = vmatpush3.bf16.msra.mxu0 %v5812_v44 }
 0x1ba   :  { %1671 = vmatmul.mubr.bf16.gmra.mrb[96].mxu1 %v5676_v46  ;;  %v5760_v46 = vld [vmem:[%s7545_s0 + $0x188] ss:$16 sps:$4 sm:$0xff]  }
 0x1bb   :  { %1678 = vmatprep.mubr.bf16.mxu1 %v5677_v48  ;;  %v5761_v48 = vld [vmem:[%s7545_s0 + $0x1ac] ss:$16 sps:$4 sm:$0xff]  }
 0x1c2   :  { %1679 = vmatmul.mubr.bf16.gmra.mrb[100].mxu1 %v5679_v49  ;;  %v5816_v49 = vld [vmem:[%s7546_s4 + $0x38] sm:$0xff]  }
 0x1c3   :  { %1686 = vmatprep.mubr.bf16.mxu1 %v5680_v52  ;;  %5039 = vmatprep.subr.bf16.mxu0 %v5816_v49  ;;  %v5763_v52 = vld [vmem:[%s7545_s0 + $0x1a8] ss:$16 sps:$4 sm:$0xff]  }
 0x1c4   :  { %5040 = vmatpush3.bf16.msra.mxu0 %v5816_v49 }
 0x1c5   :  { %3408 = vmatprep.subr.bf16.mxu0 %v6026_v34 }
 0x1ca   :  { %1687 = vmatmul.mubr.bf16.gmra.mrb[104].mxu1 %v5682_v54  ;;  %v5764_v54 = vld [vmem:[%s7545_s0 + $0x1cc] ss:$16 sps:$4 sm:$0xff]  }
 0x1cb   :  { %1694 = vmatprep.mubr.bf16.mxu1 %v5683_v56  ;;  %v5766_v56 = vld [vmem:[%s7545_s0 + $0x1c8] ss:$16 sps:$4 sm:$0xff]  }
 0x1d2   :  { %1695 = vmatmul.mubr.bf16.gmra.mrb[108].mxu1 %v5685_v58  ;;  %v5767_v58 = vld [vmem:[%s7545_s0 + $0x1ec] ss:$16 sps:$4 sm:$0xff]  }
 0x1d3   :  { %1702 = vmatprep.mubr.bf16.mxu1 %v5686_v60  ;;  %v5769_v60 = vld [vmem:[%s7545_s0 + $0x1e8] ss:$16 sps:$4 sm:$0xff]  }
 0x1da   :  { %1703 = vmatmul.mubr.bf16.gmra.mrb[112].mxu1 %v5688_v61  ;;  %v5770_v61 = vld [vmem:[%s7545_s0 + $0x20c] ss:$16 sps:$4 sm:$0xff]  }
 0x1db   :  { %1710 = vmatprep.mubr.bf16.mxu1 %v5689_v0  ;;  %v5772_v0 = vld [vmem:[%s7545_s0 + $0x208] ss:$16 sps:$4 sm:$0xff]  }
 0x1e2   :  { %1711 = vmatmul.mubr.bf16.gmra.mrb[116].mxu1 %v5691_v2  ;;  %v5773_v2 = vld [vmem:[%s7545_s0 + $0x22c] ss:$16 sps:$4 sm:$0xff]  }
 0x1e3   :  { %1718 = vmatprep.mubr.bf16.mxu1 %v5692_v4  ;;  %v5775_v4 = vld [vmem:[%s7545_s0 + $0x228] ss:$16 sps:$4 sm:$0xff]  }
 0x1ea   :  { %1719 = vmatmul.mubr.bf16.gmra.mrb[120].mxu1 %v5694_v6  ;;  %v5776_v6 = vld [vmem:[%s7545_s0 + $0x24c] ss:$16 sps:$4 sm:$0xff]  }
 0x1eb   :  { %1726 = vmatprep.mubr.bf16.mxu1 %v5695_v8  ;;  %v5778_v8 = vld [vmem:[%s7545_s0 + $0x248] ss:$16 sps:$4 sm:$0xff]  }
 0x1f2   :  { %1727 = vmatmul.mubr.bf16.gmra.mrb[124].mxu1 %v5697_v9  ;;  %v5779_v9 = vld [vmem:[%s7545_s0 + $0x26c] ss:$16 sps:$4 sm:$0xff]  }
 0x1f3   :  { %1734 = vmatprep.mubr.bf16.mxu1 %v5698_v12  ;;  %v5781_v12 = vld [vmem:[%s7545_s0 + $0x268] ss:$16 sps:$4 sm:$0xff]  }
 0x1fa   :  { %1735 = vmatmul.mubr.bf16.gmra.mrb[128].mxu1 %v5700_v14  ;;  %v5782_v14 = vld [vmem:[%s7545_s0 + $0x28c] ss:$16 sps:$4 sm:$0xff]  }
 0x1fb   :  { %1742 = vmatprep.mubr.bf16.mxu1 %v5701_v45  ;;  %v5784_v45 = vld [vmem:[%s7545_s0 + $0x288] ss:$16 sps:$4 sm:$0xff]  }
 0x202   :  { %1743 = vmatmul.mubr.bf16.gmra.mrb[132].mxu1 %v5703_v43  ;;  %v5785_v43 = vld [vmem:[%s7545_s0 + $0x2ac] ss:$16 sps:$4 sm:$0xff]  }
 0x203   :  { %1750 = vmatprep.mubr.bf16.mxu1 %v5704_v47  ;;  %v5787_v47 = vld [vmem:[%s7545_s0 + $0x2a8] ss:$16 sps:$4 sm:$0xff]  }
 0x20a   :  { %1751 = vmatmul.mubr.bf16.gmra.mrb[136].mxu1 %v5706_v50  ;;  %v5788_v50 = vld [vmem:[%s7545_s0 + $0x2cc] ss:$16 sps:$4 sm:$0xff]  }
 0x20b   :  { %1758 = vmatprep.mubr.bf16.mxu1 %v5707_v51  ;;  %v5790_v51 = vld [vmem:[%s7545_s0 + $0x2c8] ss:$16 sps:$4 sm:$0xff]  }
 0x212   :  { %1759 = vmatmul.mubr.bf16.gmra.mrb[140].mxu1 %v5709_v53  ;;  %v5791_v53 = vld [vmem:[%s7545_s0 + $0x2ec] ss:$16 sps:$4 sm:$0xff]  }
 0x213   :  { %1766 = vmatprep.mubr.bf16.mxu1 %v5710_v55  ;;  %v5793_v55 = vld [vmem:[%s7545_s0 + $0x2e8] ss:$16 sps:$4 sm:$0xff]  }
 0x21a   :  { %1767 = vmatmul.mubr.bf16.gmra.mrb[144].mxu1 %v5712_v57  ;;  %v5794_v57 = vld [vmem:[%s7545_s0 + $0x30c] ss:$16 sps:$4 sm:$0xff]  }
 0x21b   :  { %1774 = vmatprep.mubr.bf16.mxu1 %v5713_v59  ;;  %v5796_v59 = vld [vmem:[%s7545_s0 + $0x308] ss:$16 sps:$4 sm:$0xff]  }
 0x222   :  { %1775 = vmatmul.mubr.bf16.gmra.mrb[148].mxu1 %v5715_v62  ;;  %v5798_v62 = vld [vmem:[%s7545_s0 + $0x32c] ss:$16 sps:$4 sm:$0xff]  }
 0x223   :  { %1782 = vmatprep.mubr.bf16.mxu1 %v5716_v63  ;;  %v5800_v63 = vld [vmem:[%s7545_s0 + $0x328] ss:$16 sps:$4 sm:$0xff]  }
 0x22a   :  { %1783 = vmatmul.mubr.bf16.gmra.mrb[152].mxu1 %v5718_v1  ;;  %v5803_v1 = vld [vmem:[%s7545_s0 + $0x34c] ss:$16 sps:$4 sm:$0xff]  }
 0x22b   :  { %1790 = vmatprep.mubr.bf16.mxu1 %v5719_v3  ;;  %v5805_v3 = vld [vmem:[%s7545_s0 + $0x348] ss:$16 sps:$4 sm:$0xff]  }
 0x232   :  { %1791 = vmatmul.mubr.bf16.gmra.mrb[156].mxu1 %v5721_v5  ;;  %v5808_v5 = vld [vmem:[%s7545_s0 + $0x36c] ss:$16 sps:$4 sm:$0xff]  }
 0x233   :  { %1831 = vmatprep.mubr.bf16.mxu1 %v5724_v7  ;;  %v6681_v7 = vld [vmem:[%s7547_s3] ss:$0 sm:$0xff] }
 0x23a   :  { %1832 = vmatmul.mubr.bf16.vlgmr.msra.gmra.mrb[32].mxu1 %v5722_v10 }
 0x23b   :  { %1839 = vmatprep.mubr.bf16.mxu1 %v5725_v11 }
 0x242   :  { %1840 = vmatmul.mubr.bf16.gmra.mrb[36].mxu1 %v5727_v13 }
 0x243   :  { %1847 = vmatprep.mubr.bf16.mxu1 %v5728_v15  ;;  %v5810_v15 = vld [vmem:[%s7545_s0 + $0x368] ss:$16 sps:$4 sm:$0xff]  }
 0x24a   :  { %1848 = vmatmul.mubr.bf16.gmra.mrb[40].mxu1 %v5730_v16 }
 0x24b   :  { %1855 = vmatprep.mubr.bf16.mxu1 %v5731_v17  ;;  %v5813_v17 = vld [vmem:[%s7545_s0 + $0x38c] ss:$16 sps:$4 sm:$0xff]  }
 0x252   :  { %1856 = vmatmul.mubr.bf16.gmra.mrb[44].mxu1 %v5733_v18 }
 0x253   :  { %1863 = vmatprep.mubr.bf16.mxu1 %v5734_v19 }
 0x25a   :  { %1864 = vmatmul.mubr.bf16.gmra.mrb[48].mxu1 %v5736_v20 }
 0x25b   :  { %1871 = vmatprep.mubr.bf16.mxu1 %v5737_v21 }
 0x262   :  { %1872 = vmatmul.mubr.bf16.gmra.mrb[52].mxu1 %v5739_v22 }
 0x263   :  { %1879 = vmatprep.mubr.bf16.mxu1 %v5740_v23 }
 0x26a   :  { %1880 = vmatmul.mubr.bf16.gmra.mrb[56].mxu1 %v5742_v24 }
 0x26b   :  { %1887 = vmatprep.mubr.bf16.mxu1 %v5743_v25 }
 0x272   :  { %1888 = vmatmul.mubr.bf16.gmra.mrb[60].mxu1 %v5745_v26  ;;  %v5815_v26 = vld [vmem:[%s7545_s0 + $0x388] ss:$16 sps:$4 sm:$0xff]  }
 0x273   :  { %1895 = vmatprep.mubr.bf16.mxu1 %v5746_v27 }
 0x27a   :  { %1896 = vmatmul.mubr.bf16.gmra.mrb[64].mxu1 %v5748_v28  ;;  %v5817_v28 = vld [vmem:[%s7545_s0 + $0x3ac] ss:$16 sps:$4 sm:$0xff]  }
 0x27b   :  { %1903 = vmatprep.mubr.bf16.mxu1 %v5749_v29 }
 0x282   :  { %1904 = vmatmul.mubr.bf16.gmra.mrb[68].mxu1 %v5751_v31 }
 0x283   :  { %1911 = vmatprep.mubr.bf16.mxu1 %v5752_v32 }
 0x28a   :  { %1912 = vmatmul.mubr.bf16.gmra.mrb[72].mxu1 %v5754_v36 }
 0x28b   :  { %1919 = vmatprep.mubr.bf16.mxu1 %v5755_v37 }
 0x292   :  { %1920 = vmatmul.mubr.bf16.gmra.mrb[76].mxu1 %v5757_v40  ;;  %v5820_v40 = vld [vmem:[%s7545_s0 + $0x3cc] ss:$16 sps:$4 sm:$0xff]  }
 0x293   :  { %1927 = vmatprep.mubr.bf16.mxu1 %v5758_v41 }
 0x29a   :  { %1928 = vmatmul.mubr.bf16.gmra.mrb[80].mxu1 %v5760_v46 }
 0x29b   :  { %1935 = vmatprep.mubr.bf16.mxu1 %v5761_v48 }
 0x2a2   :  { %1936 = vmatmul.mubr.bf16.gmra.mrb[84].mxu1 %v5763_v52 }
 0x2a3   :  { %1943 = vmatprep.mubr.bf16.mxu1 %v5764_v54 }
 0x2aa   :  { %1944 = vmatmul.mubr.bf16.gmra.mrb[88].mxu1 %v5766_v56  ;;  %v5822_v56 = vld [vmem:[%s7545_s0 + $0x3c8] ss:$16 sps:$4 sm:$0xff]  }
 0x2ab   :  { %1951 = vmatprep.mubr.bf16.mxu1 %v5767_v58 }
 0x2b2   :  { %1952 = vmatmul.mubr.bf16.gmra.mrb[92].mxu1 %v5769_v60  ;;  %v5823_v60 = vld [vmem:[%s7545_s0 + $0x3ec] ss:$16 sps:$4 sm:$0xff]  }
 0x2b3   :  { %1959 = vmatprep.mubr.bf16.mxu1 %v5770_v61 }
 0x2ba   :  { %1960 = vmatmul.mubr.bf16.gmra.mrb[96].mxu1 %v5772_v0 }
 0x2bb   :  { %1967 = vmatprep.mubr.bf16.mxu1 %v5773_v2 }
 0x2c2   :  { %1968 = vmatmul.mubr.bf16.gmra.mrb[100].mxu1 %v5775_v4 }
 0x2c3   :  { %1975 = vmatprep.mubr.bf16.mxu1 %v5776_v6 }
 0x2ca   :  { %1976 = vmatmul.mubr.bf16.gmra.mrb[104].mxu1 %v5778_v8 }
 0x2cb   :  { %1983 = vmatprep.mubr.bf16.mxu1 %v5779_v9 }
 0x2d2   :  { %1984 = vmatmul.mubr.bf16.gmra.mrb[108].mxu1 %v5781_v12 }
 0x2d3   :  { %1991 = vmatprep.mubr.bf16.mxu1 %v5782_v14  ;;  %v5825_v14 = vld [vmem:[%s7545_s0 + $0x3e8] ss:$16 sps:$4 sm:$0xff]  }
 0x2da   :  { %1992 = vmatmul.mubr.bf16.gmra.mrb[112].mxu1 %v5784_v45 }
 0x2db   :  { %1999 = vmatprep.mubr.bf16.mxu1 %v5785_v43 }
 0x2e2   :  { %2000 = vmatmul.mubr.bf16.gmra.mrb[116].mxu1 %v5787_v47 }
 0x2e3   :  { %2007 = vmatprep.mubr.bf16.mxu1 %v5788_v50 }
 0x2ea   :  { %2008 = vmatmul.mubr.bf16.gmra.mrb[120].mxu1 %v5790_v51 }
 0x2eb   :  { %2015 = vmatprep.mubr.bf16.mxu1 %v5791_v53 }
 0x2f2   :  { %2016 = vmatmul.mubr.bf16.gmra.mrb[124].mxu1 %v5793_v55 }
 0x2f3   :  { %2023 = vmatprep.mubr.bf16.mxu1 %v5794_v57 }
 0x2fa   :  { %2024 = vmatmul.mubr.bf16.gmra.mrb[128].mxu1 %v5796_v59 }
 0x2fb   :  { %2031 = vmatprep.mubr.bf16.mxu1 %v5798_v62 }
 0x302   :  { %2032 = vmatmul.mubr.bf16.gmra.mrb[132].mxu1 %v5800_v63 }
 0x303   :  { %2039 = vmatprep.mubr.bf16.mxu1 %v5803_v1 }
 0x30a   :  { %2040 = vmatmul.mubr.bf16.gmra.mrb[136].mxu1 %v5805_v3 }
 0x30b   :  { %2047 = vmatprep.mubr.bf16.mxu1 %v5808_v5 }
 0x30d   :  { %v1833_v10 = vpop.f32.mrb[32].mxu1 }
 0x30e   :  { %v5201_v11 = vadd.f32 %v6681_v7, %v1833_v10  ;;  %v1835_v13 = vpop.f32.mrb[33].mxu1 }
 0x30f   :  { %v1836_v16 = vpop.f32.mrb[34].mxu1 }
 0x310   :  { %v5202_v18 = vadd.f32 %v6681_v7, %v1836_v16  ;;  %v1838_v19 = vpop.f32.mrb[35].mxu1  ;;  %v2088_v20 = vmax.f32 %v5201_v11, 0.0 }
 0x312   :  { %v2089_v21 = vmax.f32 %v5202_v18, 0.0  ;;  %2048 = vmatmul.mubr.bf16.gmra.mrb[140].mxu1 %v5810_v15 }
 0x313   :  { %2055 = vmatprep.mubr.bf16.mxu1 %v5813_v17 }
 0x314   :  { %v2152_v22 = vpack.c.bf16 %v2089_v21, %v2088_v20 }
 0x315   :  { %v1841_v23 = vpop.f32.mrb[36].mxu1 }
 0x316   :  { %v5203_v24 = vadd.f32 %v6681_v7, %v1841_v23  ;;  %v1843_v25 = vpop.f32.mrb[37].mxu1  ;;  %5041 = vmatprep.mubr.bf16.mxu0 %v2152_v22 }
 0x317   :  { %v1844_v27 = vpop.f32.mrb[38].mxu1 }
 0x318   :  { %v5204_v29 = vadd.f32 %v6681_v7, %v1844_v27  ;;  %v1846_v30 = vpop.f32.mrb[39].mxu1  ;;  %v2090_v31 = vmax.f32 %v5203_v24, 0.0 }
 0x31a   :  { %v2091_v32 = vmax.f32 %v5204_v29, 0.0  ;;  %2056 = vmatmul.mubr.bf16.gmra.mrb[144].mxu1 %v5815_v26 }
 0x31b   :  { %2063 = vmatprep.mubr.bf16.mxu1 %v5817_v28 }
 0x31c   :  { %v2153_v33 = vpack.c.bf16 %v2091_v32, %v2090_v31 }
 0x31d   :  { %v1849_v35 = vpop.f32.mrb[40].mxu1 }
 0x31e   :  { %v5205_v36 = vadd.f32 %v6681_v7, %v1849_v35  ;;  %v1851_v37 = vpop.f32.mrb[41].mxu1  ;;  %5042 = vmatmul.mubr.bf16.vlgmr.msra.gmra.mrb[32].mxu0 %v2153_v33 }
 0x31f   :  { %v1852_v39 = vpop.f32.mrb[42].mxu1 }
 0x320   :  { %v5206_v41 = vadd.f32 %v6681_v7, %v1852_v39  ;;  %v1854_v42 = vpop.f32.mrb[43].mxu1  ;;  %v2092_v44 = vmax.f32 %v5205_v36, 0.0 }
 0x322   :  { %v2093_v46 = vmax.f32 %v5206_v41, 0.0  ;;  %2064 = vmatmul.mubr.bf16.gmra.mrb[148].mxu1 %v5819_v38 }
 0x323   :  { %2071 = vmatprep.mubr.bf16.mxu1 %v5820_v40 }
 0x324   :  { %v2154_v48 = vpack.c.bf16 %v2093_v46, %v2092_v44 }
 0x325   :  { %v1857_v49 = vpop.f32.mrb[44].mxu1 }
 0x326   :  { %v5207_v52 = vadd.f32 %v6681_v7, %v1857_v49  ;;  %v1859_v54 = vpop.f32.mrb[45].mxu1  ;;  %5045 = vmatprep.mubr.bf16.mxu0 %v2154_v48 }
 0x327   :  { %v1860_v58 = vpop.f32.mrb[46].mxu1 }
 0x328   :  { %v5208_v61 = vadd.f32 %v6681_v7, %v1860_v58  ;;  %v1862_v0 = vpop.f32.mrb[47].mxu1  ;;  %v2094_v2 = vmax.f32 %v5207_v52, 0.0 }
 0x32a   :  { %v2095_v4 = vmax.f32 %v5208_v61, 0.0  ;;  %2072 = vmatmul.mubr.bf16.gmra.mrb[152].mxu1 %v5822_v56 }
 0x32b   :  { %2079 = vmatprep.mubr.bf16.mxu1 %v5823_v60 }
 0x32c   :  { %v2155_v6 = vpack.c.bf16 %v2095_v4, %v2094_v2 }
 0x32d   :  { %v1865_v8 = vpop.f32.mrb[48].mxu1 }
 0x32e   :  { %v5209_v9 = vadd.f32 %v6681_v7, %v1865_v8  ;;  %v1867_v12 = vpop.f32.mrb[49].mxu1  ;;  %5046 = vmatmul.mubr.bf16.gmra.mrb[36].mxu0 %v2155_v6 }
 0x32f   :  { %v1868_v45 = vpop.f32.mrb[50].mxu1 }
 0x330   :  { %v5210_v43 = vadd.f32 %v6681_v7, %v1868_v45  ;;  %v1870_v47 = vpop.f32.mrb[51].mxu1  ;;  %v2096_v50 = vmax.f32 %v5209_v9, 0.0 }
 0x332   :  { %v2097_v51 = vmax.f32 %v5210_v43, 0.0  ;;  %2080 = vmatmul.mubr.bf16.gmra.mrb[156].mxu1 %v5825_v14 }
 0x334   :  { %v2156_v53 = vpack.c.bf16 %v2097_v51, %v2096_v50 }
 0x335   :  { %v1873_v55 = vpop.f32.mrb[52].mxu1 }
 0x336   :  { %v5211_v57 = vadd.f32 %v6681_v7, %v1873_v55  ;;  %v1875_v59 = vpop.f32.mrb[53].mxu1  ;;  %5049 = vmatprep.mubr.bf16.mxu0 %v2156_v53 }
 0x337   :  { %v1876_v62 = vpop.f32.mrb[54].mxu1 }
 0x338   :  { %v5212_v63 = vadd.f32 %v6681_v7, %v1876_v62  ;;  %v1878_v1 = vpop.f32.mrb[55].mxu1  ;;  %v2098_v3 = vmax.f32 %v5211_v57, 0.0 }
 0x33a   :  { %v2099_v5 = vmax.f32 %v5212_v63, 0.0 }
 0x33c   :  { %v2157_v10 = vpack.c.bf16 %v2099_v5, %v2098_v3 }
 0x33d   :  { %v1881_v11 = vpop.f32.mrb[56].mxu1 }
 0x33e   :  { %v5213_v13 = vadd.f32 %v6681_v7, %v1881_v11  ;;  %v1883_v15 = vpop.f32.mrb[57].mxu1  ;;  %5050 = vmatmul.mubr.bf16.gmra.mrb[40].mxu0 %v2157_v10 }
 0x33f   :  { %v1884_v16 = vpop.f32.mrb[58].mxu1 }
 0x340   :  { %v5214_v17 = vadd.f32 %v6681_v7, %v1884_v16  ;;  %v1886_v18 = vpop.f32.mrb[59].mxu1  ;;  %v2100_v19 = vmax.f32 %v5213_v13, 0.0 }
 0x342   :  { %v2101_v20 = vmax.f32 %v5214_v17, 0.0 }
 0x344   :  { %v2158_v21 = vpack.c.bf16 %v2101_v20, %v2100_v19 }
 0x345   :  { %v1889_v22 = vpop.f32.mrb[60].mxu1 }
 0x346   :  { %v5215_v23 = vadd.f32 %v6681_v7, %v1889_v22  ;;  %v1891_v24 = vpop.f32.mrb[61].mxu1  ;;  %5053 = vmatprep.mubr.bf16.mxu0 %v2158_v21 }
 0x347   :  { %v1892_v25 = vpop.f32.mrb[62].mxu1 }
 0x348   :  { %v5216_v26 = vadd.f32 %v6681_v7, %v1892_v25  ;;  %v1894_v27 = vpop.f32.mrb[63].mxu1  ;;  %v2102_v28 = vmax.f32 %v5215_v23, 0.0 }
 0x34a   :  { %v2103_v29 = vmax.f32 %v5216_v26, 0.0 }
 0x34c   :  { %v2159_v30 = vpack.c.bf16 %v2103_v29, %v2102_v28 }
 0x34d   :  { %v1897_v31 = vpop.f32.mrb[64].mxu1 }
 0x34e   :  { %v5217_v32 = vadd.f32 %v6681_v7, %v1897_v31  ;;  %v1899_v33 = vpop.f32.mrb[65].mxu1  ;;  %5054 = vmatmul.mubr.bf16.gmra.mrb[44].mxu0 %v2159_v30 }
 0x34f   :  { %v1900_v35 = vpop.f32.mrb[66].mxu1 }
 0x350   :  { %v5218_v36 = vadd.f32 %v6681_v7, %v1900_v35  ;;  %v1902_v37 = vpop.f32.mrb[67].mxu1  ;;  %v2104_v38 = vmax.f32 %v5217_v32, 0.0 }
 0x352   :  { %v2105_v39 = vmax.f32 %v5218_v36, 0.0 }
 0x354   :  { %v2160_v40 = vpack.c.bf16 %v2105_v39, %v2104_v38 }
 0x355   :  { %v1905_v41 = vpop.f32.mrb[68].mxu1 }
 0x356   :  { %v5219_v42 = vadd.f32 %v6681_v7, %v1905_v41  ;;  %v1907_v44 = vpop.f32.mrb[69].mxu1  ;;  %5057 = vmatprep.mubr.bf16.mxu0 %v2160_v40 }
 0x357   :  { %v1908_v46 = vpop.f32.mrb[70].mxu1 }
 0x358   :  { %v5220_v48 = vadd.f32 %v6681_v7, %v1908_v46  ;;  %v1910_v49 = vpop.f32.mrb[71].mxu1  ;;  %v2106_v52 = vmax.f32 %v5219_v42, 0.0 }
 0x35a   :  { %v2107_v54 = vmax.f32 %v5220_v48, 0.0 }
 0x35c   :  { %v2161_v56 = vpack.c.bf16 %v2107_v54, %v2106_v52 }
 0x35d   :  { %v1913_v58 = vpop.f32.mrb[72].mxu1 }
 0x35e   :  { %v5221_v60 = vadd.f32 %v6681_v7, %v1913_v58  ;;  %v1915_v61 = vpop.f32.mrb[73].mxu1  ;;  %5058 = vmatmul.mubr.bf16.gmra.mrb[48].mxu0 %v2161_v56 }
 0x35f   :  { %v1916_v0 = vpop.f32.mrb[74].mxu1 }
 0x360   :  { %v5222_v2 = vadd.f32 %v6681_v7, %v1916_v0  ;;  %v1918_v4 = vpop.f32.mrb[75].mxu1  ;;  %v2108_v6 = vmax.f32 %v5221_v60, 0.0 }
 0x362   :  { %v2109_v8 = vmax.f32 %v5222_v2, 0.0 }
 0x364   :  { %v2162_v9 = vpack.c.bf16 %v2109_v8, %v2108_v6 }
 0x365   :  { %v1921_v12 = vpop.f32.mrb[76].mxu1 }
 0x366   :  { %v5223_v14 = vadd.f32 %v6681_v7, %v1921_v12  ;;  %v1923_v45 = vpop.f32.mrb[77].mxu1  ;;  %5061 = vmatprep.mubr.bf16.mxu0 %v2162_v9 }
 0x367   :  { %v1924_v43 = vpop.f32.mrb[78].mxu1 }
 0x368   :  { %v5224_v47 = vadd.f32 %v6681_v7, %v1924_v43  ;;  %v1926_v50 = vpop.f32.mrb[79].mxu1  ;;  %v2110_v51 = vmax.f32 %v5223_v14, 0.0 }
 0x36a   :  { %v2111_v53 = vmax.f32 %v5224_v47, 0.0 }
 0x36c   :  { %v2163_v55 = vpack.c.bf16 %v2111_v53, %v2110_v51 }
 0x36d   :  { %v1929_v57 = vpop.f32.mrb[80].mxu1 }
 0x36e   :  { %v5225_v59 = vadd.f32 %v6681_v7, %v1929_v57  ;;  %v1931_v62 = vpop.f32.mrb[81].mxu1  ;;  %5062 = vmatmul.mubr.bf16.gmra.mrb[52].mxu0 %v2163_v55 }
 0x36f   :  { %v1932_v63 = vpop.f32.mrb[82].mxu1 }
 0x370   :  { %v5226_v1 = vadd.f32 %v6681_v7, %v1932_v63  ;;  %v1934_v3 = vpop.f32.mrb[83].mxu1  ;;  %v2112_v5 = vmax.f32 %v5225_v59, 0.0 }
 0x372   :  { %v2113_v10 = vmax.f32 %v5226_v1, 0.0 }
 0x374   :  { %v2164_v11 = vpack.c.bf16 %v2113_v10, %v2112_v5 }
 0x375   :  { %v1937_v13 = vpop.f32.mrb[84].mxu1 }
 0x376   :  { %v5227_v15 = vadd.f32 %v6681_v7, %v1937_v13  ;;  %v1939_v16 = vpop.f32.mrb[85].mxu1  ;;  %5065 = vmatprep.mubr.bf16.mxu0 %v2164_v11 }
 0x377   :  { %v1940_v17 = vpop.f32.mrb[86].mxu1 }
 0x378   :  { %v5228_v18 = vadd.f32 %v6681_v7, %v1940_v17  ;;  %v1942_v19 = vpop.f32.mrb[87].mxu1  ;;  %v2114_v20 = vmax.f32 %v5227_v15, 0.0 }
 0x37a   :  { %v2115_v21 = vmax.f32 %v5228_v18, 0.0 }
 0x37c   :  { %v2165_v22 = vpack.c.bf16 %v2115_v21, %v2114_v20 }
 0x37d   :  { %v1945_v23 = vpop.f32.mrb[88].mxu1 }
 0x37e   :  { %v5229_v24 = vadd.f32 %v6681_v7, %v1945_v23  ;;  %v1947_v25 = vpop.f32.mrb[89].mxu1  ;;  %5066 = vmatmul.mubr.bf16.gmra.mrb[56].mxu0 %v2165_v22 }
 0x37f   :  { %v1948_v26 = vpop.f32.mrb[90].mxu1 }
 0x380   :  { %v5230_v27 = vadd.f32 %v6681_v7, %v1948_v26  ;;  %v1950_v28 = vpop.f32.mrb[91].mxu1  ;;  %v2116_v29 = vmax.f32 %v5229_v24, 0.0 }
 0x382   :  { %v2117_v30 = vmax.f32 %v5230_v27, 0.0 }
 0x384   :  { %v2166_v31 = vpack.c.bf16 %v2117_v30, %v2116_v29 }
 0x385   :  { %v1953_v32 = vpop.f32.mrb[92].mxu1 }
 0x386   :  { %v5231_v33 = vadd.f32 %v6681_v7, %v1953_v32  ;;  %v1955_v35 = vpop.f32.mrb[93].mxu1  ;;  %5069 = vmatprep.mubr.bf16.mxu0 %v2166_v31 }
 0x387   :  { %v1956_v36 = vpop.f32.mrb[94].mxu1 }
 0x388   :  { %v5232_v37 = vadd.f32 %v6681_v7, %v1956_v36  ;;  %v1958_v38 = vpop.f32.mrb[95].mxu1  ;;  %v2118_v39 = vmax.f32 %v5231_v33, 0.0 }
 0x38a   :  { %v2119_v40 = vmax.f32 %v5232_v37, 0.0 }
 0x38c   :  { %v2167_v41 = vpack.c.bf16 %v2119_v40, %v2118_v39 }
 0x38d   :  { %v1961_v42 = vpop.f32.mrb[96].mxu1 }
 0x38e   :  { %v5233_v44 = vadd.f32 %v6681_v7, %v1961_v42  ;;  %v1963_v46 = vpop.f32.mrb[97].mxu1  ;;  %5070 = vmatmul.mubr.bf16.gmra.mrb[60].mxu0 %v2167_v41 }
 0x38f   :  { %v1964_v48 = vpop.f32.mrb[98].mxu1 }
 0x390   :  { %v5234_v49 = vadd.f32 %v6681_v7, %v1964_v48  ;;  %v1966_v52 = vpop.f32.mrb[99].mxu1  ;;  %v2120_v54 = vmax.f32 %v5233_v44, 0.0 }
 0x392   :  { %v2121_v56 = vmax.f32 %v5234_v49, 0.0 }
 0x394   :  { %v2168_v58 = vpack.c.bf16 %v2121_v56, %v2120_v54 }
 0x395   :  { %v1969_v60 = vpop.f32.mrb[100].mxu1 }
 0x396   :  { %v5235_v61 = vadd.f32 %v6681_v7, %v1969_v60  ;;  %v1971_v0 = vpop.f32.mrb[101].mxu1  ;;  %5073 = vmatprep.mubr.bf16.mxu0 %v2168_v58 }
 0x397   :  { %v1972_v2 = vpop.f32.mrb[102].mxu1 }
 0x398   :  { %v5236_v4 = vadd.f32 %v6681_v7, %v1972_v2  ;;  %v1974_v6 = vpop.f32.mrb[103].mxu1  ;;  %v2122_v8 = vmax.f32 %v5235_v61, 0.0 }
 0x39a   :  { %v2123_v9 = vmax.f32 %v5236_v4, 0.0 }
 0x39c   :  { %v2169_v12 = vpack.c.bf16 %v2123_v9, %v2122_v8 }
 0x39d   :  { %v1977_v14 = vpop.f32.mrb[104].mxu1 }
 0x39e   :  { %v5237_v45 = vadd.f32 %v6681_v7, %v1977_v14  ;;  %v1979_v43 = vpop.f32.mrb[105].mxu1  ;;  %5074 = vmatmul.mubr.bf16.gmra.mrb[64].mxu0 %v2169_v12 }
 0x39f   :  { %v1980_v47 = vpop.f32.mrb[106].mxu1 }
 0x3a0   :  { %v5238_v50 = vadd.f32 %v6681_v7, %v1980_v47  ;;  %v1982_v51 = vpop.f32.mrb[107].mxu1  ;;  %v2124_v53 = vmax.f32 %v5237_v45, 0.0 }
 0x3a2   :  { %v2125_v55 = vmax.f32 %v5238_v50, 0.0 }
 0x3a4   :  { %v2170_v57 = vpack.c.bf16 %v2125_v55, %v2124_v53 }
 0x3a5   :  { %v1985_v59 = vpop.f32.mrb[108].mxu1 }
 0x3a6   :  { %v5239_v62 = vadd.f32 %v6681_v7, %v1985_v59  ;;  %v1987_v63 = vpop.f32.mrb[109].mxu1  ;;  %5077 = vmatprep.mubr.bf16.mxu0 %v2170_v57 }
 0x3a7   :  { %v1988_v1 = vpop.f32.mrb[110].mxu1 }
 0x3a8   :  { %v5240_v3 = vadd.f32 %v6681_v7, %v1988_v1  ;;  %v1990_v5 = vpop.f32.mrb[111].mxu1  ;;  %v2126_v10 = vmax.f32 %v5239_v62, 0.0 }
 0x3aa   :  { %v2127_v11 = vmax.f32 %v5240_v3, 0.0 }
 0x3ac   :  { %v2171_v13 = vpack.c.bf16 %v2127_v11, %v2126_v10 }
 0x3ad   :  { %v1993_v15 = vpop.f32.mrb[112].mxu1 }
 0x3ae   :  { %v5241_v16 = vadd.f32 %v6681_v7, %v1993_v15  ;;  %v1995_v17 = vpop.f32.mrb[113].mxu1  ;;  %5078 = vmatmul.mubr.bf16.gmra.mrb[68].mxu0 %v2171_v13 }
 0x3af   :  { %v1996_v18 = vpop.f32.mrb[114].mxu1 }
 0x3b0   :  { %v5242_v19 = vadd.f32 %v6681_v7, %v1996_v18  ;;  %v1998_v20 = vpop.f32.mrb[115].mxu1  ;;  %v2128_v21 = vmax.f32 %v5241_v16, 0.0 }
 0x3b2   :  { %v2129_v22 = vmax.f32 %v5242_v19, 0.0 }
 0x3b4   :  { %v2172_v23 = vpack.c.bf16 %v2129_v22, %v2128_v21 }
 0x3b5   :  { %v2001_v24 = vpop.f32.mrb[116].mxu1 }
 0x3b6   :  { %v5243_v25 = vadd.f32 %v6681_v7, %v2001_v24  ;;  %v2003_v26 = vpop.f32.mrb[117].mxu1  ;;  %5081 = vmatprep.mubr.bf16.mxu0 %v2172_v23 }
 0x3b7   :  { %v2004_v27 = vpop.f32.mrb[118].mxu1 }
 0x3b8   :  { %v5244_v28 = vadd.f32 %v6681_v7, %v2004_v27  ;;  %v2006_v29 = vpop.f32.mrb[119].mxu1  ;;  %v2130_v30 = vmax.f32 %v5243_v25, 0.0 }
 0x3ba   :  { %v2131_v31 = vmax.f32 %v5244_v28, 0.0 }
 0x3bc   :  { %v2173_v32 = vpack.c.bf16 %v2131_v31, %v2130_v30 }
 0x3bd   :  { %v2009_v33 = vpop.f32.mrb[120].mxu1 }
 0x3be   :  { %v5245_v35 = vadd.f32 %v6681_v7, %v2009_v33  ;;  %v2011_v36 = vpop.f32.mrb[121].mxu1  ;;  %5082 = vmatmul.mubr.bf16.gmra.mrb[72].mxu0 %v2173_v32 }
 0x3bf   :  { %v2012_v37 = vpop.f32.mrb[122].mxu1 }
 0x3c0   :  { %v5246_v38 = vadd.f32 %v6681_v7, %v2012_v37  ;;  %v2014_v39 = vpop.f32.mrb[123].mxu1  ;;  %v2132_v40 = vmax.f32 %v5245_v35, 0.0 }
 0x3c2   :  { %v2133_v41 = vmax.f32 %v5246_v38, 0.0 }
 0x3c4   :  { %v2174_v42 = vpack.c.bf16 %v2133_v41, %v2132_v40 }
 0x3c5   :  { %v2017_v44 = vpop.f32.mrb[124].mxu1 }
 0x3c6   :  { %v5247_v46 = vadd.f32 %v6681_v7, %v2017_v44  ;;  %v2019_v48 = vpop.f32.mrb[125].mxu1  ;;  %5085 = vmatprep.mubr.bf16.mxu0 %v2174_v42 }
 0x3c7   :  { %v2020_v49 = vpop.f32.mrb[126].mxu1 }
 0x3c8   :  { %v5248_v52 = vadd.f32 %v6681_v7, %v2020_v49  ;;  %v2022_v54 = vpop.f32.mrb[127].mxu1  ;;  %v2134_v56 = vmax.f32 %v5247_v46, 0.0 }
 0x3ca   :  { %v2135_v58 = vmax.f32 %v5248_v52, 0.0 }
 0x3cc   :  { %v2175_v60 = vpack.c.bf16 %v2135_v58, %v2134_v56 }
 0x3cd   :  { %v2025_v61 = vpop.f32.mrb[128].mxu1 }
 0x3ce   :  { %v5249_v0 = vadd.f32 %v6681_v7, %v2025_v61  ;;  %v2027_v2 = vpop.f32.mrb[129].mxu1  ;;  %5086 = vmatmul.mubr.bf16.gmra.mrb[76].mxu0 %v2175_v60 }
 0x3cf   :  { %v2028_v4 = vpop.f32.mrb[130].mxu1 }
 0x3d0   :  { %v5250_v6 = vadd.f32 %v6681_v7, %v2028_v4  ;;  %v2030_v8 = vpop.f32.mrb[131].mxu1  ;;  %v2136_v9 = vmax.f32 %v5249_v0, 0.0 }
 0x3d2   :  { %v2137_v12 = vmax.f32 %v5250_v6, 0.0 }
 0x3d4   :  { %v2176_v14 = vpack.c.bf16 %v2137_v12, %v2136_v9 }
 0x3d5   :  { %v2033_v45 = vpop.f32.mrb[132].mxu1 }
 0x3d6   :  { %v5251_v43 = vadd.f32 %v6681_v7, %v2033_v45  ;;  %v2035_v47 = vpop.f32.mrb[133].mxu1  ;;  %5089 = vmatprep.mubr.bf16.mxu0 %v2176_v14 }
 0x3d7   :  { %v2036_v50 = vpop.f32.mrb[134].mxu1 }
 0x3d8   :  { %v5252_v51 = vadd.f32 %v6681_v7, %v2036_v50  ;;  %v2038_v53 = vpop.f32.mrb[135].mxu1  ;;  %v2138_v55 = vmax.f32 %v5251_v43, 0.0 }
 0x3da   :  { %v2139_v57 = vmax.f32 %v5252_v51, 0.0 }
 0x3dc   :  { %v2177_v59 = vpack.c.bf16 %v2139_v57, %v2138_v55 }
 0x3dd   :  { %v2041_v62 = vpop.f32.mrb[136].mxu1 }
 0x3de   :  { %v5253_v63 = vadd.f32 %v6681_v7, %v2041_v62  ;;  %v2043_v1 = vpop.f32.mrb[137].mxu1  ;;  %5090 = vmatmul.mubr.bf16.gmra.mrb[80].mxu0 %v2177_v59 }
 0x3df   :  { %v2044_v3 = vpop.f32.mrb[138].mxu1 }
 0x3e0   :  { %v5254_v5 = vadd.f32 %v6681_v7, %v2044_v3  ;;  %v2046_v10 = vpop.f32.mrb[139].mxu1  ;;  %v2140_v11 = vmax.f32 %v5253_v63, 0.0  ;;  %v5828_v3 = vld [vmem:[%s7545_s0 + $0x4] ss:$16 sps:$4 sm:$0xff]  }
 0x3e2   :  { %v2141_v13 = vmax.f32 %v5254_v5, 0.0 }
 0x3e4   :  { %v2178_v15 = vpack.c.bf16 %v2141_v13, %v2140_v11 }
 0x3e5   :  { %v2049_v16 = vpop.f32.mrb[140].mxu1 }
 0x3e6   :  { %v5255_v17 = vadd.f32 %v6681_v7, %v2049_v16  ;;  %v2051_v18 = vpop.f32.mrb[141].mxu1  ;;  %5093 = vmatprep.mubr.bf16.mxu0 %v2178_v15 }
 0x3e7   :  { %v2052_v19 = vpop.f32.mrb[142].mxu1 }
 0x3e8   :  { %v5256_v20 = vadd.f32 %v6681_v7, %v2052_v19  ;;  %v2054_v21 = vpop.f32.mrb[143].mxu1  ;;  %v2142_v22 = vmax.f32 %v5255_v17, 0.0 }
 0x3ea   :  { %v2143_v23 = vmax.f32 %v5256_v20, 0.0 }
 0x3ec   :  { %v2179_v24 = vpack.c.bf16 %v2143_v23, %v2142_v22 }
 0x3ed   :  { %v2057_v25 = vpop.f32.mrb[144].mxu1 }
 0x3ee   :  { %v5257_v26 = vadd.f32 %v6681_v7, %v2057_v25  ;;  %v2059_v27 = vpop.f32.mrb[145].mxu1  ;;  %5094 = vmatmul.mubr.bf16.gmra.mrb[84].mxu0 %v2179_v24 }
 0x3ef   :  { %v2060_v28 = vpop.f32.mrb[146].mxu1 }
 0x3f0   :  { %v5258_v29 = vadd.f32 %v6681_v7, %v2060_v28  ;;  %v2062_v30 = vpop.f32.mrb[147].mxu1  ;;  %v2144_v32 = vmax.f32 %v5257_v26, 0.0 }
 0x3f1   :  { %v5043_v31 = vpop.f32.mrb[32].mxu0 }
 0x3f2   :  { %v2145_v33 = vmax.f32 %v5258_v29, 0.0  ;;  %v2282_v35 = vpop.f32.mrb[33].mxu0 }
 0x3f3   :  { %v5044_v36 = vpop.f32.mrb[34].mxu0 }
 0x3f4   :  { %v2180_v37 = vpack.c.bf16 %v2145_v33, %v2144_v32  ;;  %v2538_v38 = vpack.c.bf16 %v5044_v36, %v5043_v31  ;;  %v2285_v39 = vpop.f32.mrb[35].mxu0 }
 0x3f5   :  { %v2537_v40 = vpack.c.bf16 %v2285_v39, %v2282_v35  ;;  %v2065_v41 = vpop.f32.mrb[148].mxu1 }
 0x3f6   :  { %v5259_v42 = vadd.f32 %v6681_v7, %v2065_v41  ;;  %v2067_v44 = vpop.f32.mrb[149].mxu1  ;;  %5097 = vmatprep.mubr.bf16.mxu0 %v2180_v37 }
 0x3f7   :  { %v2068_v46 = vpop.f32.mrb[150].mxu1  ;;  %3409 = vmatpush1.bf16.msra.mxu0 %v2537_v40 }
 0x3f8   :  { %v5260_v48 = vadd.f32 %v6681_v7, %v2068_v46  ;;  %v2070_v49 = vpop.f32.mrb[151].mxu1  ;;  %3410 = vmatprep.subr.bf16.mxu0 %v6026_v34  ;;  %v2146_v52 = vmax.f32 %v5259_v42, 0.0 }
 0x3fa   :  { %v2147_v54 = vmax.f32 %v5260_v48, 0.0 }
 0x3fb   :  { %3411 = vmatpush1.bf16.msra.mxu0 %v2538_v38 }
 0x3fc   :  { %v2181_v56 = vpack.c.bf16 %v2147_v54, %v2146_v52  ;;  %3412 = vmatprep.subr.bf16.mxu0 %v6026_v34  ;;  %v5826_v54 = vld [vmem:[%s7545_s0] ss:$16 sps:$4 sm:$0xff]  }
 0x3fd   :  { %v2073_v58 = vpop.f32.mrb[152].mxu1 }
 0x3fe   :  { %v5261_v60 = vadd.f32 %v6681_v7, %v2073_v58  ;;  %v2075_v61 = vpop.f32.mrb[153].mxu1  ;;  %5098 = vmatmul.mubr.bf16.gmra.mrb[88].mxu0 %v2181_v56  ;;  %v5829_v56 = vld [vmem:[%s7545_s0 + $0x24] ss:$16 sps:$4 sm:$0xff]  }
 0x3ff   :  { %v2076_v0 = vpop.f32.mrb[154].mxu1  ;;  %v5831_v61 = vld [vmem:[%s7545_s0 + $0x20] ss:$16 sps:$4 sm:$0xff]  }
 0x400   :  { %v5262_v2 = vadd.f32 %v6681_v7, %v2076_v0  ;;  %v2078_v4 = vpop.f32.mrb[155].mxu1  ;;  %v2148_v8 = vmax.f32 %v5261_v60, 0.0 }
 0x401   :  { %v5047_v6 = vpop.f32.mrb[36].mxu0 }
 0x402   :  { %v2149_v9 = vmax.f32 %v5262_v2, 0.0  ;;  %v2298_v12 = vpop.f32.mrb[37].mxu0  ;;  %v5832_v2 = vld [vmem:[%s7545_s0 + $0x44] ss:$16 sps:$4 sm:$0xff]  }
 0x403   :  { %v5048_v14 = vpop.f32.mrb[38].mxu0 }
 0x404   :  { %v2182_v45 = vpack.c.bf16 %v2149_v9, %v2148_v8  ;;  %v2540_v43 = vpack.c.bf16 %v5048_v14, %v5047_v6  ;;  %v2301_v47 = vpop.f32.mrb[39].mxu0  ;;  %v5834_v9 = vld [vmem:[%s7545_s0 + $0x40] ss:$16 sps:$4 sm:$0xff]  }
 0x405   :  { %v2539_v50 = vpack.c.bf16 %v2301_v47, %v2298_v12  ;;  %v2081_v51 = vpop.f32.mrb[156].mxu1  ;;  %v5835_v12 = vld [vmem:[%s7545_s0 + $0x64] ss:$16 sps:$4 sm:$0xff]  }
 0x406   :  { %v5263_v53 = vadd.f32 %v6681_v7, %v2081_v51  ;;  %v2083_v55 = vpop.f32.mrb[157].mxu1  ;;  %5101 = vmatprep.mubr.bf16.mxu0 %v2182_v45 }
 0x407   :  { %v2084_v57 = vpop.f32.mrb[158].mxu1  ;;  %3413 = vmatpush1.bf16.msra.mxu0 %v2539_v50  ;;  %v5838_v50 = vld [vmem:[%s7545_s0 + $0x84] ss:$16 sps:$4 sm:$0xff]  }
 0x408   :  { %v5264_v59 = vadd.f32 %v6681_v7, %v2084_v57  ;;  %v2086_v62 = vpop.f32.mrb[159].mxu1  ;;  %3414 = vmatprep.subr.bf16.mxu0 %v6026_v34  ;;  %v2150_v63 = vmax.f32 %v5263_v53, 0.0  ;;  %v5840_v57 = vld [vmem:[%s7545_s0 + $0x80] ss:$16 sps:$4 sm:$0xff]  }
 0x40a   :  { %v2151_v1 = vmax.f32 %v5264_v59, 0.0  ;;  %v5841_v59 = vld [vmem:[%s7545_s0 + $0xa4] ss:$16 sps:$4 sm:$0xff]  }
 0x40b   :  { %3415 = vmatpush1.bf16.msra.mxu0 %v2540_v43  ;;  %v5837_v43 = vld [vmem:[%s7545_s0 + $0x60] ss:$16 sps:$4 sm:$0xff]  }
 0x40c   :  { %v2183_v5 = vpack.c.bf16 %v2151_v1, %v2150_v63  ;;  %3416 = vmatprep.subr.bf16.mxu0 %v6026_v34  ;;  %v5843_v1 = vld [vmem:[%s7545_s0 + $0xa0] ss:$16 sps:$4 sm:$0xff]  }
 0x40e   :  { %5102 = vmatmul.mubr.bf16.gmra.mrb[92].mxu0 %v2183_v5  ;;  %v5844_v5 = vld [vmem:[%s7545_s0 + $0xc4] ss:$16 sps:$4 sm:$0xff]  }
 0x40f   :  { %3440 = vmatprep.mubr.bf16.mxu0 %v5828_v3 }
 0x411   :  { %v5051_v10 = vpop.f32.mrb[40].mxu0 }
 0x412   :  { %v2314_v11 = vpop.f32.mrb[41].mxu0 }
 0x413   :  { %v5052_v13 = vpop.f32.mrb[42].mxu0 }
 0x414   :  { %v2542_v15 = vpack.c.bf16 %v5052_v13, %v5051_v10  ;;  %v2317_v7 = vpop.f32.mrb[43].mxu0 }
 0x415   :  { %v2541_v16 = vpack.c.bf16 %v2317_v7, %v2314_v11  ;;  %v5847_v7 = vld [vmem:[%s7545_s0 + $0xe4] ss:$16 sps:$4 sm:$0xff]  }
 0x417   :  { %3417 = vmatpush1.bf16.msra.mxu0 %v2541_v16 }
 0x418   :  { %3418 = vmatprep.subr.bf16.mxu0 %v6026_v34 }
 0x41b   :  { %3419 = vmatpush1.bf16.msra.mxu0 %v2542_v15  ;;  %v5846_v15 = vld [vmem:[%s7545_s0 + $0xc0] ss:$16 sps:$4 sm:$0xff]  }
 0x41c   :  { %3420 = vmatprep.subr.bf16.mxu0 %v6026_v34 }
 0x421   :  { %v5055_v17 = vpop.f32.mrb[44].mxu0 }
 0x422   :  { %v2330_v18 = vpop.f32.mrb[45].mxu0 }
 0x423   :  { %v5056_v19 = vpop.f32.mrb[46].mxu0 }
 0x424   :  { %v2544_v20 = vpack.c.bf16 %v5056_v19, %v5055_v17  ;;  %v2333_v21 = vpop.f32.mrb[47].mxu0 }
 0x425   :  { %v2543_v22 = vpack.c.bf16 %v2333_v21, %v2330_v18  ;;  %v5849_v18 = vld [vmem:[%s7545_s0 + $0xe0] ss:$16 sps:$4 sm:$0xff]  }
 0x427   :  { %3421 = vmatpush1.bf16.msra.mxu0 %v2543_v22 }
 0x428   :  { %3422 = vmatprep.subr.bf16.mxu0 %v6026_v34 }
 0x42b   :  { %3423 = vmatpush1.bf16.msra.mxu0 %v2544_v20  ;;  %v5850_v20 = vld [vmem:[%s7545_s0 + $0x104] ss:$16 sps:$4 sm:$0xff]  }
 0x42c   :  { %3424 = vmatprep.subr.bf16.mxu0 %v6026_v34 }
 0x431   :  { %v5059_v23 = vpop.f32.mrb[48].mxu0 }
 0x432   :  { %v2346_v24 = vpop.f32.mrb[49].mxu0 }
 0x433   :  { %v5060_v25 = vpop.f32.mrb[50].mxu0 }
 0x434   :  { %v2546_v26 = vpack.c.bf16 %v5060_v25, %v5059_v23  ;;  %v2349_v27 = vpop.f32.mrb[51].mxu0  ;;  %v5853_v25 = vld [vmem:[%s7545_s0 + $0x124] ss:$16 sps:$4 sm:$0xff]  }
 0x435   :  { %v2545_v28 = vpack.c.bf16 %v2349_v27, %v2346_v24  ;;  %v5852_v24 = vld [vmem:[%s7545_s0 + $0x100] ss:$16 sps:$4 sm:$0xff]  }
 0x437   :  { %3425 = vmatpush1.bf16.msra.mxu0 %v2545_v28  ;;  %v5855_v28 = vld [vmem:[%s7545_s0 + $0x120] ss:$16 sps:$4 sm:$0xff]  }
 0x438   :  { %3426 = vmatprep.subr.bf16.mxu0 %v6026_v34 }
 0x43b   :  { %3427 = vmatpush1.bf16.msra.mxu0 %v2546_v26 }
 0x43c   :  { %3428 = vmatprep.subr.bf16.mxu0 %v6026_v34 }
 0x441   :  { %v5063_v29 = vpop.f32.mrb[52].mxu0 }
 0x442   :  { %v2362_v30 = vpop.f32.mrb[53].mxu0 }
 0x443   :  { %v5064_v31 = vpop.f32.mrb[54].mxu0 }
 0x444   :  { %v2548_v32 = vpack.c.bf16 %v5064_v31, %v5063_v29  ;;  %v2365_v33 = vpop.f32.mrb[55].mxu0 }
 0x445   :  { %v2547_v35 = vpack.c.bf16 %v2365_v33, %v2362_v30  ;;  %v5856_v30 = vld [vmem:[%s7545_s0 + $0x144] ss:$16 sps:$4 sm:$0xff]  }
 0x447   :  { %3429 = vmatpush1.bf16.msra.mxu0 %v2547_v35  ;;  %v5858_v35 = vld [vmem:[%s7545_s0 + $0x140] ss:$16 sps:$4 sm:$0xff]  }
 0x448   :  { %3430 = vmatprep.subr.bf16.mxu0 %v6026_v34 }
 0x44b   :  { %3431 = vmatpush1.bf16.msra.mxu0 %v2548_v32 }
 0x44c   :  { %3432 = vmatprep.subr.bf16.mxu0 %v6026_v34 }
 0x451   :  { %v5067_v36 = vpop.f32.mrb[56].mxu0 }
 0x452   :  { %v2378_v37 = vpop.f32.mrb[57].mxu0 }
 0x453   :  { %v5068_v38 = vpop.f32.mrb[58].mxu0 }
 0x454   :  { %v2550_v39 = vpack.c.bf16 %v5068_v38, %v5067_v36  ;;  %v2381_v40 = vpop.f32.mrb[59].mxu0  ;;  %v5859_v36 = vld [vmem:[%s7545_s0 + $0x164] ss:$16 sps:$4 sm:$0xff]  }
 0x455   :  { %v2549_v41 = vpack.c.bf16 %v2381_v40, %v2378_v37 }
 0x457   :  { %3433 = vmatpush1.bf16.msra.mxu0 %v2549_v41  ;;  %v5862_v41 = vld [vmem:[%s7545_s0 + $0x184] ss:$16 sps:$4 sm:$0xff]  }
 0x458   :  { %3434 = vmatprep.subr.bf16.mxu0 %v6026_v34 }
 0x45b   :  { %3435 = vmatpush1.bf16.msra.mxu0 %v2550_v39  ;;  %v5861_v39 = vld [vmem:[%s7545_s0 + $0x160] ss:$16 sps:$4 sm:$0xff]  }
 0x45c   :  { %3436 = vmatprep.subr.bf16.mxu0 %v6026_v34 }
 0x461   :  { %v5071_v42 = vpop.f32.mrb[60].mxu0 }
 0x462   :  { %v2394_v44 = vpop.f32.mrb[61].mxu0 }
 0x463   :  { %v5072_v46 = vpop.f32.mrb[62].mxu0 }
 0x464   :  { %v2552_v48 = vpack.c.bf16 %v5072_v46, %v5071_v42  ;;  %v2397_v49 = vpop.f32.mrb[63].mxu0 }
 0x465   :  { %v2551_v52 = vpack.c.bf16 %v2397_v49, %v2394_v44  ;;  %v5865_v49 = vld [vmem:[%s7545_s0 + $0x1a4] ss:$16 sps:$4 sm:$0xff]  }
 0x467   :  { %3437 = vmatpush1.bf16.msra.mxu0 %v2551_v52 }
 0x468   :  { %3438 = vmatprep.subr.bf16.mxu0 %v6026_v34 }
 0x46b   :  { %3439 = vmatpush1.bf16.msra.mxu0 %v2552_v48  ;;  %v5864_v48 = vld [vmem:[%s7545_s0 + $0x180] ss:$16 sps:$4 sm:$0xff]  }
 0x46c   :  { %3697 = vmatprep.subr.bf16.mxu0 %v6026_v34 }
 0x46e   :  { %3441 = vmatmul.mubr.bf16.vlgmr.msra.gmra.mrb[96].mxu0 %v5826_v54 }
 0x46f   :  { %3448 = vmatprep.mubr.bf16.mxu0 %v5829_v56  ;;  %v5867_v56 = vld [vmem:[%s7545_s0 + $0x1a0] ss:$16 sps:$4 sm:$0xff]  }
 0x471   :  { %v5075_v58 = vpop.f32.mrb[64].mxu0 }
 0x472   :  { %v2410_v60 = vpop.f32.mrb[65].mxu0 }
 0x473   :  { %v5076_v0 = vpop.f32.mrb[66].mxu0 }
 0x474   :  { %v2554_v4 = vpack.c.bf16 %v5076_v0, %v5075_v58  ;;  %v2413_v6 = vpop.f32.mrb[67].mxu0 }
 0x475   :  { %v2553_v8 = vpack.c.bf16 %v2413_v6, %v2410_v60  ;;  %v5868_v60 = vld [vmem:[%s7545_s0 + $0x1c4] ss:$16 sps:$4 sm:$0xff]  }
 0x476   :  { %3449 = vmatmul.mubr.bf16.gmra.mrb[100].mxu0 %v5831_v61  ;;  %v5871_v6 = vld [vmem:[%s7545_s0 + $0x1e4] ss:$16 sps:$4 sm:$0xff]  }
 0x477   :  { %3698 = vmatpush1.bf16.msra.mxu0 %v2553_v8  ;;  %3456 = vmatprep.mubr.bf16.mxu0 %v5832_v2 }
 0x478   :  { %3699 = vmatprep.subr.bf16.mxu0 %v6026_v34 }
 0x47b   :  { %3700 = vmatpush1.bf16.msra.mxu0 %v2554_v4  ;;  %v5870_v4 = vld [vmem:[%s7545_s0 + $0x1c0] ss:$16 sps:$4 sm:$0xff]  }
 0x47c   :  { %3701 = vmatprep.subr.bf16.mxu0 %v6026_v34 }
 0x47e   :  { %3457 = vmatmul.mubr.bf16.gmra.mrb[104].mxu0 %v5834_v9 }
 0x47f   :  { %3464 = vmatprep.mubr.bf16.mxu0 %v5835_v12  ;;  %v5873_v12 = vld [vmem:[%s7545_s0 + $0x1e0] ss:$16 sps:$4 sm:$0xff]  }
 0x481   :  { %v5079_v14 = vpop.f32.mrb[68].mxu0 }
 0x482   :  { %v2426_v45 = vpop.f32.mrb[69].mxu0 }
 0x483   :  { %v5080_v47 = vpop.f32.mrb[70].mxu0 }
 0x484   :  { %v2556_v51 = vpack.c.bf16 %v5080_v47, %v5079_v14  ;;  %v2429_v53 = vpop.f32.mrb[71].mxu0 }
 0x485   :  { %v2555_v55 = vpack.c.bf16 %v2429_v53, %v2426_v45  ;;  %v5874_v45 = vld [vmem:[%s7545_s0 + $0x204] ss:$16 sps:$4 sm:$0xff]  }
 0x486   :  { %3465 = vmatmul.mubr.bf16.gmra.mrb[108].mxu0 %v5837_v43  ;;  %v5877_v53 = vld [vmem:[%s7545_s0 + $0x224] ss:$16 sps:$4 sm:$0xff]  }
 0x487   :  { %3702 = vmatpush1.bf16.msra.mxu0 %v2555_v55  ;;  %3472 = vmatprep.mubr.bf16.mxu0 %v5838_v50  ;;  %v5879_v55 = vld [vmem:[%s7545_s0 + $0x220] ss:$16 sps:$4 sm:$0xff]  }
 0x488   :  { %3703 = vmatprep.subr.bf16.mxu0 %v6026_v34 }
 0x48b   :  { %3704 = vmatpush1.bf16.msra.mxu0 %v2556_v51  ;;  %v5876_v51 = vld [vmem:[%s7545_s0 + $0x200] ss:$16 sps:$4 sm:$0xff]  }
 0x48c   :  { %3705 = vmatprep.subr.bf16.mxu0 %v6026_v34 }
 0x48e   :  { %3473 = vmatmul.mubr.bf16.gmra.mrb[112].mxu0 %v5840_v57  ;;  %v5880_v57 = vld [vmem:[%s7545_s0 + $0x244] ss:$16 sps:$4 sm:$0xff]  }
 0x48f   :  { %3480 = vmatprep.mubr.bf16.mxu0 %v5841_v59  ;;  %v5883_v59 = vld [vmem:[%s7545_s0 + $0x264] ss:$16 sps:$4 sm:$0xff]  }
 0x491   :  { %v5083_v62 = vpop.f32.mrb[72].mxu0 }
 0x492   :  { %v2442_v63 = vpop.f32.mrb[73].mxu0 }
 0x493   :  { %v5084_v3 = vpop.f32.mrb[74].mxu0 }
 0x494   :  { %v2558_v10 = vpack.c.bf16 %v5084_v3, %v5083_v62  ;;  %v2445_v11 = vpop.f32.mrb[75].mxu0  ;;  %v5885_v62 = vld [vmem:[%s7545_s0 + $0x260] ss:$16 sps:$4 sm:$0xff]   ;;  %v5889_v3 = vld [vmem:[%s7545_s0 + $0x2a4] ss:$16 sps:$4 sm:$0xff]  }
 0x495   :  { %v2557_v13 = vpack.c.bf16 %v2445_v11, %v2442_v63  ;;  %v5886_v63 = vld [vmem:[%s7545_s0 + $0x284] ss:$16 sps:$4 sm:$0xff]   ;;  %v5894_v11 = vld [vmem:[%s7545_s0 + $0x2c0] ss:$16 sps:$4 sm:$0xff]  }
 0x496   :  { %3481 = vmatmul.mubr.bf16.gmra.mrb[116].mxu0 %v5843_v1  ;;  %v5888_v1 = vld [vmem:[%s7545_s0 + $0x280] ss:$16 sps:$4 sm:$0xff]  }
 0x497   :  { %3706 = vmatpush1.bf16.msra.mxu0 %v2557_v13  ;;  %3488 = vmatprep.mubr.bf16.mxu0 %v5844_v5  ;;  %v5891_v5 = vld [vmem:[%s7545_s0 + $0x2a0] ss:$16 sps:$4 sm:$0xff]   ;;  %v5895_v13 = vld [vmem:[%s7545_s0 + $0x2e4] ss:$16 sps:$4 sm:$0xff]  }
 0x498   :  { %3707 = vmatprep.subr.bf16.mxu0 %v6026_v34 }
 0x49b   :  { %3708 = vmatpush1.bf16.msra.mxu0 %v2558_v10  ;;  %v5892_v10 = vld [vmem:[%s7545_s0 + $0x2c4] ss:$16 sps:$4 sm:$0xff]  }
 0x49c   :  { %3709 = vmatprep.subr.bf16.mxu0 %v6026_v34 }
 0x49e   :  { %3489 = vmatmul.mubr.bf16.gmra.mrb[120].mxu0 %v5846_v15  ;;  %v5897_v15 = vld [vmem:[%s7545_s0 + $0x2e0] ss:$16 sps:$4 sm:$0xff]  }
 0x49f   :  { %3496 = vmatprep.mubr.bf16.mxu0 %v5847_v7  ;;  %v5898_v7 = vld [vmem:[%s7545_s0 + $0x304] ss:$16 sps:$4 sm:$0xff]  }
 0x4a1   :  { %v5087_v16 = vpop.f32.mrb[76].mxu0 }
 0x4a2   :  { %v2458_v17 = vpop.f32.mrb[77].mxu0 }
 0x4a3   :  { %v5088_v19 = vpop.f32.mrb[78].mxu0 }
 0x4a4   :  { %v2560_v21 = vpack.c.bf16 %v5088_v19, %v5087_v16  ;;  %v2461_v22 = vpop.f32.mrb[79].mxu0  ;;  %v5900_v16 = vld [vmem:[%s7545_s0 + $0x300] ss:$16 sps:$4 sm:$0xff]   ;;  %v5904_v19 = vld [vmem:[%s7545_s0 + $0x344] ss:$16 sps:$4 sm:$0xff]  }
 0x4a5   :  { %v2559_v23 = vpack.c.bf16 %v2461_v22, %v2458_v17  ;;  %v5901_v17 = vld [vmem:[%s7545_s0 + $0x324] ss:$16 sps:$4 sm:$0xff]   ;;  %v5909_v22 = vld [vmem:[%s7545_s0 + $0x360] ss:$16 sps:$4 sm:$0xff]  }
 0x4a6   :  { %3497 = vmatmul.mubr.bf16.gmra.mrb[124].mxu0 %v5849_v18  ;;  %v5903_v18 = vld [vmem:[%s7545_s0 + $0x320] ss:$16 sps:$4 sm:$0xff]  }
 0x4a7   :  { %3710 = vmatpush1.bf16.msra.mxu0 %v2559_v23  ;;  %3504 = vmatprep.mubr.bf16.mxu0 %v5850_v20  ;;  %v5906_v20 = vld [vmem:[%s7545_s0 + $0x340] ss:$16 sps:$4 sm:$0xff]   ;;  %v5910_v23 = vld [vmem:[%s7545_s0 + $0x384] ss:$16 sps:$4 sm:$0xff]  }
 0x4a8   :  { %3711 = vmatprep.subr.bf16.mxu0 %v6026_v34 }
 0x4ab   :  { %3712 = vmatpush1.bf16.msra.mxu0 %v2560_v21  ;;  %v5907_v21 = vld [vmem:[%s7545_s0 + $0x364] ss:$16 sps:$4 sm:$0xff]  }
 0x4ac   :  { %3713 = vmatprep.subr.bf16.mxu0 %v6026_v34 }
 0x4ae   :  { %3505 = vmatmul.mubr.bf16.gmra.mrb[128].mxu0 %v5852_v24  ;;  %v5912_v24 = vld [vmem:[%s7545_s0 + $0x380] ss:$16 sps:$4 sm:$0xff]  }
 0x4af   :  { %3512 = vmatprep.mubr.bf16.mxu0 %v5853_v25  ;;  %v5913_v25 = vld [vmem:[%s7545_s0 + $0x3a4] ss:$16 sps:$4 sm:$0xff]  }
 0x4b1   :  { %v5091_v26 = vpop.f32.mrb[80].mxu0 }
 0x4b2   :  { %v2474_v27 = vpop.f32.mrb[81].mxu0 }
 0x4b3   :  { %v5092_v29 = vpop.f32.mrb[82].mxu0 }
 0x4b4   :  { %v2562_v31 = vpack.c.bf16 %v5092_v29, %v5091_v26  ;;  %v2477_v32 = vpop.f32.mrb[83].mxu0  ;;  %v5961_v26 = vld [vmem:[%s7548_s6] sm:$0xff]  }
 0x4b5   :  { %v2561_v33 = vpack.c.bf16 %v2477_v32, %v2474_v27  ;;  %v5915_v27 = vld [vmem:[%s7545_s0 + $0x3a0] ss:$16 sps:$4 sm:$0xff]   ;;  %5105 = vmatprep.subr.bf16.mxu1 %v5961_v26  ;;  %v5924_v32 = vld [vmem:[%s7545_s0 + $0xc] ss:$16 sps:$4 sm:$0xff]  }
 0x4b6   :  { %3513 = vmatmul.mubr.bf16.gmra.mrb[132].mxu0 %v5855_v28  ;;  %v5916_v28 = vld [vmem:[%s7545_s0 + $0x3c4] ss:$16 sps:$4 sm:$0xff]   ;;  %5106 = vmatpush3.bf16.msra.mxu1 %v5961_v26  ;;  %v5918_v29 = vld [vmem:[%s7545_s0 + $0x3c0] ss:$16 sps:$4 sm:$0xff]   ;;  %v6003_v26 = vld [vmem:[%s7545_s0 + $0x328] ss:$16 sps:$4 sm:$0xff]  }
 0x4b7   :  { %3714 = vmatpush1.bf16.msra.mxu0 %v2561_v33  ;;  %3520 = vmatprep.mubr.bf16.mxu0 %v5856_v30  ;;  %v5919_v30 = vld [vmem:[%s7545_s0 + $0x3e4] ss:$16 sps:$4 sm:$0xff]   ;;  %v5922_v33 = vld [vmem:[%s7545_s0 + $0x8] ss:$16 sps:$4 sm:$0xff]  }
 0x4b8   :  { %3715 = vmatprep.subr.bf16.mxu0 %v6026_v34 }
 0x4bb   :  { %3716 = vmatpush1.bf16.msra.mxu0 %v2562_v31  ;;  %v5921_v31 = vld [vmem:[%s7545_s0 + $0x3e0] ss:$16 sps:$4 sm:$0xff]  }
 0x4bc   :  { %3717 = vmatprep.subr.bf16.mxu0 %v6026_v34 }
 0x4be   :  { %3521 = vmatmul.mubr.bf16.gmra.mrb[136].mxu0 %v5858_v35  ;;  %v5925_v35 = vld [vmem:[%s7545_s0 + $0x2c] ss:$16 sps:$4 sm:$0xff]  }
 0x4bf   :  { %3528 = vmatprep.mubr.bf16.mxu0 %v5859_v36  ;;  %v5974_v36 = vld [vmem:[%s7548_s6 + $0x8] sm:$0xff]  }
 0x4c0   :  { %5107 = vmatprep.subr.bf16.mxu1 %v5974_v36 }
 0x4c1   :  { %v5095_v37 = vpop.f32.mrb[84].mxu0  ;;  %5108 = vmatpush3.bf16.msra.mxu1 %v5974_v36 }
 0x4c2   :  { %v2490_v38 = vpop.f32.mrb[85].mxu0 }
 0x4c3   :  { %v5096_v40 = vpop.f32.mrb[86].mxu0 }
 0x4c4   :  { %v2564_v42 = vpack.c.bf16 %v5096_v40, %v5095_v37  ;;  %v2493_v44 = vpop.f32.mrb[87].mxu0  ;;  %v5927_v37 = vld [vmem:[%s7545_s0 + $0x28] ss:$16 sps:$4 sm:$0xff]   ;;  %v5931_v40 = vld [vmem:[%s7545_s0 + $0x6c] ss:$16 sps:$4 sm:$0xff]  }
 0x4c5   :  { %v2563_v46 = vpack.c.bf16 %v2493_v44, %v2490_v38  ;;  %v5928_v38 = vld [vmem:[%s7545_s0 + $0x4c] ss:$16 sps:$4 sm:$0xff]   ;;  %v5936_v44 = vld [vmem:[%s7545_s0 + $0x88] ss:$16 sps:$4 sm:$0xff]  }
 0x4c6   :  { %3529 = vmatmul.mubr.bf16.gmra.mrb[140].mxu0 %v5861_v39  ;;  %v5930_v39 = vld [vmem:[%s7545_s0 + $0x48] ss:$16 sps:$4 sm:$0xff]  }
 0x4c7   :  { %3718 = vmatpush1.bf16.msra.mxu0 %v2563_v46  ;;  %3536 = vmatprep.mubr.bf16.mxu0 %v5862_v41  ;;  %v5933_v41 = vld [vmem:[%s7545_s0 + $0x68] ss:$16 sps:$4 sm:$0xff]   ;;  %v5937_v46 = vld [vmem:[%s7545_s0 + $0xac] ss:$16 sps:$4 sm:$0xff]  }
 0x4c8   :  { %3719 = vmatprep.subr.bf16.mxu0 %v6026_v34 }
 0x4cb   :  { %3720 = vmatpush1.bf16.msra.mxu0 %v2564_v42  ;;  %v5934_v42 = vld [vmem:[%s7545_s0 + $0x8c] ss:$16 sps:$4 sm:$0xff]  }
 0x4cc   :  { %3721 = vmatprep.subr.bf16.mxu0 %v6026_v34 }
 0x4ce   :  { %3537 = vmatmul.mubr.bf16.gmra.mrb[144].mxu0 %v5864_v48  ;;  %v5987_v48 = vld [vmem:[%s7548_s6 + $0x10] sm:$0xff]  }
 0x4cf   :  { %3544 = vmatprep.mubr.bf16.mxu0 %v5865_v49  ;;  %5109 = vmatprep.subr.bf16.mxu1 %v5987_v48  ;;  %v5939_v49 = vld [vmem:[%s7545_s0 + $0xa8] ss:$16 sps:$4 sm:$0xff]  }
 0x4d0   :  { %5110 = vmatpush3.bf16.msra.mxu1 %v5987_v48 }
 0x4d1   :  { %v5099_v52 = vpop.f32.mrb[88].mxu0 }
 0x4d2   :  { %v2506_v54 = vpop.f32.mrb[89].mxu0 }
 0x4d3   :  { %v5100_v58 = vpop.f32.mrb[90].mxu0 }
 0x4d4   :  { %v2566_v61 = vpack.c.bf16 %v5100_v58, %v5099_v52  ;;  %v2509_v0 = vpop.f32.mrb[91].mxu0  ;;  %v5940_v52 = vld [vmem:[%s7545_s0 + $0xcc] ss:$16 sps:$4 sm:$0xff]   ;;  %v5945_v58 = vld [vmem:[%s7545_s0 + $0xe8] ss:$16 sps:$4 sm:$0xff]  }
 0x4d5   :  { %v2565_v2 = vpack.c.bf16 %v2509_v0, %v2506_v54  ;;  %v5942_v54 = vld [vmem:[%s7545_s0 + $0xc8] ss:$16 sps:$4 sm:$0xff]   ;;  %v5949_v0 = vld [vmem:[%s7545_s0 + $0x12c] ss:$16 sps:$4 sm:$0xff]  }
 0x4d6   :  { %3545 = vmatmul.mubr.bf16.gmra.mrb[148].mxu0 %v5867_v56  ;;  %v5943_v56 = vld [vmem:[%s7545_s0 + $0xec] ss:$16 sps:$4 sm:$0xff]  }
 0x4d7   :  { %3722 = vmatpush1.bf16.msra.mxu0 %v2565_v2  ;;  %3552 = vmatprep.mubr.bf16.mxu0 %v5868_v60  ;;  %v5946_v60 = vld [vmem:[%s7545_s0 + $0x10c] ss:$16 sps:$4 sm:$0xff]  }
 0x4d8   :  { %3723 = vmatprep.subr.bf16.mxu0 %v6026_v34  ;;  %v6000_v2 = vld [vmem:[%s7548_s6 + $0x18] sm:$0xff]  }
 0x4d9   :  { %5111 = vmatprep.subr.bf16.mxu1 %v6000_v2 }
 0x4da   :  { %5112 = vmatpush3.bf16.msra.mxu1 %v6000_v2 }
 0x4db   :  { %3724 = vmatpush1.bf16.msra.mxu0 %v2566_v61  ;;  %v5948_v61 = vld [vmem:[%s7545_s0 + $0x108] ss:$16 sps:$4 sm:$0xff]  }
 0x4dc   :  { %3725 = vmatprep.subr.bf16.mxu0 %v6026_v34 }
 0x4de   :  { %3553 = vmatmul.mubr.bf16.gmra.mrb[152].mxu0 %v5870_v4  ;;  %v5951_v4 = vld [vmem:[%s7545_s0 + $0x128] ss:$16 sps:$4 sm:$0xff]  }
 0x4df   :  { %3560 = vmatprep.mubr.bf16.mxu0 %v5871_v6  ;;  %v5952_v6 = vld [vmem:[%s7545_s0 + $0x14c] ss:$16 sps:$4 sm:$0xff]  }
 0x4e1   :  { %v5103_v8 = vpop.f32.mrb[92].mxu0 }
 0x4e2   :  { %v2522_v9 = vpop.f32.mrb[93].mxu0 }
 0x4e3   :  { %v5104_v14 = vpop.f32.mrb[94].mxu0 }
 0x4e4   :  { %v2568_v43 = vpack.c.bf16 %v5104_v14, %v5103_v8  ;;  %v2525_v47 = vpop.f32.mrb[95].mxu0  ;;  %v5954_v8 = vld [vmem:[%s7545_s0 + $0x148] ss:$16 sps:$4 sm:$0xff]  }
 0x4e5   :  { %v2567_v50 = vpack.c.bf16 %v2525_v47, %v2522_v9  ;;  %v5955_v9 = vld [vmem:[%s7545_s0 + $0x16c] ss:$16 sps:$4 sm:$0xff]   ;;  %v5957_v14 = vld [vmem:[%s7545_s0 + $0x168] ss:$16 sps:$4 sm:$0xff]   ;;  %v6012_v47 = vld [vmem:[%s7548_s6 + $0x30] sm:$0xff]  }
 0x4e6   :  { %3561 = vmatmul.mubr.bf16.gmra.mrb[156].mxu0 %v5873_v12  ;;  %v6007_v12 = vld [vmem:[%s7548_s6 + $0x20] sm:$0xff]  }
 0x4e7   :  { %3726 = vmatpush1.bf16.msra.mxu0 %v2567_v50  ;;  %3568 = vmatprep.mubr.bf16.mxu0 %v5874_v45  ;;  %v5958_v45 = vld [vmem:[%s7545_s0 + $0x18c] ss:$16 sps:$4 sm:$0xff]   ;;  %v5960_v50 = vld [vmem:[%s7545_s0 + $0x188] ss:$16 sps:$4 sm:$0xff]  }
 0x4e8   :  { %3727 = vmatprep.subr.bf16.mxu0 %v6026_v34  ;;  %v5882_v34 = vld [vmem:[%s7545_s0 + $0x240] ss:$16 sps:$4 sm:$0xff]   ;;  %5113 = vmatprep.subr.bf16.mxu1 %v6007_v12 }
 0x4e9   :  { %5114 = vmatpush3.bf16.msra.mxu1 %v6007_v12  ;;  %v6020_v12 = vld [vmem:[%s7545_s0 + $0x3cc] ss:$16 sps:$4 sm:$0xff]  }
 0x4eb   :  { %3728 = vmatpush1.bf16.msra.mxu0 %v2568_v43  ;;  %v6011_v43 = vld [vmem:[%s7548_s6 + $0x28] sm:$0xff]  }
 0x4ec   :  { %5115 = vmatprep.subr.bf16.mxu1 %v6011_v43 }
 0x4ed   :  { %5116 = vmatpush3.bf16.msra.mxu1 %v6011_v43 }
 0x4ee   :  { %3569 = vmatmul.mubr.bf16.gmra.mrb[160].mxu0 %v5876_v51  ;;  %5117 = vmatprep.subr.bf16.mxu1 %v6012_v47  ;;  %v5962_v51 = vld [vmem:[%s7545_s0 + $0x1ac] ss:$16 sps:$4 sm:$0xff]  }
 0x4ef   :  { %3576 = vmatprep.mubr.bf16.mxu0 %v5877_v53  ;;  %v6016_v53 = vld [vmem:[%s7548_s6 + $0x38] sm:$0xff]  }
 0x4f1   :  { %5118 = vmatpush3.bf16.msra.mxu1 %v6012_v47 }
 0x4f2   :  { %5119 = vmatprep.subr.bf16.mxu1 %v6016_v53 }
 0x4f5   :  { %5120 = vmatpush3.bf16.msra.mxu1 %v6016_v53 }
 0x4f6   :  { %3577 = vmatmul.mubr.bf16.gmra.mrb[164].mxu0 %v5879_v55  ;;  %v5964_v55 = vld [vmem:[%s7545_s0 + $0x1a8] ss:$16 sps:$4 sm:$0xff]  }
 0x4f7   :  { %3584 = vmatprep.mubr.bf16.mxu0 %v5880_v57  ;;  %v5965_v57 = vld [vmem:[%s7545_s0 + $0x1cc] ss:$16 sps:$4 sm:$0xff]  }
 0x4fe   :  { %3585 = vmatmul.mubr.bf16.gmra.mrb[168].mxu0 %v5882_v34  ;;  %v5967_v34 = vld [vmem:[%s7545_s0 + $0x1c8] ss:$16 sps:$4 sm:$0xff]  }
 0x4ff   :  { %3592 = vmatprep.mubr.bf16.mxu0 %v5883_v59  ;;  %v5968_v59 = vld [vmem:[%s7545_s0 + $0x1ec] ss:$16 sps:$4 sm:$0xff]  }
 0x506   :  { %3593 = vmatmul.mubr.bf16.gmra.mrb[172].mxu0 %v5885_v62  ;;  %v5970_v62 = vld [vmem:[%s7545_s0 + $0x1e8] ss:$16 sps:$4 sm:$0xff]  }
 0x507   :  { %3600 = vmatprep.mubr.bf16.mxu0 %v5886_v63  ;;  %v5971_v63 = vld [vmem:[%s7545_s0 + $0x20c] ss:$16 sps:$4 sm:$0xff]  }
 0x50e   :  { %3601 = vmatmul.mubr.bf16.gmra.mrb[176].mxu0 %v5888_v1  ;;  %v5973_v1 = vld [vmem:[%s7545_s0 + $0x208] ss:$16 sps:$4 sm:$0xff]  }
 0x50f   :  { %3608 = vmatprep.mubr.bf16.mxu0 %v5889_v3  ;;  %v5975_v3 = vld [vmem:[%s7545_s0 + $0x22c] ss:$16 sps:$4 sm:$0xff]  }
 0x516   :  { %3609 = vmatmul.mubr.bf16.gmra.mrb[180].mxu0 %v5891_v5  ;;  %v5977_v5 = vld [vmem:[%s7545_s0 + $0x228] ss:$16 sps:$4 sm:$0xff]  }
 0x517   :  { %3616 = vmatprep.mubr.bf16.mxu0 %v5892_v10  ;;  %v5978_v10 = vld [vmem:[%s7545_s0 + $0x24c] ss:$16 sps:$4 sm:$0xff]  }
 0x51e   :  { %3617 = vmatmul.mubr.bf16.gmra.mrb[184].mxu0 %v5894_v11  ;;  %v5980_v11 = vld [vmem:[%s7545_s0 + $0x248] ss:$16 sps:$4 sm:$0xff]  }
 0x51f   :  { %3624 = vmatprep.mubr.bf16.mxu0 %v5895_v13  ;;  %v5981_v13 = vld [vmem:[%s7545_s0 + $0x26c] ss:$16 sps:$4 sm:$0xff]  }
 0x526   :  { %3625 = vmatmul.mubr.bf16.gmra.mrb[188].mxu0 %v5897_v15  ;;  %v5983_v15 = vld [vmem:[%s7545_s0 + $0x268] ss:$16 sps:$4 sm:$0xff]  }
 0x527   :  { %3632 = vmatprep.mubr.bf16.mxu0 %v5898_v7  ;;  %v5984_v7 = vld [vmem:[%s7545_s0 + $0x28c] ss:$16 sps:$4 sm:$0xff]  }
 0x52e   :  { %3633 = vmatmul.mubr.bf16.gmra.mrb[192].mxu0 %v5900_v16  ;;  %v5986_v16 = vld [vmem:[%s7545_s0 + $0x288] ss:$16 sps:$4 sm:$0xff]  }
 0x52f   :  { %3640 = vmatprep.mubr.bf16.mxu0 %v5901_v17  ;;  %v5988_v17 = vld [vmem:[%s7545_s0 + $0x2ac] ss:$16 sps:$4 sm:$0xff]  }
 0x536   :  { %3641 = vmatmul.mubr.bf16.gmra.mrb[196].mxu0 %v5903_v18  ;;  %v5990_v18 = vld [vmem:[%s7545_s0 + $0x2a8] ss:$16 sps:$4 sm:$0xff]  }
 0x537   :  { %3648 = vmatprep.mubr.bf16.mxu0 %v5904_v19  ;;  %v5991_v19 = vld [vmem:[%s7545_s0 + $0x2cc] ss:$16 sps:$4 sm:$0xff]  }
 0x53e   :  { %3649 = vmatmul.mubr.bf16.gmra.mrb[200].mxu0 %v5906_v20  ;;  %v5993_v20 = vld [vmem:[%s7545_s0 + $0x2c8] ss:$16 sps:$4 sm:$0xff]  }
 0x53f   :  { %3656 = vmatprep.mubr.bf16.mxu0 %v5907_v21  ;;  %v5994_v21 = vld [vmem:[%s7545_s0 + $0x2ec] ss:$16 sps:$4 sm:$0xff]  }
 0x546   :  { %3657 = vmatmul.mubr.bf16.gmra.mrb[204].mxu0 %v5909_v22  ;;  %v5996_v22 = vld [vmem:[%s7545_s0 + $0x2e8] ss:$16 sps:$4 sm:$0xff]  }
 0x547   :  { %3664 = vmatprep.mubr.bf16.mxu0 %v5910_v23  ;;  %v5997_v23 = vld [vmem:[%s7545_s0 + $0x30c] ss:$16 sps:$4 sm:$0xff]  }
 0x54e   :  { %3665 = vmatmul.mubr.bf16.gmra.mrb[208].mxu0 %v5912_v24  ;;  %v5999_v24 = vld [vmem:[%s7545_s0 + $0x308] ss:$16 sps:$4 sm:$0xff]  }
 0x54f   :  { %3672 = vmatprep.mubr.bf16.mxu0 %v5913_v25  ;;  %v6001_v25 = vld [vmem:[%s7545_s0 + $0x32c] ss:$16 sps:$4 sm:$0xff]  }
 0x556   :  { %3673 = vmatmul.mubr.bf16.gmra.mrb[212].mxu0 %v5915_v27  ;;  %v6004_v27 = vld [vmem:[%s7545_s0 + $0x34c] ss:$16 sps:$4 sm:$0xff]  }
 0x557   :  { %3680 = vmatprep.mubr.bf16.mxu0 %v5916_v28  ;;  %v6006_v28 = vld [vmem:[%s7545_s0 + $0x348] ss:$16 sps:$4 sm:$0xff]  }
 0x55e   :  { %3681 = vmatmul.mubr.bf16.gmra.mrb[216].mxu0 %v5918_v29  ;;  %v6008_v29 = vld [vmem:[%s7545_s0 + $0x36c] ss:$16 sps:$4 sm:$0xff]  }
 0x55f   :  { %3688 = vmatprep.mubr.bf16.mxu0 %v5919_v30  ;;  %v7189_v30 = vld [vmem:[%s7549_s5] ss:$0 sm:$0xff] }
 0x566   :  { %3689 = vmatmul.mubr.bf16.gmra.mrb[220].mxu0 %v5921_v31 }
 0x567   :  { %3729 = vmatprep.mubr.bf16.mxu0 %v5924_v32 }
 0x56e   :  { %3730 = vmatmul.mubr.bf16.vlgmr.msra.gmra.mrb[96].mxu0 %v5922_v33 }
 0x56f   :  { %3737 = vmatprep.mubr.bf16.mxu0 %v5925_v35  ;;  %v6010_v35 = vld [vmem:[%s7545_s0 + $0x368] ss:$16 sps:$4 sm:$0xff]  }
 0x576   :  { %3738 = vmatmul.mubr.bf16.gmra.mrb[100].mxu0 %v5927_v37  ;;  %v6013_v37 = vld [vmem:[%s7545_s0 + $0x38c] ss:$16 sps:$4 sm:$0xff]  }
 0x577   :  { %3745 = vmatprep.mubr.bf16.mxu0 %v5928_v38 }
 0x57e   :  { %3746 = vmatmul.mubr.bf16.gmra.mrb[104].mxu0 %v5930_v39 }
 0x57f   :  { %3753 = vmatprep.mubr.bf16.mxu0 %v5931_v40 }
 0x586   :  { %3754 = vmatmul.mubr.bf16.gmra.mrb[108].mxu0 %v5933_v41 }
 0x587   :  { %3761 = vmatprep.mubr.bf16.mxu0 %v5934_v42 }
 0x58e   :  { %3762 = vmatmul.mubr.bf16.gmra.mrb[112].mxu0 %v5936_v44 }
 0x58f   :  { %3769 = vmatprep.mubr.bf16.mxu0 %v5937_v46 }
 0x596   :  { %3770 = vmatmul.mubr.bf16.gmra.mrb[116].mxu0 %v5939_v49  ;;  %v6015_v49 = vld [vmem:[%s7545_s0 + $0x388] ss:$16 sps:$4 sm:$0xff]  }
 0x597   :  { %3777 = vmatprep.mubr.bf16.mxu0 %v5940_v52 }
 0x59e   :  { %3778 = vmatmul.mubr.bf16.gmra.mrb[120].mxu0 %v5942_v54  ;;  %v6017_v54 = vld [vmem:[%s7545_s0 + $0x3ac] ss:$16 sps:$4 sm:$0xff]  }
 0x59f   :  { %3785 = vmatprep.mubr.bf16.mxu0 %v5943_v56 }
 0x5a6   :  { %3786 = vmatmul.mubr.bf16.gmra.mrb[124].mxu0 %v5945_v58 }
 0x5a7   :  { %3793 = vmatprep.mubr.bf16.mxu0 %v5946_v60 }
 0x5ae   :  { %3794 = vmatmul.mubr.bf16.gmra.mrb[128].mxu0 %v5948_v61 }
 0x5af   :  { %3801 = vmatprep.mubr.bf16.mxu0 %v5949_v0 }
 0x5b6   :  { %3802 = vmatmul.mubr.bf16.gmra.mrb[132].mxu0 %v5951_v4 }
 0x5b7   :  { %3809 = vmatprep.mubr.bf16.mxu0 %v5952_v6 }
 0x5be   :  { %3810 = vmatmul.mubr.bf16.gmra.mrb[136].mxu0 %v5954_v8  ;;  %v6019_v8 = vld [vmem:[%s7545_s0 + $0x3a8] ss:$16 sps:$4 sm:$0xff]  }
 0x5bf   :  { %3817 = vmatprep.mubr.bf16.mxu0 %v5955_v9 }
 0x5c6   :  { %3818 = vmatmul.mubr.bf16.gmra.mrb[140].mxu0 %v5957_v14 }
 0x5c7   :  { %3825 = vmatprep.mubr.bf16.mxu0 %v5958_v45 }
 0x5ce   :  { %3826 = vmatmul.mubr.bf16.gmra.mrb[144].mxu0 %v5960_v50 }
 0x5cf   :  { %3833 = vmatprep.mubr.bf16.mxu0 %v5962_v51 }
 0x5d6   :  { %3834 = vmatmul.mubr.bf16.gmra.mrb[148].mxu0 %v5964_v55 }
 0x5d7   :  { %3841 = vmatprep.mubr.bf16.mxu0 %v5965_v57  ;;  %v6022_v57 = vld [vmem:[%s7545_s0 + $0x3c8] ss:$16 sps:$4 sm:$0xff]  }
 0x5de   :  { %3842 = vmatmul.mubr.bf16.gmra.mrb[152].mxu0 %v5967_v34 }
 0x5df   :  { %3849 = vmatprep.mubr.bf16.mxu0 %v5968_v59  ;;  %v6023_v59 = vld [vmem:[%s7545_s0 + $0x3ec] ss:$16 sps:$4 sm:$0xff]  }
 0x5e6   :  { %3850 = vmatmul.mubr.bf16.gmra.mrb[156].mxu0 %v5970_v62 }
 0x5e7   :  { %3857 = vmatprep.mubr.bf16.mxu0 %v5971_v63 }
 0x5ee   :  { %3858 = vmatmul.mubr.bf16.gmra.mrb[160].mxu0 %v5973_v1 }
 0x5ef   :  { %3865 = vmatprep.mubr.bf16.mxu0 %v5975_v3 }
 0x5f6   :  { %3866 = vmatmul.mubr.bf16.gmra.mrb[164].mxu0 %v5977_v5 }
 0x5f7   :  { %3873 = vmatprep.mubr.bf16.mxu0 %v5978_v10 }
 0x5fe   :  { %3874 = vmatmul.mubr.bf16.gmra.mrb[168].mxu0 %v5980_v11 }
 0x5ff   :  { %3881 = vmatprep.mubr.bf16.mxu0 %v5981_v13 }
 0x606   :  { %3882 = vmatmul.mubr.bf16.gmra.mrb[172].mxu0 %v5983_v15  ;;  %v6025_v15 = vld [vmem:[%s7545_s0 + $0x3e8] ss:$16 sps:$4 sm:$0xff]  }
 0x607   :  { %3889 = vmatprep.mubr.bf16.mxu0 %v5984_v7 }
 0x60e   :  { %3890 = vmatmul.mubr.bf16.gmra.mrb[176].mxu0 %v5986_v16 }
 0x60f   :  { %3897 = vmatprep.mubr.bf16.mxu0 %v5988_v17 }
 0x616   :  { %3898 = vmatmul.mubr.bf16.gmra.mrb[180].mxu0 %v5990_v18 }
 0x617   :  { %3905 = vmatprep.mubr.bf16.mxu0 %v5991_v19 }
 0x61e   :  { %3906 = vmatmul.mubr.bf16.gmra.mrb[184].mxu0 %v5993_v20 }
 0x61f   :  { %3913 = vmatprep.mubr.bf16.mxu0 %v5994_v21 }
 0x626   :  { %3914 = vmatmul.mubr.bf16.gmra.mrb[188].mxu0 %v5996_v22 }
 0x627   :  { %3921 = vmatprep.mubr.bf16.mxu0 %v5997_v23 }
 0x62e   :  { %3922 = vmatmul.mubr.bf16.gmra.mrb[192].mxu0 %v5999_v24 }
 0x62f   :  { %3929 = vmatprep.mubr.bf16.mxu0 %v6001_v25 }
 0x636   :  { %3930 = vmatmul.mubr.bf16.gmra.mrb[196].mxu0 %v6003_v26 }
 0x637   :  { %3937 = vmatprep.mubr.bf16.mxu0 %v6004_v27 }
 0x63e   :  { %3938 = vmatmul.mubr.bf16.gmra.mrb[200].mxu0 %v6006_v28 }
 0x63f   :  { %3945 = vmatprep.mubr.bf16.mxu0 %v6008_v29 }
 0x641   :  { %v3731_v31 = vpop.f32.mrb[96].mxu0 }
 0x642   :  { %v5265_v32 = vadd.f32 %v7189_v30, %v3731_v31  ;;  %v3733_v33 = vpop.f32.mrb[97].mxu0 }
 0x643   :  { %v3734_v36 = vpop.f32.mrb[98].mxu0 }
 0x644   :  { %v5266_v38 = vadd.f32 %v7189_v30, %v3734_v36  ;;  %v3736_v39 = vpop.f32.mrb[99].mxu0  ;;  %v3986_v40 = vmax.f32 %v5265_v32, 0.0 }
 0x646   :  { %v3987_v41 = vmax.f32 %v5266_v38, 0.0  ;;  %3946 = vmatmul.mubr.bf16.gmra.mrb[204].mxu0 %v6010_v35 }
 0x647   :  { %3953 = vmatprep.mubr.bf16.mxu0 %v6013_v37 }
 0x648   :  { %v4050_v42 = vpack.c.bf16 %v3987_v41, %v3986_v40 }
 0x649   :  { %v3739_v44 = vpop.f32.mrb[100].mxu0 }
 0x64a   :  { %v5267_v46 = vadd.f32 %v7189_v30, %v3739_v44  ;;  %v3741_v48 = vpop.f32.mrb[101].mxu0  ;;  %5121 = vmatprep.mubr.bf16.mxu1 %v4050_v42 }
 0x64b   :  { %v3742_v52 = vpop.f32.mrb[102].mxu0 }
 0x64c   :  { %v5268_v56 = vadd.f32 %v7189_v30, %v3742_v52  ;;  %v3744_v58 = vpop.f32.mrb[103].mxu0  ;;  %v3988_v60 = vmax.f32 %v5267_v46, 0.0 }
 0x64e   :  { %v3989_v61 = vmax.f32 %v5268_v56, 0.0  ;;  %3954 = vmatmul.mubr.bf16.gmra.mrb[208].mxu0 %v6015_v49 }
 0x64f   :  { %3961 = vmatprep.mubr.bf16.mxu0 %v6017_v54 }
 0x650   :  { %v4051_v0 = vpack.c.bf16 %v3989_v61, %v3988_v60 }
 0x651   :  { %v3747_v2 = vpop.f32.mrb[104].mxu0 }
 0x652   :  { %v5269_v4 = vadd.f32 %v7189_v30, %v3747_v2  ;;  %v3749_v6 = vpop.f32.mrb[105].mxu0  ;;  %5122 = vmatmul.mubr.bf16.vlgmr.msra.gmra.mrb[160].mxu1 %v4051_v0 }
 0x653   :  { %v3750_v9 = vpop.f32.mrb[106].mxu0 }
 0x654   :  { %v5270_v14 = vadd.f32 %v7189_v30, %v3750_v9  ;;  %v3752_v45 = vpop.f32.mrb[107].mxu0  ;;  %v3990_v43 = vmax.f32 %v5269_v4, 0.0 }
 0x656   :  { %v3991_v47 = vmax.f32 %v5270_v14, 0.0  ;;  %3962 = vmatmul.mubr.bf16.gmra.mrb[212].mxu0 %v6019_v8 }
 0x657   :  { %3969 = vmatprep.mubr.bf16.mxu0 %v6020_v12 }
 0x658   :  { %v4052_v50 = vpack.c.bf16 %v3991_v47, %v3990_v43 }
 0x659   :  { %v3755_v51 = vpop.f32.mrb[108].mxu0 }
 0x65a   :  { %v5271_v53 = vadd.f32 %v7189_v30, %v3755_v51  ;;  %v3757_v55 = vpop.f32.mrb[109].mxu0  ;;  %5125 = vmatprep.mubr.bf16.mxu1 %v4052_v50 }
 0x65b   :  { %v3758_v34 = vpop.f32.mrb[110].mxu0 }
 0x65c   :  { %v5272_v62 = vadd.f32 %v7189_v30, %v3758_v34  ;;  %v3760_v63 = vpop.f32.mrb[111].mxu0  ;;  %v3992_v1 = vmax.f32 %v5271_v53, 0.0 }
 0x65e   :  { %v3993_v3 = vmax.f32 %v5272_v62, 0.0  ;;  %3970 = vmatmul.mubr.bf16.gmra.mrb[216].mxu0 %v6022_v57 }
 0x65f   :  { %3977 = vmatprep.mubr.bf16.mxu0 %v6023_v59 }
 0x660   :  { %v4053_v5 = vpack.c.bf16 %v3993_v3, %v3992_v1 }
 0x661   :  { %v3763_v10 = vpop.f32.mrb[112].mxu0 }
 0x662   :  { %v5273_v11 = vadd.f32 %v7189_v30, %v3763_v10  ;;  %v3765_v13 = vpop.f32.mrb[113].mxu0  ;;  %5126 = vmatmul.mubr.bf16.gmra.mrb[164].mxu1 %v4053_v5 }
 0x663   :  { %v3766_v7 = vpop.f32.mrb[114].mxu0 }
 0x664   :  { %v5274_v16 = vadd.f32 %v7189_v30, %v3766_v7  ;;  %v3768_v17 = vpop.f32.mrb[115].mxu0  ;;  %v3994_v18 = vmax.f32 %v5273_v11, 0.0 }
 0x666   :  { %v3995_v19 = vmax.f32 %v5274_v16, 0.0  ;;  %3978 = vmatmul.mubr.bf16.gmra.mrb[220].mxu0 %v6025_v15 }
 0x668   :  { %v4054_v20 = vpack.c.bf16 %v3995_v19, %v3994_v18 }
 0x669   :  { %v3771_v21 = vpop.f32.mrb[116].mxu0 }
 0x66a   :  { %v5275_v22 = vadd.f32 %v7189_v30, %v3771_v21  ;;  %v3773_v23 = vpop.f32.mrb[117].mxu0  ;;  %5129 = vmatprep.mubr.bf16.mxu1 %v4054_v20 }
 0x66b   :  { %v3774_v24 = vpop.f32.mrb[118].mxu0 }
 0x66c   :  { %v5276_v25 = vadd.f32 %v7189_v30, %v3774_v24  ;;  %v3776_v26 = vpop.f32.mrb[119].mxu0  ;;  %v3996_v27 = vmax.f32 %v5275_v22, 0.0 }
 0x66e   :  { %v3997_v28 = vmax.f32 %v5276_v25, 0.0 }
 0x670   :  { %v4055_v29 = vpack.c.bf16 %v3997_v28, %v3996_v27 }
 0x671   :  { %v3779_v31 = vpop.f32.mrb[120].mxu0 }
 0x672   :  { %v5277_v32 = vadd.f32 %v7189_v30, %v3779_v31  ;;  %v3781_v33 = vpop.f32.mrb[121].mxu0  ;;  %5130 = vmatmul.mubr.bf16.gmra.mrb[168].mxu1 %v4055_v29 }
 0x673   :  { %v3782_v35 = vpop.f32.mrb[122].mxu0 }
 0x674   :  { %v5278_v36 = vadd.f32 %v7189_v30, %v3782_v35  ;;  %v3784_v37 = vpop.f32.mrb[123].mxu0  ;;  %v3998_v38 = vmax.f32 %v5277_v32, 0.0 }
 0x676   :  { %v3999_v39 = vmax.f32 %v5278_v36, 0.0 }
 0x678   :  { %v4056_v40 = vpack.c.bf16 %v3999_v39, %v3998_v38 }
 0x679   :  { %v3787_v41 = vpop.f32.mrb[124].mxu0 }
 0x67a   :  { %v5279_v42 = vadd.f32 %v7189_v30, %v3787_v41  ;;  %v3789_v44 = vpop.f32.mrb[125].mxu0  ;;  %5133 = vmatprep.mubr.bf16.mxu1 %v4056_v40 }
 0x67b   :  { %v3790_v46 = vpop.f32.mrb[126].mxu0 }
 0x67c   :  { %v5280_v48 = vadd.f32 %v7189_v30, %v3790_v46  ;;  %v3792_v49 = vpop.f32.mrb[127].mxu0  ;;  %v4000_v52 = vmax.f32 %v5279_v42, 0.0 }
 0x67e   :  { %v4001_v54 = vmax.f32 %v5280_v48, 0.0 }
 0x680   :  { %v4057_v56 = vpack.c.bf16 %v4001_v54, %v4000_v52 }
 0x681   :  { %v3795_v58 = vpop.f32.mrb[128].mxu0 }
 0x682   :  { %v5281_v60 = vadd.f32 %v7189_v30, %v3795_v58  ;;  %v3797_v61 = vpop.f32.mrb[129].mxu0  ;;  %5134 = vmatmul.mubr.bf16.gmra.mrb[172].mxu1 %v4057_v56 }
 0x683   :  { %v3798_v0 = vpop.f32.mrb[130].mxu0 }
 0x684   :  { %v5282_v2 = vadd.f32 %v7189_v30, %v3798_v0  ;;  %v3800_v4 = vpop.f32.mrb[131].mxu0  ;;  %v4002_v6 = vmax.f32 %v5281_v60, 0.0 }
 0x686   :  { %v4003_v8 = vmax.f32 %v5282_v2, 0.0 }
 0x688   :  { %v4058_v9 = vpack.c.bf16 %v4003_v8, %v4002_v6 }
 0x689   :  { %v3803_v12 = vpop.f32.mrb[132].mxu0 }
 0x68a   :  { %v5283_v14 = vadd.f32 %v7189_v30, %v3803_v12  ;;  %v3805_v45 = vpop.f32.mrb[133].mxu0  ;;  %5137 = vmatprep.mubr.bf16.mxu1 %v4058_v9 }
 0x68b   :  { %v3806_v43 = vpop.f32.mrb[134].mxu0 }
 0x68c   :  { %v5284_v47 = vadd.f32 %v7189_v30, %v3806_v43  ;;  %v3808_v50 = vpop.f32.mrb[135].mxu0  ;;  %v4004_v51 = vmax.f32 %v5283_v14, 0.0 }
 0x68e   :  { %v4005_v53 = vmax.f32 %v5284_v47, 0.0 }
 0x690   :  { %v4059_v55 = vpack.c.bf16 %v4005_v53, %v4004_v51 }
 0x691   :  { %v3811_v57 = vpop.f32.mrb[136].mxu0 }
 0x692   :  { %v5285_v34 = vadd.f32 %v7189_v30, %v3811_v57  ;;  %v3813_v59 = vpop.f32.mrb[137].mxu0  ;;  %5138 = vmatmul.mubr.bf16.gmra.mrb[176].mxu1 %v4059_v55 }
 0x693   :  { %v3814_v62 = vpop.f32.mrb[138].mxu0 }
 0x694   :  { %v5286_v63 = vadd.f32 %v7189_v30, %v3814_v62  ;;  %v3816_v1 = vpop.f32.mrb[139].mxu0  ;;  %v4006_v3 = vmax.f32 %v5285_v34, 0.0 }
 0x696   :  { %v4007_v5 = vmax.f32 %v5286_v63, 0.0 }
 0x698   :  { %v4060_v10 = vpack.c.bf16 %v4007_v5, %v4006_v3 }
 0x699   :  { %v3819_v11 = vpop.f32.mrb[140].mxu0 }
 0x69a   :  { %v5287_v13 = vadd.f32 %v7189_v30, %v3819_v11  ;;  %v3821_v15 = vpop.f32.mrb[141].mxu0  ;;  %5141 = vmatprep.mubr.bf16.mxu1 %v4060_v10 }
 0x69b   :  { %v3822_v7 = vpop.f32.mrb[142].mxu0 }
 0x69c   :  { %v5288_v16 = vadd.f32 %v7189_v30, %v3822_v7  ;;  %v3824_v17 = vpop.f32.mrb[143].mxu0  ;;  %v4008_v18 = vmax.f32 %v5287_v13, 0.0 }
 0x69e   :  { %v4009_v19 = vmax.f32 %v5288_v16, 0.0 }
 0x6a0   :  { %v4061_v20 = vpack.c.bf16 %v4009_v19, %v4008_v18 }
 0x6a1   :  { %v3827_v21 = vpop.f32.mrb[144].mxu0 }
 0x6a2   :  { %v5289_v22 = vadd.f32 %v7189_v30, %v3827_v21  ;;  %v3829_v23 = vpop.f32.mrb[145].mxu0  ;;  %5142 = vmatmul.mubr.bf16.gmra.mrb[180].mxu1 %v4061_v20 }
 0x6a3   :  { %v3830_v24 = vpop.f32.mrb[146].mxu0 }
 0x6a4   :  { %v5290_v25 = vadd.f32 %v7189_v30, %v3830_v24  ;;  %v3832_v26 = vpop.f32.mrb[147].mxu0  ;;  %v4010_v27 = vmax.f32 %v5289_v22, 0.0 }
 0x6a6   :  { %v4011_v28 = vmax.f32 %v5290_v25, 0.0 }
 0x6a8   :  { %v4062_v29 = vpack.c.bf16 %v4011_v28, %v4010_v27 }
 0x6a9   :  { %v3835_v31 = vpop.f32.mrb[148].mxu0 }
 0x6aa   :  { %v5291_v32 = vadd.f32 %v7189_v30, %v3835_v31  ;;  %v3837_v33 = vpop.f32.mrb[149].mxu0  ;;  %5145 = vmatprep.mubr.bf16.mxu1 %v4062_v29 }
 0x6ab   :  { %v3838_v35 = vpop.f32.mrb[150].mxu0 }
 0x6ac   :  { %v5292_v36 = vadd.f32 %v7189_v30, %v3838_v35  ;;  %v3840_v37 = vpop.f32.mrb[151].mxu0  ;;  %v4012_v38 = vmax.f32 %v5291_v32, 0.0 }
 0x6ae   :  { %v4013_v39 = vmax.f32 %v5292_v36, 0.0 }
 0x6b0   :  { %v4063_v40 = vpack.c.bf16 %v4013_v39, %v4012_v38 }
 0x6b1   :  { %v3843_v41 = vpop.f32.mrb[152].mxu0 }
 0x6b2   :  { %v5293_v42 = vadd.f32 %v7189_v30, %v3843_v41  ;;  %v3845_v44 = vpop.f32.mrb[153].mxu0  ;;  %5146 = vmatmul.mubr.bf16.gmra.mrb[184].mxu1 %v4063_v40 }
 0x6b3   :  { %v3846_v46 = vpop.f32.mrb[154].mxu0 }
 0x6b4   :  { %v5294_v48 = vadd.f32 %v7189_v30, %v3846_v46  ;;  %v3848_v49 = vpop.f32.mrb[155].mxu0  ;;  %v4014_v52 = vmax.f32 %v5293_v42, 0.0 }
 0x6b6   :  { %v4015_v54 = vmax.f32 %v5294_v48, 0.0 }
 0x6b8   :  { %v4064_v56 = vpack.c.bf16 %v4015_v54, %v4014_v52 }
 0x6b9   :  { %v3851_v58 = vpop.f32.mrb[156].mxu0 }
 0x6ba   :  { %v5295_v60 = vadd.f32 %v7189_v30, %v3851_v58  ;;  %v3853_v61 = vpop.f32.mrb[157].mxu0  ;;  %5149 = vmatprep.mubr.bf16.mxu1 %v4064_v56 }
 0x6bb   :  { %v3854_v0 = vpop.f32.mrb[158].mxu0 }
 0x6bc   :  { %v5296_v2 = vadd.f32 %v7189_v30, %v3854_v0  ;;  %v3856_v4 = vpop.f32.mrb[159].mxu0  ;;  %v4016_v6 = vmax.f32 %v5295_v60, 0.0 }
 0x6be   :  { %v4017_v8 = vmax.f32 %v5296_v2, 0.0 }
 0x6c0   :  { %v4065_v9 = vpack.c.bf16 %v4017_v8, %v4016_v6 }
 0x6c1   :  { %v3859_v12 = vpop.f32.mrb[160].mxu0 }
 0x6c2   :  { %v5297_v14 = vadd.f32 %v7189_v30, %v3859_v12  ;;  %v3861_v45 = vpop.f32.mrb[161].mxu0  ;;  %5150 = vmatmul.mubr.bf16.gmra.mrb[188].mxu1 %v4065_v9 }
 0x6c3   :  { %v3862_v43 = vpop.f32.mrb[162].mxu0 }
 0x6c4   :  { %v5298_v47 = vadd.f32 %v7189_v30, %v3862_v43  ;;  %v3864_v50 = vpop.f32.mrb[163].mxu0  ;;  %v4018_v51 = vmax.f32 %v5297_v14, 0.0 }
 0x6c6   :  { %v4019_v53 = vmax.f32 %v5298_v47, 0.0 }
 0x6c8   :  { %v4066_v55 = vpack.c.bf16 %v4019_v53, %v4018_v51 }
 0x6c9   :  { %v3867_v57 = vpop.f32.mrb[164].mxu0 }
 0x6ca   :  { %v5299_v34 = vadd.f32 %v7189_v30, %v3867_v57  ;;  %v3869_v59 = vpop.f32.mrb[165].mxu0  ;;  %5153 = vmatprep.mubr.bf16.mxu1 %v4066_v55 }
 0x6cb   :  { %v3870_v62 = vpop.f32.mrb[166].mxu0 }
 0x6cc   :  { %v5300_v63 = vadd.f32 %v7189_v30, %v3870_v62  ;;  %v3872_v1 = vpop.f32.mrb[167].mxu0  ;;  %v4020_v3 = vmax.f32 %v5299_v34, 0.0 }
 0x6ce   :  { %v4021_v5 = vmax.f32 %v5300_v63, 0.0 }
 0x6d0   :  { %v4067_v10 = vpack.c.bf16 %v4021_v5, %v4020_v3 }
 0x6d1   :  { %v3875_v11 = vpop.f32.mrb[168].mxu0 }
 0x6d2   :  { %v5301_v13 = vadd.f32 %v7189_v30, %v3875_v11  ;;  %v3877_v15 = vpop.f32.mrb[169].mxu0  ;;  %5154 = vmatmul.mubr.bf16.gmra.mrb[192].mxu1 %v4067_v10 }
 0x6d3   :  { %v3878_v7 = vpop.f32.mrb[170].mxu0 }
 0x6d4   :  { %v5302_v16 = vadd.f32 %v7189_v30, %v3878_v7  ;;  %v3880_v17 = vpop.f32.mrb[171].mxu0  ;;  %v4022_v18 = vmax.f32 %v5301_v13, 0.0 }
 0x6d6   :  { %v4023_v19 = vmax.f32 %v5302_v16, 0.0 }
 0x6d8   :  { %v4068_v20 = vpack.c.bf16 %v4023_v19, %v4022_v18 }
 0x6d9   :  { %v3883_v21 = vpop.f32.mrb[172].mxu0 }
 0x6da   :  { %v5303_v22 = vadd.f32 %v7189_v30, %v3883_v21  ;;  %v3885_v23 = vpop.f32.mrb[173].mxu0  ;;  %5157 = vmatprep.mubr.bf16.mxu1 %v4068_v20 }
 0x6db   :  { %v3886_v24 = vpop.f32.mrb[174].mxu0 }
 0x6dc   :  { %v5304_v25 = vadd.f32 %v7189_v30, %v3886_v24  ;;  %v3888_v26 = vpop.f32.mrb[175].mxu0  ;;  %v4024_v27 = vmax.f32 %v5303_v22, 0.0 }
 0x6de   :  { %v4025_v28 = vmax.f32 %v5304_v25, 0.0 }
 0x6e0   :  { %v4069_v29 = vpack.c.bf16 %v4025_v28, %v4024_v27 }
 0x6e1   :  { %v3891_v31 = vpop.f32.mrb[176].mxu0 }
 0x6e2   :  { %v5305_v32 = vadd.f32 %v7189_v30, %v3891_v31  ;;  %v3893_v33 = vpop.f32.mrb[177].mxu0  ;;  %5158 = vmatmul.mubr.bf16.gmra.mrb[196].mxu1 %v4069_v29 }
 0x6e3   :  { %v3894_v35 = vpop.f32.mrb[178].mxu0 }
 0x6e4   :  { %v5306_v36 = vadd.f32 %v7189_v30, %v3894_v35  ;;  %v3896_v37 = vpop.f32.mrb[179].mxu0  ;;  %v4026_v38 = vmax.f32 %v5305_v32, 0.0 }
 0x6e6   :  { %v4027_v39 = vmax.f32 %v5306_v36, 0.0 }
 0x6e8   :  { %v4070_v40 = vpack.c.bf16 %v4027_v39, %v4026_v38 }
 0x6e9   :  { %v3899_v41 = vpop.f32.mrb[180].mxu0 }
 0x6ea   :  { %v5307_v42 = vadd.f32 %v7189_v30, %v3899_v41  ;;  %v3901_v44 = vpop.f32.mrb[181].mxu0  ;;  %5161 = vmatprep.mubr.bf16.mxu1 %v4070_v40 }
 0x6eb   :  { %v3902_v46 = vpop.f32.mrb[182].mxu0 }
 0x6ec   :  { %v5308_v48 = vadd.f32 %v7189_v30, %v3902_v46  ;;  %v3904_v49 = vpop.f32.mrb[183].mxu0  ;;  %v4028_v52 = vmax.f32 %v5307_v42, 0.0 }
 0x6ee   :  { %v4029_v54 = vmax.f32 %v5308_v48, 0.0  ;;  %v7278_v48 = vld [vmem:[%s7550_s7] ss:$0 sm:$0xff] }
 0x6f0   :  { %v4071_v56 = vpack.c.bf16 %v4029_v54, %v4028_v52 }
 0x6f1   :  { %v3907_v58 = vpop.f32.mrb[184].mxu0 }
 0x6f2   :  { %v5309_v60 = vadd.f32 %v7189_v30, %v3907_v58  ;;  %v3909_v61 = vpop.f32.mrb[185].mxu0  ;;  %5162 = vmatmul.mubr.bf16.gmra.mrb[200].mxu1 %v4071_v56 }
 0x6f3   :  { %v3910_v0 = vpop.f32.mrb[186].mxu0 }
 0x6f4   :  { %v5310_v2 = vadd.f32 %v7189_v30, %v3910_v0  ;;  %v3912_v4 = vpop.f32.mrb[187].mxu0  ;;  %v4030_v6 = vmax.f32 %v5309_v60, 0.0 }
 0x6f6   :  { %v4031_v8 = vmax.f32 %v5310_v2, 0.0 }
 0x6f8   :  { %v4072_v9 = vpack.c.bf16 %v4031_v8, %v4030_v6 }
 0x6f9   :  { %v3915_v12 = vpop.f32.mrb[188].mxu0 }
 0x6fa   :  { %v5311_v14 = vadd.f32 %v7189_v30, %v3915_v12  ;;  %v3917_v45 = vpop.f32.mrb[189].mxu0  ;;  %5165 = vmatprep.mubr.bf16.mxu1 %v4072_v9 }
 0x6fb   :  { %v3918_v43 = vpop.f32.mrb[190].mxu0 }
 0x6fc   :  { %v5312_v47 = vadd.f32 %v7189_v30, %v3918_v43  ;;  %v3920_v50 = vpop.f32.mrb[191].mxu0  ;;  %v4032_v51 = vmax.f32 %v5311_v14, 0.0 }
 0x6fe   :  { %v4033_v53 = vmax.f32 %v5312_v47, 0.0 }
 0x700   :  { %v4073_v55 = vpack.c.bf16 %v4033_v53, %v4032_v51 }
 0x701   :  { %v3923_v57 = vpop.f32.mrb[192].mxu0 }
 0x702   :  { %v5313_v34 = vadd.f32 %v7189_v30, %v3923_v57  ;;  %v3925_v59 = vpop.f32.mrb[193].mxu0  ;;  %5166 = vmatmul.mubr.bf16.gmra.mrb[204].mxu1 %v4073_v55 }
 0x703   :  { %v3926_v62 = vpop.f32.mrb[194].mxu0 }
 0x704   :  { %v5314_v63 = vadd.f32 %v7189_v30, %v3926_v62  ;;  %v3928_v1 = vpop.f32.mrb[195].mxu0  ;;  %v4034_v3 = vmax.f32 %v5313_v34, 0.0 }
 0x706   :  { %v4035_v5 = vmax.f32 %v5314_v63, 0.0 }
 0x708   :  { %v4074_v10 = vpack.c.bf16 %v4035_v5, %v4034_v3 }
 0x709   :  { %v3931_v11 = vpop.f32.mrb[196].mxu0 }
 0x70a   :  { %v5315_v13 = vadd.f32 %v7189_v30, %v3931_v11  ;;  %v3933_v15 = vpop.f32.mrb[197].mxu0  ;;  %5169 = vmatprep.mubr.bf16.mxu1 %v4074_v10 }
 0x70b   :  { %v3934_v7 = vpop.f32.mrb[198].mxu0 }
 0x70c   :  { %v5316_v16 = vadd.f32 %v7189_v30, %v3934_v7  ;;  %v3936_v17 = vpop.f32.mrb[199].mxu0  ;;  %v4036_v18 = vmax.f32 %v5315_v13, 0.0 }
 0x70e   :  { %v4037_v19 = vmax.f32 %v5316_v16, 0.0 }
 0x710   :  { %v4075_v20 = vpack.c.bf16 %v4037_v19, %v4036_v18 }
 0x711   :  { %v3939_v21 = vpop.f32.mrb[200].mxu0 }
 0x712   :  { %v5317_v22 = vadd.f32 %v7189_v30, %v3939_v21  ;;  %v3941_v23 = vpop.f32.mrb[201].mxu0  ;;  %5170 = vmatmul.mubr.bf16.gmra.mrb[208].mxu1 %v4075_v20 }
 0x713   :  { %v3942_v24 = vpop.f32.mrb[202].mxu0 }
 0x714   :  { %v5318_v25 = vadd.f32 %v7189_v30, %v3942_v24  ;;  %v3944_v26 = vpop.f32.mrb[203].mxu0  ;;  %v4038_v27 = vmax.f32 %v5317_v22, 0.0 }
 0x716   :  { %v4039_v28 = vmax.f32 %v5318_v25, 0.0 }
 0x718   :  { %v4076_v29 = vpack.c.bf16 %v4039_v28, %v4038_v27 }
 0x719   :  { %v3947_v31 = vpop.f32.mrb[204].mxu0 }
 0x71a   :  { %v5319_v32 = vadd.f32 %v7189_v30, %v3947_v31  ;;  %v3949_v33 = vpop.f32.mrb[205].mxu0  ;;  %5173 = vmatprep.mubr.bf16.mxu1 %v4076_v29 }
 0x71b   :  { %v3950_v35 = vpop.f32.mrb[206].mxu0 }
 0x71c   :  { %v5320_v36 = vadd.f32 %v7189_v30, %v3950_v35  ;;  %v3952_v37 = vpop.f32.mrb[207].mxu0  ;;  %v4040_v38 = vmax.f32 %v5319_v32, 0.0 }
 0x71e   :  { %v4041_v39 = vmax.f32 %v5320_v36, 0.0 }
 0x720   :  { %v4077_v40 = vpack.c.bf16 %v4041_v39, %v4040_v38 }
 0x721   :  { %v3955_v41 = vpop.f32.mrb[208].mxu0 }
 0x722   :  { %v5321_v42 = vadd.f32 %v7189_v30, %v3955_v41  ;;  %v3957_v44 = vpop.f32.mrb[209].mxu0  ;;  %5174 = vmatmul.mubr.bf16.gmra.mrb[212].mxu1 %v4077_v40 }
 0x723   :  { %v3958_v46 = vpop.f32.mrb[210].mxu0 }
 0x724   :  { %v5322_v49 = vadd.f32 %v7189_v30, %v3958_v46  ;;  %v3960_v52 = vpop.f32.mrb[211].mxu0  ;;  %v4042_v56 = vmax.f32 %v5321_v42, 0.0 }
 0x725   :  { %v5123_v54 = vpop.f32.mrb[160].mxu1 }
 0x726   :  { %v4043_v58 = vmax.f32 %v5322_v49, 0.0  ;;  %v4196_v60 = vadd.f32 %v5123_v54, %v7278_v48  ;;  %v4187_v61 = vpop.f32.mrb[161].mxu1 }
 0x727   :  { %v4188_v0 = vadd.f32 %v7278_v48, %v4187_v61  ;;  %v5124_v2 = vpop.f32.mrb[162].mxu1 }
 0x728   :  { %v4078_v4 = vpack.c.bf16 %v4043_v58, %v4042_v56  ;;  %4444 = vst [vmem:[%s7551_s8 + $0x10] sm:$0xff] %v4196_v60  ;;  %v4199_v6 = vadd.f32 %v5124_v2, %v7278_v48  ;;  %v4190_v8 = vpop.f32.mrb[163].mxu1 }
 0x729   :  { %4442 = vst [vmem:[%s7551_s8] sm:$0xff] %v4188_v0  ;;  %v4191_v9 = vadd.f32 %v7278_v48, %v4190_v8  ;;  %v3963_v12 = vpop.f32.mrb[212].mxu0 }
 0x72a   :  { %4445 = vst [vmem:[%s7551_s8 + $0x18] sm:$0xff] %v4199_v6  ;;  %v5323_v14 = vadd.f32 %v7189_v30, %v3963_v12  ;;  %v3965_v45 = vpop.f32.mrb[213].mxu0  ;;  %5177 = vmatprep.mubr.bf16.mxu1 %v4078_v4 }
 0x72b   :  { %4443 = vst [vmem:[%s7551_s8 + $0x8] sm:$0xff] %v4191_v9  ;;  %v3966_v43 = vpop.f32.mrb[214].mxu0 }
 0x72c   :  { %v5324_v47 = vadd.f32 %v7189_v30, %v3966_v43  ;;  %v3968_v50 = vpop.f32.mrb[215].mxu0  ;;  %v4044_v51 = vmax.f32 %v5323_v14, 0.0 }
 0x72e   :  { %v4045_v53 = vmax.f32 %v5324_v47, 0.0 }
 0x730   :  { %v4079_v55 = vpack.c.bf16 %v4045_v53, %v4044_v51 }
 0x731   :  { %v3971_v57 = vpop.f32.mrb[216].mxu0 }
 0x732   :  { %v5325_v34 = vadd.f32 %v7189_v30, %v3971_v57  ;;  %v3973_v59 = vpop.f32.mrb[217].mxu0  ;;  %5178 = vmatmul.mubr.bf16.gmra.mrb[216].mxu1 %v4079_v55 }
 0x733   :  { %v3974_v62 = vpop.f32.mrb[218].mxu0 }
 0x734   :  { %v5326_v63 = vadd.f32 %v7189_v30, %v3974_v62  ;;  %v3976_v1 = vpop.f32.mrb[219].mxu0  ;;  %v4046_v5 = vmax.f32 %v5325_v34, 0.0 }
 0x735   :  { %v5127_v3 = vpop.f32.mrb[164].mxu1 }
 0x736   :  { %v4047_v10 = vmax.f32 %v5326_v63, 0.0  ;;  %v4212_v11 = vadd.f32 %v5127_v3, %v7278_v48  ;;  %v4203_v13 = vpop.f32.mrb[165].mxu1 }
 0x737   :  { %v4204_v15 = vadd.f32 %v7278_v48, %v4203_v13  ;;  %v5128_v7 = vpop.f32.mrb[166].mxu1 }
 0x738   :  { %v4080_v16 = vpack.c.bf16 %v4047_v10, %v4046_v5  ;;  %4448 = vst [vmem:[%s7551_s8 + $0x30] sm:$0xff] %v4212_v11  ;;  %v4215_v17 = vadd.f32 %v5128_v7, %v7278_v48  ;;  %v4206_v18 = vpop.f32.mrb[167].mxu1 }
 0x739   :  { %4446 = vst [vmem:[%s7551_s8 + $0x20] sm:$0xff] %v4204_v15  ;;  %v4207_v19 = vadd.f32 %v7278_v48, %v4206_v18  ;;  %v3979_v20 = vpop.f32.mrb[220].mxu0 }
 0x73a   :  { %4449 = vst [vmem:[%s7551_s8 + $0x38] sm:$0xff] %v4215_v17  ;;  %v5327_v21 = vadd.f32 %v7189_v30, %v3979_v20  ;;  %v3981_v22 = vpop.f32.mrb[221].mxu0  ;;  %5181 = vmatprep.mubr.bf16.mxu1 %v4080_v16 }
 0x73b   :  { %4447 = vst [vmem:[%s7551_s8 + $0x28] sm:$0xff] %v4207_v19  ;;  %v3982_v23 = vpop.f32.mrb[222].mxu0 }
 0x73c   :  { %v5328_v24 = vadd.f32 %v7189_v30, %v3982_v23  ;;  %v3984_v25 = vpop.f32.mrb[223].mxu0  ;;  %v4048_v26 = vmax.f32 %v5327_v21, 0.0 }
 0x73e   :  { %v4049_v27 = vmax.f32 %v5328_v24, 0.0 }
 0x740   :  { %v4081_v28 = vpack.c.bf16 %v4049_v27, %v4048_v26 }
 0x742   :  { %5182 = vmatmul.mubr.bf16.gmra.mrb[220].mxu1 %v4081_v28 }
 0x745   :  { %v5131_v29 = vpop.f32.mrb[168].mxu1 }
 0x746   :  { %v4228_v31 = vadd.f32 %v5131_v29, %v7278_v48  ;;  %v4219_v32 = vpop.f32.mrb[169].mxu1 }
 0x747   :  { %v4220_v33 = vadd.f32 %v7278_v48, %v4219_v32  ;;  %v5132_v35 = vpop.f32.mrb[170].mxu1 }
 0x748   :  { %4452 = vst [vmem:[%s7551_s8 + $0x50] sm:$0xff] %v4228_v31  ;;  %v4231_v36 = vadd.f32 %v5132_v35, %v7278_v48  ;;  %v4222_v37 = vpop.f32.mrb[171].mxu1 }
 0x749   :  { %4450 = vst [vmem:[%s7551_s8 + $0x40] sm:$0xff] %v4220_v33  ;;  %v4223_v30 = vadd.f32 %v7278_v48, %v4222_v37 }
 0x74a   :  { %4453 = vst [vmem:[%s7551_s8 + $0x58] sm:$0xff] %v4231_v36 }
 0x74b   :  { %4451 = vst [vmem:[%s7551_s8 + $0x48] sm:$0xff] %v4223_v30 }
 0x755   :  { %v5135_v38 = vpop.f32.mrb[172].mxu1 }
 0x756   :  { %v4244_v39 = vadd.f32 %v5135_v38, %v7278_v48  ;;  %v4235_v40 = vpop.f32.mrb[173].mxu1 }
 0x757   :  { %v4236_v41 = vadd.f32 %v7278_v48, %v4235_v40  ;;  %v5136_v42 = vpop.f32.mrb[174].mxu1 }
 0x758   :  { %4456 = vst [vmem:[%s7551_s8 + $0x70] sm:$0xff] %v4244_v39  ;;  %v4247_v44 = vadd.f32 %v5136_v42, %v7278_v48  ;;  %v4238_v46 = vpop.f32.mrb[175].mxu1 }
 0x759   :  { %4454 = vst [vmem:[%s7551_s8 + $0x60] sm:$0xff] %v4236_v41  ;;  %v4239_v49 = vadd.f32 %v7278_v48, %v4238_v46 }
 0x75a   :  { %4457 = vst [vmem:[%s7551_s8 + $0x78] sm:$0xff] %v4247_v44 }
 0x75b   :  { %4455 = vst [vmem:[%s7551_s8 + $0x68] sm:$0xff] %v4239_v49 }
 0x765   :  { %v5139_v52 = vpop.f32.mrb[176].mxu1 }
 0x766   :  { %v4260_v54 = vadd.f32 %v5139_v52, %v7278_v48  ;;  %v4251_v56 = vpop.f32.mrb[177].mxu1 }
 0x767   :  { %v4252_v58 = vadd.f32 %v7278_v48, %v4251_v56  ;;  %v5140_v60 = vpop.f32.mrb[178].mxu1 }
 0x768   :  { %4460 = vst [vmem:[%s7551_s8 + $0x90] sm:$0xff] %v4260_v54  ;;  %v4263_v61 = vadd.f32 %v5140_v60, %v7278_v48  ;;  %v4254_v0 = vpop.f32.mrb[179].mxu1 }
 0x769   :  { %4458 = vst [vmem:[%s7551_s8 + $0x80] sm:$0xff] %v4252_v58  ;;  %v4255_v2 = vadd.f32 %v7278_v48, %v4254_v0 }
 0x76a   :  { %4461 = vst [vmem:[%s7551_s8 + $0x98] sm:$0xff] %v4263_v61 }
 0x76b   :  { %4459 = vst [vmem:[%s7551_s8 + $0x88] sm:$0xff] %v4255_v2 }
 0x775   :  { %v5143_v4 = vpop.f32.mrb[180].mxu1 }
 0x776   :  { %v4276_v6 = vadd.f32 %v5143_v4, %v7278_v48  ;;  %v4267_v8 = vpop.f32.mrb[181].mxu1 }
 0x777   :  { %v4268_v9 = vadd.f32 %v7278_v48, %v4267_v8  ;;  %v5144_v12 = vpop.f32.mrb[182].mxu1 }
 0x778   :  { %4464 = vst [vmem:[%s7551_s8 + $0xb0] sm:$0xff] %v4276_v6  ;;  %v4279_v14 = vadd.f32 %v5144_v12, %v7278_v48  ;;  %v4270_v45 = vpop.f32.mrb[183].mxu1 }
 0x779   :  { %4462 = vst [vmem:[%s7551_s8 + $0xa0] sm:$0xff] %v4268_v9  ;;  %v4271_v43 = vadd.f32 %v7278_v48, %v4270_v45 }
 0x77a   :  { %4465 = vst [vmem:[%s7551_s8 + $0xb8] sm:$0xff] %v4279_v14 }
 0x77b   :  { %4463 = vst [vmem:[%s7551_s8 + $0xa8] sm:$0xff] %v4271_v43 }
 0x785   :  { %v5147_v47 = vpop.f32.mrb[184].mxu1 }
 0x786   :  { %v4292_v50 = vadd.f32 %v5147_v47, %v7278_v48  ;;  %v4283_v51 = vpop.f32.mrb[185].mxu1 }
 0x787   :  { %v4284_v53 = vadd.f32 %v7278_v48, %v4283_v51  ;;  %v5148_v55 = vpop.f32.mrb[186].mxu1 }
 0x788   :  { %4468 = vst [vmem:[%s7551_s8 + $0xd0] sm:$0xff] %v4292_v50  ;;  %v4295_v57 = vadd.f32 %v5148_v55, %v7278_v48  ;;  %v4286_v34 = vpop.f32.mrb[187].mxu1 }
 0x789   :  { %4466 = vst [vmem:[%s7551_s8 + $0xc0] sm:$0xff] %v4284_v53  ;;  %v4287_v59 = vadd.f32 %v7278_v48, %v4286_v34 }
 0x78a   :  { %4469 = vst [vmem:[%s7551_s8 + $0xd8] sm:$0xff] %v4295_v57 }
 0x78b   :  { %4467 = vst [vmem:[%s7551_s8 + $0xc8] sm:$0xff] %v4287_v59 }
 0x795   :  { %v5151_v62 = vpop.f32.mrb[188].mxu1 }
 0x796   :  { %v4308_v63 = vadd.f32 %v5151_v62, %v7278_v48  ;;  %v4299_v1 = vpop.f32.mrb[189].mxu1 }
 0x797   :  { %v4300_v3 = vadd.f32 %v7278_v48, %v4299_v1  ;;  %v5152_v5 = vpop.f32.mrb[190].mxu1 }
 0x798   :  { %4472 = vst [vmem:[%s7551_s8 + $0xf0] sm:$0xff] %v4308_v63  ;;  %v4311_v10 = vadd.f32 %v5152_v5, %v7278_v48  ;;  %v4302_v11 = vpop.f32.mrb[191].mxu1 }
 0x799   :  { %4470 = vst [vmem:[%s7551_s8 + $0xe0] sm:$0xff] %v4300_v3  ;;  %v4303_v13 = vadd.f32 %v7278_v48, %v4302_v11 }
 0x79a   :  { %4473 = vst [vmem:[%s7551_s8 + $0xf8] sm:$0xff] %v4311_v10 }
 0x79b   :  { %4471 = vst [vmem:[%s7551_s8 + $0xe8] sm:$0xff] %v4303_v13 }
 0x7a5   :  { %v5155_v15 = vpop.f32.mrb[192].mxu1 }
 0x7a6   :  { %v4324_v7 = vadd.f32 %v5155_v15, %v7278_v48  ;;  %v4315_v16 = vpop.f32.mrb[193].mxu1 }
 0x7a7   :  { %v4316_v17 = vadd.f32 %v7278_v48, %v4315_v16  ;;  %v5156_v18 = vpop.f32.mrb[194].mxu1 }
 0x7a8   :  { %4476 = vst [vmem:[%s7551_s8 + $0x110] sm:$0xff] %v4324_v7  ;;  %v4327_v19 = vadd.f32 %v5156_v18, %v7278_v48  ;;  %v4318_v20 = vpop.f32.mrb[195].mxu1 }
 0x7a9   :  { %4474 = vst [vmem:[%s7551_s8 + $0x100] sm:$0xff] %v4316_v17  ;;  %v4319_v21 = vadd.f32 %v7278_v48, %v4318_v20 }
 0x7aa   :  { %4477 = vst [vmem:[%s7551_s8 + $0x118] sm:$0xff] %v4327_v19 }
 0x7ab   :  { %4475 = vst [vmem:[%s7551_s8 + $0x108] sm:$0xff] %v4319_v21 }
 0x7b5   :  { %v5159_v22 = vpop.f32.mrb[196].mxu1 }
 0x7b6   :  { %v4340_v23 = vadd.f32 %v5159_v22, %v7278_v48  ;;  %v4331_v24 = vpop.f32.mrb[197].mxu1 }
 0x7b7   :  { %v4332_v25 = vadd.f32 %v7278_v48, %v4331_v24  ;;  %v5160_v26 = vpop.f32.mrb[198].mxu1 }
 0x7b8   :  { %4480 = vst [vmem:[%s7551_s8 + $0x130] sm:$0xff] %v4340_v23  ;;  %v4343_v27 = vadd.f32 %v5160_v26, %v7278_v48  ;;  %v4334_v28 = vpop.f32.mrb[199].mxu1 }
 0x7b9   :  { %4478 = vst [vmem:[%s7551_s8 + $0x120] sm:$0xff] %v4332_v25  ;;  %v4335_v29 = vadd.f32 %v7278_v48, %v4334_v28 }
 0x7ba   :  { %4481 = vst [vmem:[%s7551_s8 + $0x138] sm:$0xff] %v4343_v27 }
 0x7bb   :  { %4479 = vst [vmem:[%s7551_s8 + $0x128] sm:$0xff] %v4335_v29 }
 0x7c5   :  { %v5163_v31 = vpop.f32.mrb[200].mxu1 }
 0x7c6   :  { %v4356_v32 = vadd.f32 %v5163_v31, %v7278_v48  ;;  %v4347_v33 = vpop.f32.mrb[201].mxu1 }
 0x7c7   :  { %v4348_v35 = vadd.f32 %v7278_v48, %v4347_v33  ;;  %v5164_v36 = vpop.f32.mrb[202].mxu1 }
 0x7c8   :  { %4484 = vst [vmem:[%s7551_s8 + $0x150] sm:$0xff] %v4356_v32  ;;  %v4359_v37 = vadd.f32 %v5164_v36, %v7278_v48  ;;  %v4350_v30 = vpop.f32.mrb[203].mxu1 }
 0x7c9   :  { %4482 = vst [vmem:[%s7551_s8 + $0x140] sm:$0xff] %v4348_v35  ;;  %v4351_v38 = vadd.f32 %v7278_v48, %v4350_v30 }
 0x7ca   :  { %4485 = vst [vmem:[%s7551_s8 + $0x158] sm:$0xff] %v4359_v37 }
 0x7cb   :  { %4483 = vst [vmem:[%s7551_s8 + $0x148] sm:$0xff] %v4351_v38 }
 0x7d5   :  { %v5167_v39 = vpop.f32.mrb[204].mxu1 }
 0x7d6   :  { %v4372_v40 = vadd.f32 %v5167_v39, %v7278_v48  ;;  %v4363_v41 = vpop.f32.mrb[205].mxu1 }
 0x7d7   :  { %v4364_v42 = vadd.f32 %v7278_v48, %v4363_v41  ;;  %v5168_v44 = vpop.f32.mrb[206].mxu1 }
 0x7d8   :  { %4488 = vst [vmem:[%s7551_s8 + $0x170] sm:$0xff] %v4372_v40  ;;  %v4375_v46 = vadd.f32 %v5168_v44, %v7278_v48  ;;  %v4366_v49 = vpop.f32.mrb[207].mxu1 }
 0x7d9   :  { %4486 = vst [vmem:[%s7551_s8 + $0x160] sm:$0xff] %v4364_v42  ;;  %v4367_v52 = vadd.f32 %v7278_v48, %v4366_v49 }
 0x7da   :  { %4489 = vst [vmem:[%s7551_s8 + $0x178] sm:$0xff] %v4375_v46 }
 0x7db   :  { %4487 = vst [vmem:[%s7551_s8 + $0x168] sm:$0xff] %v4367_v52 }
 0x7e5   :  { %v5171_v54 = vpop.f32.mrb[208].mxu1 }
 0x7e6   :  { %v4388_v56 = vadd.f32 %v5171_v54, %v7278_v48  ;;  %v4379_v58 = vpop.f32.mrb[209].mxu1 }
 0x7e7   :  { %v4380_v60 = vadd.f32 %v7278_v48, %v4379_v58  ;;  %v5172_v61 = vpop.f32.mrb[210].mxu1 }
 0x7e8   :  { %4492 = vst [vmem:[%s7551_s8 + $0x190] sm:$0xff] %v4388_v56  ;;  %v4391_v0 = vadd.f32 %v5172_v61, %v7278_v48  ;;  %v4382_v2 = vpop.f32.mrb[211].mxu1 }
 0x7e9   :  { %4490 = vst [vmem:[%s7551_s8 + $0x180] sm:$0xff] %v4380_v60  ;;  %v4383_v4 = vadd.f32 %v7278_v48, %v4382_v2 }
 0x7ea   :  { %4493 = vst [vmem:[%s7551_s8 + $0x198] sm:$0xff] %v4391_v0 }
 0x7eb   :  { %4491 = vst [vmem:[%s7551_s8 + $0x188] sm:$0xff] %v4383_v4 }
 0x7f5   :  { %v5175_v6 = vpop.f32.mrb[212].mxu1 }
 0x7f6   :  { %v4404_v8 = vadd.f32 %v5175_v6, %v7278_v48  ;;  %v4395_v9 = vpop.f32.mrb[213].mxu1 }
 0x7f7   :  { %v4396_v12 = vadd.f32 %v7278_v48, %v4395_v9  ;;  %v5176_v14 = vpop.f32.mrb[214].mxu1 }
 0x7f8   :  { %4496 = vst [vmem:[%s7551_s8 + $0x1b0] sm:$0xff] %v4404_v8  ;;  %v4407_v45 = vadd.f32 %v5176_v14, %v7278_v48  ;;  %v4398_v43 = vpop.f32.mrb[215].mxu1 }
 0x7f9   :  { %4494 = vst [vmem:[%s7551_s8 + $0x1a0] sm:$0xff] %v4396_v12  ;;  %v4399_v47 = vadd.f32 %v7278_v48, %v4398_v43 }
 0x7fa   :  { %4497 = vst [vmem:[%s7551_s8 + $0x1b8] sm:$0xff] %v4407_v45 }
 0x7fb   :  { %4495 = vst [vmem:[%s7551_s8 + $0x1a8] sm:$0xff] %v4399_v47 }
 0x805   :  { %v5179_v50 = vpop.f32.mrb[216].mxu1 }
 0x806   :  { %v4420_v51 = vadd.f32 %v5179_v50, %v7278_v48  ;;  %v4411_v53 = vpop.f32.mrb[217].mxu1 }
 0x807   :  { %v4412_v55 = vadd.f32 %v7278_v48, %v4411_v53  ;;  %v5180_v57 = vpop.f32.mrb[218].mxu1 }
 0x808   :  { %4500 = vst [vmem:[%s7551_s8 + $0x1d0] sm:$0xff] %v4420_v51  ;;  %v4423_v34 = vadd.f32 %v5180_v57, %v7278_v48  ;;  %v4414_v59 = vpop.f32.mrb[219].mxu1 }
 0x809   :  { %4498 = vst [vmem:[%s7551_s8 + $0x1c0] sm:$0xff] %v4412_v55  ;;  %v4415_v62 = vadd.f32 %v7278_v48, %v4414_v59 }
 0x80a   :  { %4501 = vst [vmem:[%s7551_s8 + $0x1d8] sm:$0xff] %v4423_v34 }
 0x80b   :  { %4499 = vst [vmem:[%s7551_s8 + $0x1c8] sm:$0xff] %v4415_v62 }
 0x815   :  { %v5183_v63 = vpop.f32.mrb[220].mxu1 }
 0x816   :  { %v4436_v1 = vadd.f32 %v5183_v63, %v7278_v48  ;;  %v4427_v3 = vpop.f32.mrb[221].mxu1 }
 0x817   :  { %v4428_v5 = vadd.f32 %v7278_v48, %v4427_v3  ;;  %v5184_v10 = vpop.f32.mrb[222].mxu1 }
 0x818   :  { %4504 = vst [vmem:[%s7551_s8 + $0x1f0] sm:$0xff] %v4436_v1  ;;  %v4439_v11 = vadd.f32 %v5184_v10, %v7278_v48  ;;  %v4430_v13 = vpop.f32.mrb[223].mxu1 }
 0x819   :  { %4502 = vst [vmem:[%s7551_s8 + $0x1e0] sm:$0xff] %v4428_v5  ;;  %v4431_v15 = vadd.f32 %v7278_v48, %v4430_v13 }
 0x81a   :  { %4505 = vst [vmem:[%s7551_s8 + $0x1f8] sm:$0xff] %v4439_v11 }
 0x81b   :  { %4503 = vst [vmem:[%s7551_s8 + $0x1e8] sm:$0xff] %v4431_v15 }

</bundles_post_ra>
